<compile_context>
chip_gen: v7x
topology: tpu7x:2x2x1
jax: 0.10.0
libtpu: 0.0.40
codegen_flags: <defaults>
</compile_context>

<pallas_src>
import jax
import jax.numpy as jnp
from jax.experimental import pallas as pl
from jax.experimental.pallas import tpu as pltpu

EPS = 1e-5            # nn.InstanceNorm2d default eps
PAD_OFF = 16          # interior column offset in the padded scratch
                      # (bf16 packs 16 sublanes/vreg -> unmasked interior store)
SPLIT_K_MIN_C = 128   # switch to per-tap K=C matmuls once C alone feeds the MXU


def _write_reflect_pad(xp_ref, v, H, W):
    """Write ReflectionPad2d(1)(v) into columns [PAD_OFF-1, PAD_OFF+W] of xp_ref.

    v: (H, W, C) bf16 value. Plain stores only: interior (sublane-aligned) +
    mirrored top/bottom rows, then the left/right mirror columns are copied
    from already-written scratch columns (this also fills the four corners).
    """
    o = PAD_OFF
    xp_ref[1:H + 1, o:o + W, :] = v                       # interior (aligned vst)
    xp_ref[0:1, o:o + W, :] = v[1:2]                      # top pad row    <- row 1
    xp_ref[H + 1:H + 2, o:o + W, :] = v[H - 2:H - 1]      # bottom pad row <- row H-2
    xp_ref[:, o - 1:o, :] = xp_ref[:, o + 1:o + 2, :]     # left  pad col  <- col 1
    xp_ref[:, o + W:o + W + 1, :] = xp_ref[:, o + W - 2:o + W - 1, :]  # right pad col


def _conv3x3(xp_ref, w_ref, H, W, C):
    """3x3 'VALID' conv over the padded scratch; returns (H*W, C) f32 (no bias).

    w_ref: (3, 3C, C) bf16, row index = dx*C + ci for kernel row dy.
    """
    o = PAD_OFF
    acc = None
    if C >= SPLIT_K_MIN_C:
        # 9 matmuls with K=C; one bf16 tap slab live at a time (v6e/v7x friendly:
        # no (HW,3C) patch copies, minimal live VMEM on 64 MiB v7x).
        for dy in range(3):
            for dx in range(3):
                tap = xp_ref[dy:dy + H, o - 1 + dx:o - 1 + dx + W, :].reshape(H * W, C)
                d = jnp.dot(tap, w_ref[dy, dx * C:(dx + 1) * C, :],
                            preferred_element_type=jnp.float32)
                acc = d if acc is None else acc + d
    else:
        # Small C: fold the 3 dx taps into the contraction dim (K=3C) so the
        # tiny matmuls are batched. Hoist the dx-shifted full-height views
        # (only dx=0,2 are sublane-misaligned loads; dy slices are free).
        s0 = xp_ref[:, o - 1:o - 1 + W, :]
        s1 = xp_ref[:, o:o + W, :]
        s2 = xp_ref[:, o + 1:o + 1 + W, :]
        for dy in range(3):
            patch = jnp.concatenate(
                [s0[dy:dy + H], s1[dy:dy + H], s2[dy:dy + H]], axis=2,
            ).reshape(H * W, 3 * C)
            d = jnp.dot(patch, w_ref[dy], preferred_element_type=jnp.float32)
            acc = d if acc is None else acc + d
    return acc


def _instance_norm(y):
    """InstanceNorm2d(affine=False) over spatial positions; y: (HW, C) f32.

    Two-pass form (mean, then centered variance) — avoids the E[y^2]-E[y]^2
    cancellation at large HW; the centered value is reused for the output.
    """
    mean = jnp.mean(y, axis=0, keepdims=True)
    d = y - mean
    var = jnp.mean(d * d, axis=0, keepdims=True)
    return d * jax.lax.rsqrt(var + EPS)


def resnet_block_kernel(x_ref, w1_ref, w2_ref, o_ref, xp_ref):
    H, W, C = x_ref.shape

    # conv block part 1: ReflectionPad -> Conv3x3 -> InstanceNorm -> ReLU
    _write_reflect_pad(xp_ref, x_ref[...].astype(jnp.bfloat16), H, W)
    h = jnp.maximum(_instance_norm(_conv3x3(xp_ref, w1_ref, H, W, C)), 0.0)
    # TODO(synk): use_dropout=False, so nn.Dropout(0.5) is identity in eval; omitted.

    # conv block part 2: ReflectionPad -> Conv3x3 -> InstanceNorm
    _write_reflect_pad(xp_ref, h.reshape(H, W, C).astype(jnp.bfloat16), H, W)
    h2 = _instance_norm(_conv3x3(xp_ref, w2_ref, H, W, C))

    # skip connection: re-read the (still resident) input block in f32 here,
    # instead of holding the full f32 sample live across both convs.
    o_ref[...] = x_ref[...] + h2.reshape(H, W, C)


def _vmem_limit_bytes(H, W, C, WP):
    """Generation-aware VMEM limit: generous estimate, capped at physical
    capacity minus headroom for Mosaic internal scratch."""
    act_f32 = H * W * C * 4
    pad_bf16 = (H + 2) * WP * C * 2
    w_bf16 = 2 * 3 * 3 * C * C * 2
    if C >= SPLIT_K_MIN_C:
        conv_live = H * W * C * 2 + act_f32                 # one bf16 tap + f32 acc
    else:
        conv_live = (3 * (H + 2) * W * C * 2                 # s0/s1/s2
                     + H * W * 3 * C * 2                     # patch
                     + act_f32)                              # f32 acc
    est = (4 * act_f32          # x/out blocks, double-buffered f32
           + 2 * w_bf16         # weights (default double-buffered)
           + pad_bf16
           + conv_live
           + 2 * act_f32)       # h / h2 f32 intermediates
    try:
        cap = pltpu.get_tpu_info().vmem_capacity_bytes       # 64 MiB v7x, 128 MiB v5e/v6e
    except Exception:
        cap = 64 * 2 ** 20
    headroom = 12 * 2 ** 20
    return int(max(32 * 2 ** 20, min(cap - headroom, 2 * est)))


def resnet_block(x_nchw, w1, b1, w2, b2):
    """ResnetBlock forward. x_nchw: (B, C, H, W) f32; w*: (3,3,Cin,Cout); b*: (C,).

    The conv biases are accepted for parameter parity with the nn.Module but are
    never sent to the kernel: a per-channel constant added immediately before an
    affine-free InstanceNorm is cancelled exactly by the mean subtraction.
    """
    B, C, H, W = x_nchw.shape
    assert H >= 2 and W >= 2, "ReflectionPad2d(1) requires H, W >= 2"
    assert W % 16 == 0, "W must be a multiple of 16 (bf16 sublane tile) for free reshapes"
    del b1, b2  # mathematically a no-op before affine-free InstanceNorm

    x = jnp.transpose(x_nchw, (0, 2, 3, 1)).astype(jnp.float32)  # NHWC

    # Fold the dx taps into the contraction dim: (3,3,Cin,Cout) -> (3, 3*Cin, Cout)
    # (row index = dx*C + ci). bf16 weights halve the VMEM they pin.
    w1r = w1.reshape(3, 3 * C, C).astype(jnp.bfloat16)
    w2r = w2.reshape(3, 3 * C, C).astype(jnp.bfloat16)

    WP = ((PAD_OFF + W + 1 + 7) // 8) * 8   # padded-scratch width (interior at col 16)

    out_nhwc = pl.pallas_call(
        resnet_block_kernel,
        out_shape=jax.ShapeDtypeStruct((B, H, W, C), jnp.float32),
        grid_spec=pltpu.PrefetchScalarGridSpec(
            num_scalar_prefetch=0,
            grid=(B,),
            in_specs=[
                pl.BlockSpec((None, H, W, C), lambda b: (b, 0, 0, 0)),   # x (1 sample)
                pl.BlockSpec((3, 3 * C, C), lambda b: (0, 0, 0)),        # w1 (bf16)
                pl.BlockSpec((3, 3 * C, C), lambda b: (0, 0, 0)),        # w2 (bf16)
            ],
            out_specs=pl.BlockSpec((None, H, W, C), lambda b: (b, 0, 0, 0)),
            scratch_shapes=[pltpu.VMEM((H + 2, WP, C), jnp.bfloat16)],
        ),
        compiler_params=pltpu.CompilerParams(
            dimension_semantics=("parallel",),            # B samples shard across TCs
            vmem_limit_bytes=_vmem_limit_bytes(H, W, C, WP),
        ),
    )(x, w1r, w2r)

    return jnp.transpose(out_nhwc, (0, 3, 1, 2))  # back to NCHW


# ---- pure-JAX f32 reference (for correctness check only) ----
def _reference_forward(x_nchw, w1, b1, w2, b2):
    x = jnp.transpose(x_nchw, (0, 2, 3, 1))  # NHWC

    def conv(h, w, b):
        hp = jnp.pad(h, ((0, 0), (1, 1), (1, 1), (0, 0)), mode="reflect")
        y = jax.lax.conv_general_dilated(
            hp, w, window_strides=(1, 1), padding="VALID",
            dimension_numbers=("NHWC", "HWIO", "NHWC"))
        return y + b

    def inorm(h):
        mean = jnp.mean(h, axis=(1, 2), keepdims=True)
        var = jnp.mean((h - mean) ** 2, axis=(1, 2), keepdims=True)
        return (h - mean) * jax.lax.rsqrt(var + EPS)

    h = jnp.maximum(inorm(conv(x, w1, b1)), 0.0)
    h = inorm(conv(h, w2, b2))
    out = x + h
    return jnp.transpose(out, (0, 3, 1, 2))


if __name__ == "__main__":
    B, C, H, W = 2, 4, 16, 16
    key = jax.random.PRNGKey(0)
    k1, k2, k3, k4, k5 = jax.random.split(key, 5)

    x = jax.random.normal(k1, (B, C, H, W), jnp.float32)
    # Deterministic synthetic parameters (Conv2d(dim, dim, 3) x2, biases).
    w1 = jax.random.normal(k2, (3, 3, C, C), jnp.float32) * 0.1
    b1 = jax.random.normal(k3, (C,), jnp.float32) * 0.1
    w2 = jax.random.normal(k4, (3, 3, C, C), jnp.float32) * 0.1
    b2 = jax.random.normal(k5, (C,), jnp.float32) * 0.1

    # Round conv inputs to bf16-representable values so the bf16-MXU kernel and
    # the f32 reference see identical conv operands; the remaining difference is
    # only the bf16 rounding of the intermediate activation before conv2 (and the
    # bias, which the reference keeps and InstanceNorm provably cancels).
    q = lambda a: a.astype(jnp.bfloat16).astype(jnp.float32)
    x, w1, w2 = q(x), q(w1), q(w2)

    out = resnet_block(x, w1, b1, w2, b2)
    jax.block_until_ready(out)

    ref = _reference_forward(x, w1, b1, w2, b2)
    assert out.shape == (B, C, H, W)
    # Tolerance covers bf16 rounding of the conv2 input (intermediate activation).
    assert jnp.allclose(out, ref, atol=3e-2, rtol=3e-2), "mismatch vs reference"

    print("KERNEL_OK")
</pallas_src>

<mosaic_0001>
module attributes {stable_mosaic.version = 11 : i64} {
  func.func @resnet_block_kernel(%arg0: i32, %arg1: memref<1x16x16x4xf32, #tpu.memory_space<vmem>>, %arg2: memref<3x12x4xbf16, #tpu.memory_space<vmem>>, %arg3: memref<3x12x4xbf16, #tpu.memory_space<vmem>>, %arg4: memref<1x16x16x4xf32, #tpu.memory_space<vmem>>, %arg5: memref<18x40x4xbf16, #tpu.memory_space<vmem>>) attributes {dimension_semantics = [#tpu.dimension_semantics<parallel>], iteration_bounds = array<i64: 2>, scalar_prefetch = 0 : i64, scratch_operands = 1 : i64, tpu.core_type = #tpu.core_type<tc>, window_params = [{transform_indices = @transform_0, window_bounds = array<i64: 1, 16, 16, 4>}, {pipeline_mode = #tpu.pipeline_mode<synchronous>, transform_indices = @transform_1, window_bounds = array<i64: 3, 12, 4>}, {pipeline_mode = #tpu.pipeline_mode<synchronous>, transform_indices = @transform_2, window_bounds = array<i64: 3, 12, 4>}, {transform_indices = @transform_3, window_bounds = array<i64: 1, 16, 16, 4>}]} {
    %c0 = arith.constant 0 : index
    %c0_0 = arith.constant 0 : index
    %c0_1 = arith.constant 0 : index
    %c0_2 = arith.constant 0 : index
    %0 = vector.load %arg1[%c0, %c0_0, %c0_1, %c0_2] : memref<1x16x16x4xf32, #tpu.memory_space<vmem>>, vector<1x16x16x4xf32>
    %1 = vector.shape_cast %0 : vector<1x16x16x4xf32> to vector<16x16x4xf32>
    %2 = arith.truncf %1 : vector<16x16x4xf32> to vector<16x16x4xbf16>
    %c1 = arith.constant 1 : index
    %c16 = arith.constant 16 : index
    %c0_3 = arith.constant 0 : index
    %3 = vector.load %arg5[%c1, %c16, %c0_3] : memref<18x40x4xbf16, #tpu.memory_space<vmem>>, vector<16x16x4xbf16>
    tpu.vector_store %arg5[%c1, %c16, %c0_3], %2 {strides = array<i32>} : memref<18x40x4xbf16, #tpu.memory_space<vmem>>, vector<16x16x4xbf16>,
    %4 = vector.extract_strided_slice %2 {offsets = [1, 0, 0], sizes = [1, 16, 4], strides = [1, 1, 1]} : vector<16x16x4xbf16> to vector<1x16x4xbf16>
    %c0_4 = arith.constant 0 : index
    %c16_5 = arith.constant 16 : index
    %c0_6 = arith.constant 0 : index
    %5 = vector.load %arg5[%c0_4, %c16_5, %c0_6] : memref<18x40x4xbf16, #tpu.memory_space<vmem>>, vector<1x16x4xbf16>
    tpu.vector_store %arg5[%c0_4, %c16_5, %c0_6], %4 {strides = array<i32>} : memref<18x40x4xbf16, #tpu.memory_space<vmem>>, vector<1x16x4xbf16>,
    %6 = vector.extract_strided_slice %2 {offsets = [14, 0, 0], sizes = [1, 16, 4], strides = [1, 1, 1]} : vector<16x16x4xbf16> to vector<1x16x4xbf16>
    %c17 = arith.constant 17 : index
    %c16_7 = arith.constant 16 : index
    %c0_8 = arith.constant 0 : index
    %7 = vector.load %arg5[%c17, %c16_7, %c0_8] : memref<18x40x4xbf16, #tpu.memory_space<vmem>>, vector<1x16x4xbf16>
    tpu.vector_store %arg5[%c17, %c16_7, %c0_8], %6 {strides = array<i32>} : memref<18x40x4xbf16, #tpu.memory_space<vmem>>, vector<1x16x4xbf16>,
    %c0_9 = arith.constant 0 : index
    %c17_10 = arith.constant 17 : index
    %c0_11 = arith.constant 0 : index
    %8 = vector.load %arg5[%c0_9, %c17_10, %c0_11] : memref<18x40x4xbf16, #tpu.memory_space<vmem>>, vector<18x1x4xbf16>
    %c0_12 = arith.constant 0 : index
    %c15 = arith.constant 15 : index
    %c0_13 = arith.constant 0 : index
    %9 = vector.load %arg5[%c0_12, %c15, %c0_13] : memref<18x40x4xbf16, #tpu.memory_space<vmem>>, vector<18x1x4xbf16>
    tpu.vector_store %arg5[%c0_12, %c15, %c0_13], %8 {strides = array<i32>} : memref<18x40x4xbf16, #tpu.memory_space<vmem>>, vector<18x1x4xbf16>,
    %c0_14 = arith.constant 0 : index
    %c30 = arith.constant 30 : index
    %c0_15 = arith.constant 0 : index
    %10 = vector.load %arg5[%c0_14, %c30, %c0_15] : memref<18x40x4xbf16, #tpu.memory_space<vmem>>, vector<18x1x4xbf16>
    %c0_16 = arith.constant 0 : index
    %c32 = arith.constant 32 : index
    %c0_17 = arith.constant 0 : index
    %11 = vector.load %arg5[%c0_16, %c32, %c0_17] : memref<18x40x4xbf16, #tpu.memory_space<vmem>>, vector<18x1x4xbf16>
    tpu.vector_store %arg5[%c0_16, %c32, %c0_17], %10 {strides = array<i32>} : memref<18x40x4xbf16, #tpu.memory_space<vmem>>, vector<18x1x4xbf16>,
    %c0_18 = arith.constant 0 : index
    %c15_19 = arith.constant 15 : index
    %c0_20 = arith.constant 0 : index
    %12 = vector.load %arg5[%c0_18, %c15_19, %c0_20] : memref<18x40x4xbf16, #tpu.memory_space<vmem>>, vector<18x16x4xbf16>
    %c0_21 = arith.constant 0 : index
    %c16_22 = arith.constant 16 : index
    %c0_23 = arith.constant 0 : index
    %13 = vector.load %arg5[%c0_21, %c16_22, %c0_23] : memref<18x40x4xbf16, #tpu.memory_space<vmem>>, vector<18x16x4xbf16>
    %c0_24 = arith.constant 0 : index
    %c17_25 = arith.constant 17 : index
    %c0_26 = arith.constant 0 : index
    %14 = vector.load %arg5[%c0_24, %c17_25, %c0_26] : memref<18x40x4xbf16, #tpu.memory_space<vmem>>, vector<18x16x4xbf16>
    %15 = vector.extract_strided_slice %12 {offsets = [0, 0, 0], sizes = [16, 16, 4], strides = [1, 1, 1]} : vector<18x16x4xbf16> to vector<16x16x4xbf16>
    %16 = vector.extract_strided_slice %13 {offsets = [0, 0, 0], sizes = [16, 16, 4], strides = [1, 1, 1]} : vector<18x16x4xbf16> to vector<16x16x4xbf16>
    %17 = vector.extract_strided_slice %14 {offsets = [0, 0, 0], sizes = [16, 16, 4], strides = [1, 1, 1]} : vector<18x16x4xbf16> to vector<16x16x4xbf16>
    %18 = tpu.concatenate %15, %16, %17 in 2 : vector<16x16x4xbf16>, vector<16x16x4xbf16>, vector<16x16x4xbf16> -> vector<16x16x12xbf16>
    %19 = vector.shape_cast %18 : vector<16x16x12xbf16> to vector<256x12xbf16>
    %c0_27 = arith.constant 0 : index
    %c0_28 = arith.constant 0 : index
    %c0_29 = arith.constant 0 : index
    %20 = vector.load %arg2[%c0_27, %c0_28, %c0_29] : memref<3x12x4xbf16, #tpu.memory_space<vmem>>, vector<1x12x4xbf16>
    %21 = vector.shape_cast %20 : vector<1x12x4xbf16> to vector<12x4xbf16>
    %cst = arith.constant dense<0.000000e+00> : vector<256x4xf32>
    %22 = tpu.matmul %19, %21, %cst {dimension_numbers = #tpu.dot_dimension_numbers<[1], [0], [0], [1], [0, 0, 1, 1], [], []>} : vector<256x12xbf16>, vector<12x4xbf16>, vector<256x4xf32> -> vector<256x4xf32>
    %23 = vector.extract_strided_slice %12 {offsets = [1, 0, 0], sizes = [16, 16, 4], strides = [1, 1, 1]} : vector<18x16x4xbf16> to vector<16x16x4xbf16>
    %24 = vector.extract_strided_slice %13 {offsets = [1, 0, 0], sizes = [16, 16, 4], strides = [1, 1, 1]} : vector<18x16x4xbf16> to vector<16x16x4xbf16>
    %25 = vector.extract_strided_slice %14 {offsets = [1, 0, 0], sizes = [16, 16, 4], strides = [1, 1, 1]} : vector<18x16x4xbf16> to vector<16x16x4xbf16>
    %26 = tpu.concatenate %23, %24, %25 in 2 : vector<16x16x4xbf16>, vector<16x16x4xbf16>, vector<16x16x4xbf16> -> vector<16x16x12xbf16>
    %27 = vector.shape_cast %26 : vector<16x16x12xbf16> to vector<256x12xbf16>
    %c1_30 = arith.constant 1 : index
    %c0_31 = arith.constant 0 : index
    %c0_32 = arith.constant 0 : index
    %28 = vector.load %arg2[%c1_30, %c0_31, %c0_32] : memref<3x12x4xbf16, #tpu.memory_space<vmem>>, vector<1x12x4xbf16>
    %29 = vector.shape_cast %28 : vector<1x12x4xbf16> to vector<12x4xbf16>
    %cst_33 = arith.constant dense<0.000000e+00> : vector<256x4xf32>
    %30 = tpu.matmul %27, %29, %cst_33 {dimension_numbers = #tpu.dot_dimension_numbers<[1], [0], [0], [1], [0, 0, 1, 1], [], []>} : vector<256x12xbf16>, vector<12x4xbf16>, vector<256x4xf32> -> vector<256x4xf32>
    %31 = arith.addf %22, %30 : vector<256x4xf32>
    %32 = vector.extract_strided_slice %12 {offsets = [2, 0, 0], sizes = [16, 16, 4], strides = [1, 1, 1]} : vector<18x16x4xbf16> to vector<16x16x4xbf16>
    %33 = vector.extract_strided_slice %13 {offsets = [2, 0, 0], sizes = [16, 16, 4], strides = [1, 1, 1]} : vector<18x16x4xbf16> to vector<16x16x4xbf16>
    %34 = vector.extract_strided_slice %14 {offsets = [2, 0, 0], sizes = [16, 16, 4], strides = [1, 1, 1]} : vector<18x16x4xbf16> to vector<16x16x4xbf16>
    %35 = tpu.concatenate %32, %33, %34 in 2 : vector<16x16x4xbf16>, vector<16x16x4xbf16>, vector<16x16x4xbf16> -> vector<16x16x12xbf16>
    %36 = vector.shape_cast %35 : vector<16x16x12xbf16> to vector<256x12xbf16>
    %c2 = arith.constant 2 : index
    %c0_34 = arith.constant 0 : index
    %c0_35 = arith.constant 0 : index
    %37 = vector.load %arg2[%c2, %c0_34, %c0_35] : memref<3x12x4xbf16, #tpu.memory_space<vmem>>, vector<1x12x4xbf16>
    %38 = vector.shape_cast %37 : vector<1x12x4xbf16> to vector<12x4xbf16>
    %cst_36 = arith.constant dense<0.000000e+00> : vector<256x4xf32>
    %39 = tpu.matmul %36, %38, %cst_36 {dimension_numbers = #tpu.dot_dimension_numbers<[1], [0], [0], [1], [0, 0, 1, 1], [], []>} : vector<256x12xbf16>, vector<12x4xbf16>, vector<256x4xf32> -> vector<256x4xf32>
    %40 = arith.addf %31, %39 : vector<256x4xf32>
    %cst_37 = arith.constant dense<0.000000e+00> : vector<4xf32>
    %41 = vector.multi_reduction <add>, %40, %cst_37 [0] : vector<256x4xf32> to vector<4xf32>
    %42 = vector.shape_cast %41 : vector<4xf32> to vector<1x4xf32>
    %cst_38 = arith.constant 2.560000e+02 : f32
    %43 = vector.broadcast %cst_38 : f32 to vector<1x4xf32>
    %44 = arith.divf %42, %43 : vector<1x4xf32>
    %45 = vector.broadcast %44 : vector<1x4xf32> to vector<256x4xf32>
    %46 = arith.subf %40, %45 : vector<256x4xf32>
    %47 = arith.mulf %46, %46 : vector<256x4xf32>
    %cst_39 = arith.constant dense<0.000000e+00> : vector<4xf32>
    %48 = vector.multi_reduction <add>, %47, %cst_39 [0] : vector<256x4xf32> to vector<4xf32>
    %49 = vector.shape_cast %48 : vector<4xf32> to vector<1x4xf32>
    %cst_40 = arith.constant 2.560000e+02 : f32
    %50 = vector.broadcast %cst_40 : f32 to vector<1x4xf32>
    %51 = arith.divf %49, %50 : vector<1x4xf32>
    %cst_41 = arith.constant 9.99999974E-6 : f32
    %52 = vector.broadcast %cst_41 : f32 to vector<1x4xf32>
    %53 = arith.addf %51, %52 : vector<1x4xf32>
    %54 = math.rsqrt %53 : vector<1x4xf32>
    %55 = vector.broadcast %54 : vector<1x4xf32> to vector<256x4xf32>
    %56 = arith.mulf %46, %55 : vector<256x4xf32>
    %cst_42 = arith.constant 0.000000e+00 : f32
    %57 = vector.broadcast %cst_42 : f32 to vector<256x4xf32>
    %58 = arith.maximumf %56, %57 : vector<256x4xf32>
    %59 = vector.shape_cast %58 : vector<256x4xf32> to vector<16x16x4xf32>
    %60 = arith.truncf %59 : vector<16x16x4xf32> to vector<16x16x4xbf16>
    %c1_43 = arith.constant 1 : index
    %c16_44 = arith.constant 16 : index
    %c0_45 = arith.constant 0 : index
    %61 = vector.load %arg5[%c1_43, %c16_44, %c0_45] : memref<18x40x4xbf16, #tpu.memory_space<vmem>>, vector<16x16x4xbf16>
    tpu.vector_store %arg5[%c1_43, %c16_44, %c0_45], %60 {strides = array<i32>} : memref<18x40x4xbf16, #tpu.memory_space<vmem>>, vector<16x16x4xbf16>,
    %62 = vector.extract_strided_slice %60 {offsets = [1, 0, 0], sizes = [1, 16, 4], strides = [1, 1, 1]} : vector<16x16x4xbf16> to vector<1x16x4xbf16>
    %c0_46 = arith.constant 0 : index
    %c16_47 = arith.constant 16 : index
    %c0_48 = arith.constant 0 : index
    %63 = vector.load %arg5[%c0_46, %c16_47, %c0_48] : memref<18x40x4xbf16, #tpu.memory_space<vmem>>, vector<1x16x4xbf16>
    tpu.vector_store %arg5[%c0_46, %c16_47, %c0_48], %62 {strides = array<i32>} : memref<18x40x4xbf16, #tpu.memory_space<vmem>>, vector<1x16x4xbf16>,
    %64 = vector.extract_strided_slice %60 {offsets = [14, 0, 0], sizes = [1, 16, 4], strides = [1, 1, 1]} : vector<16x16x4xbf16> to vector<1x16x4xbf16>
    %c17_49 = arith.constant 17 : index
    %c16_50 = arith.constant 16 : index
    %c0_51 = arith.constant 0 : index
    %65 = vector.load %arg5[%c17_49, %c16_50, %c0_51] : memref<18x40x4xbf16, #tpu.memory_space<vmem>>, vector<1x16x4xbf16>
    tpu.vector_store %arg5[%c17_49, %c16_50, %c0_51], %64 {strides = array<i32>} : memref<18x40x4xbf16, #tpu.memory_space<vmem>>, vector<1x16x4xbf16>,
    %c0_52 = arith.constant 0 : index
    %c17_53 = arith.constant 17 : index
    %c0_54 = arith.constant 0 : index
    %66 = vector.load %arg5[%c0_52, %c17_53, %c0_54] : memref<18x40x4xbf16, #tpu.memory_space<vmem>>, vector<18x1x4xbf16>
    %c0_55 = arith.constant 0 : index
    %c15_56 = arith.constant 15 : index
    %c0_57 = arith.constant 0 : index
    %67 = vector.load %arg5[%c0_55, %c15_56, %c0_57] : memref<18x40x4xbf16, #tpu.memory_space<vmem>>, vector<18x1x4xbf16>
    tpu.vector_store %arg5[%c0_55, %c15_56, %c0_57], %66 {strides = array<i32>} : memref<18x40x4xbf16, #tpu.memory_space<vmem>>, vector<18x1x4xbf16>,
    %c0_58 = arith.constant 0 : index
    %c30_59 = arith.constant 30 : index
    %c0_60 = arith.constant 0 : index
    %68 = vector.load %arg5[%c0_58, %c30_59, %c0_60] : memref<18x40x4xbf16, #tpu.memory_space<vmem>>, vector<18x1x4xbf16>
    %c0_61 = arith.constant 0 : index
    %c32_62 = arith.constant 32 : index
    %c0_63 = arith.constant 0 : index
    %69 = vector.load %arg5[%c0_61, %c32_62, %c0_63] : memref<18x40x4xbf16, #tpu.memory_space<vmem>>, vector<18x1x4xbf16>
    tpu.vector_store %arg5[%c0_61, %c32_62, %c0_63], %68 {strides = array<i32>} : memref<18x40x4xbf16, #tpu.memory_space<vmem>>, vector<18x1x4xbf16>,
    %c0_64 = arith.constant 0 : index
    %c15_65 = arith.constant 15 : index
    %c0_66 = arith.constant 0 : index
    %70 = vector.load %arg5[%c0_64, %c15_65, %c0_66] : memref<18x40x4xbf16, #tpu.memory_space<vmem>>, vector<18x16x4xbf16>
    %c0_67 = arith.constant 0 : index
    %c16_68 = arith.constant 16 : index
    %c0_69 = arith.constant 0 : index
    %71 = vector.load %arg5[%c0_67, %c16_68, %c0_69] : memref<18x40x4xbf16, #tpu.memory_space<vmem>>, vector<18x16x4xbf16>
    %c0_70 = arith.constant 0 : index
    %c17_71 = arith.constant 17 : index
    %c0_72 = arith.constant 0 : index
    %72 = vector.load %arg5[%c0_70, %c17_71, %c0_72] : memref<18x40x4xbf16, #tpu.memory_space<vmem>>, vector<18x16x4xbf16>
    %73 = vector.extract_strided_slice %70 {offsets = [0, 0, 0], sizes = [16, 16, 4], strides = [1, 1, 1]} : vector<18x16x4xbf16> to vector<16x16x4xbf16>
    %74 = vector.extract_strided_slice %71 {offsets = [0, 0, 0], sizes = [16, 16, 4], strides = [1, 1, 1]} : vector<18x16x4xbf16> to vector<16x16x4xbf16>
    %75 = vector.extract_strided_slice %72 {offsets = [0, 0, 0], sizes = [16, 16, 4], strides = [1, 1, 1]} : vector<18x16x4xbf16> to vector<16x16x4xbf16>
    %76 = tpu.concatenate %73, %74, %75 in 2 : vector<16x16x4xbf16>, vector<16x16x4xbf16>, vector<16x16x4xbf16> -> vector<16x16x12xbf16>
    %77 = vector.shape_cast %76 : vector<16x16x12xbf16> to vector<256x12xbf16>
    %c0_73 = arith.constant 0 : index
    %c0_74 = arith.constant 0 : index
    %c0_75 = arith.constant 0 : index
    %78 = vector.load %arg3[%c0_73, %c0_74, %c0_75] : memref<3x12x4xbf16, #tpu.memory_space<vmem>>, vector<1x12x4xbf16>
    %79 = vector.shape_cast %78 : vector<1x12x4xbf16> to vector<12x4xbf16>
    %cst_76 = arith.constant dense<0.000000e+00> : vector<256x4xf32>
    %80 = tpu.matmul %77, %79, %cst_76 {dimension_numbers = #tpu.dot_dimension_numbers<[1], [0], [0], [1], [0, 0, 1, 1], [], []>} : vector<256x12xbf16>, vector<12x4xbf16>, vector<256x4xf32> -> vector<256x4xf32>
    %81 = vector.extract_strided_slice %70 {offsets = [1, 0, 0], sizes = [16, 16, 4], strides = [1, 1, 1]} : vector<18x16x4xbf16> to vector<16x16x4xbf16>
    %82 = vector.extract_strided_slice %71 {offsets = [1, 0, 0], sizes = [16, 16, 4], strides = [1, 1, 1]} : vector<18x16x4xbf16> to vector<16x16x4xbf16>
    %83 = vector.extract_strided_slice %72 {offsets = [1, 0, 0], sizes = [16, 16, 4], strides = [1, 1, 1]} : vector<18x16x4xbf16> to vector<16x16x4xbf16>
    %84 = tpu.concatenate %81, %82, %83 in 2 : vector<16x16x4xbf16>, vector<16x16x4xbf16>, vector<16x16x4xbf16> -> vector<16x16x12xbf16>
    %85 = vector.shape_cast %84 : vector<16x16x12xbf16> to vector<256x12xbf16>
    %c1_77 = arith.constant 1 : index
    %c0_78 = arith.constant 0 : index
    %c0_79 = arith.constant 0 : index
    %86 = vector.load %arg3[%c1_77, %c0_78, %c0_79] : memref<3x12x4xbf16, #tpu.memory_space<vmem>>, vector<1x12x4xbf16>
    %87 = vector.shape_cast %86 : vector<1x12x4xbf16> to vector<12x4xbf16>
    %cst_80 = arith.constant dense<0.000000e+00> : vector<256x4xf32>
    %88 = tpu.matmul %85, %87, %cst_80 {dimension_numbers = #tpu.dot_dimension_numbers<[1], [0], [0], [1], [0, 0, 1, 1], [], []>} : vector<256x12xbf16>, vector<12x4xbf16>, vector<256x4xf32> -> vector<256x4xf32>
    %89 = arith.addf %80, %88 : vector<256x4xf32>
    %90 = vector.extract_strided_slice %70 {offsets = [2, 0, 0], sizes = [16, 16, 4], strides = [1, 1, 1]} : vector<18x16x4xbf16> to vector<16x16x4xbf16>
    %91 = vector.extract_strided_slice %71 {offsets = [2, 0, 0], sizes = [16, 16, 4], strides = [1, 1, 1]} : vector<18x16x4xbf16> to vector<16x16x4xbf16>
    %92 = vector.extract_strided_slice %72 {offsets = [2, 0, 0], sizes = [16, 16, 4], strides = [1, 1, 1]} : vector<18x16x4xbf16> to vector<16x16x4xbf16>
    %93 = tpu.concatenate %90, %91, %92 in 2 : vector<16x16x4xbf16>, vector<16x16x4xbf16>, vector<16x16x4xbf16> -> vector<16x16x12xbf16>
    %94 = vector.shape_cast %93 : vector<16x16x12xbf16> to vector<256x12xbf16>
    %c2_81 = arith.constant 2 : index
    %c0_82 = arith.constant 0 : index
    %c0_83 = arith.constant 0 : index
    %95 = vector.load %arg3[%c2_81, %c0_82, %c0_83] : memref<3x12x4xbf16, #tpu.memory_space<vmem>>, vector<1x12x4xbf16>
    %96 = vector.shape_cast %95 : vector<1x12x4xbf16> to vector<12x4xbf16>
    %cst_84 = arith.constant dense<0.000000e+00> : vector<256x4xf32>
    %97 = tpu.matmul %94, %96, %cst_84 {dimension_numbers = #tpu.dot_dimension_numbers<[1], [0], [0], [1], [0, 0, 1, 1], [], []>} : vector<256x12xbf16>, vector<12x4xbf16>, vector<256x4xf32> -> vector<256x4xf32>
    %98 = arith.addf %89, %97 : vector<256x4xf32>
    %cst_85 = arith.constant dense<0.000000e+00> : vector<4xf32>
    %99 = vector.multi_reduction <add>, %98, %cst_85 [0] : vector<256x4xf32> to vector<4xf32>
    %100 = vector.shape_cast %99 : vector<4xf32> to vector<1x4xf32>
    %cst_86 = arith.constant 2.560000e+02 : f32
    %101 = vector.broadcast %cst_86 : f32 to vector<1x4xf32>
    %102 = arith.divf %100, %101 : vector<1x4xf32>
    %103 = vector.broadcast %102 : vector<1x4xf32> to vector<256x4xf32>
    %104 = arith.subf %98, %103 : vector<256x4xf32>
    %105 = arith.mulf %104, %104 : vector<256x4xf32>
    %cst_87 = arith.constant dense<0.000000e+00> : vector<4xf32>
    %106 = vector.multi_reduction <add>, %105, %cst_87 [0] : vector<256x4xf32> to vector<4xf32>
    %107 = vector.shape_cast %106 : vector<4xf32> to vector<1x4xf32>
    %cst_88 = arith.constant 2.560000e+02 : f32
    %108 = vector.broadcast %cst_88 : f32 to vector<1x4xf32>
    %109 = arith.divf %107, %108 : vector<1x4xf32>
    %cst_89 = arith.constant 9.99999974E-6 : f32
    %110 = vector.broadcast %cst_89 : f32 to vector<1x4xf32>
    %111 = arith.addf %109, %110 : vector<1x4xf32>
    %112 = math.rsqrt %111 : vector<1x4xf32>
    %113 = vector.broadcast %112 : vector<1x4xf32> to vector<256x4xf32>
    %114 = arith.mulf %104, %113 : vector<256x4xf32>
    %c0_90 = arith.constant 0 : index
    %c0_91 = arith.constant 0 : index
    %c0_92 = arith.constant 0 : index
    %c0_93 = arith.constant 0 : index
    %115 = vector.load %arg1[%c0_90, %c0_91, %c0_92, %c0_93] : memref<1x16x16x4xf32, #tpu.memory_space<vmem>>, vector<1x16x16x4xf32>
    %116 = vector.shape_cast %115 : vector<1x16x16x4xf32> to vector<16x16x4xf32>
    %117 = vector.shape_cast %114 : vector<256x4xf32> to vector<16x16x4xf32>
    %118 = arith.addf %116, %117 : vector<16x16x4xf32>
    %c0_94 = arith.constant 0 : index
    %c0_95 = arith.constant 0 : index
    %c0_96 = arith.constant 0 : index
    %c0_97 = arith.constant 0 : index
    %119 = vector.load %arg4[%c0_94, %c0_95, %c0_96, %c0_97] : memref<1x16x16x4xf32, #tpu.memory_space<vmem>>, vector<1x16x16x4xf32>
    %120 = vector.shape_cast %119 : vector<1x16x16x4xf32> to vector<16x16x4xf32>
    %121 = vector.shape_cast %118 : vector<16x16x4xf32> to vector<1x16x16x4xf32>
    tpu.vector_store %arg4[%c0_94, %c0_95, %c0_96, %c0_97], %121 {strides = array<i32>} : memref<1x16x16x4xf32, #tpu.memory_space<vmem>>, vector<1x16x16x4xf32>,
    return
  }
  func.func @transform_0(%arg0: i32) -> (i32, i32, i32, i32) {
    %c0_i32 = arith.constant 0 : i32
    %c0_i32_0 = arith.constant 0 : i32
    %c0_i32_1 = arith.constant 0 : i32
    %c0_i32_2 = arith.constant 0 : i32
    return %arg0, %c0_i32, %c0_i32_0, %c0_i32_1 : i32, i32, i32, i32
  }
  func.func @transform_1(%arg0: i32) -> (i32, i32, i32) {
    %c0_i32 = arith.constant 0 : i32
    %c0_i32_0 = arith.constant 0 : i32
    %c0_i32_1 = arith.constant 0 : i32
    %c0_i32_2 = arith.constant 0 : i32
    return %c0_i32, %c0_i32_0, %c0_i32_1 : i32, i32, i32
  }
  func.func @transform_2(%arg0: i32) -> (i32, i32, i32) {
    %c0_i32 = arith.constant 0 : i32
    %c0_i32_0 = arith.constant 0 : i32
    %c0_i32_1 = arith.constant 0 : i32
    %c0_i32_2 = arith.constant 0 : i32
    return %c0_i32, %c0_i32_0, %c0_i32_1 : i32, i32, i32
  }
  func.func @transform_3(%arg0: i32) -> (i32, i32, i32, i32) {
    %c0_i32 = arith.constant 0 : i32
    %c0_i32_0 = arith.constant 0 : i32
    %c0_i32_1 = arith.constant 0 : i32
    %c0_i32_2 = arith.constant 0 : i32
    return %arg0, %c0_i32, %c0_i32_0, %c0_i32_1 : i32, i32, i32, i32
  }
}

</mosaic_0001>

<bundles_post_ra>
// kernel: tpu_custom_call.1
= control target key start
LH: loop header
LB: loop body
LE: loop exit
PB: predicated region body
PF: predicated region fallthrough
CT: control target
= control target key end

     0   :  { %s6023_s12 = smov 0   ;;  %s8470_s0 = inlined_call_operand.vmem [shape: f32[2,16,16,4], index: 0, kind: input, shape index: {}]   ;;  %s8471_s1 = inlined_call_operand.vmem [shape: bf16[3,12,4], index: 1, kind: input, shape index: {}]   ;;  %s8472_s2 = inlined_call_operand.vmem [shape: bf16[3,12,4], index: 2, kind: input, shape index: {}]   ;;  %s8473_s3 = inlined_call_operand.vmem [shape: f32[2,16,16,4], index: 3, kind: output, shape index: {}]  }
   0x1 LB: > { %s5001_s13 = sadd.s32 4294967295, %s5999_s12   ;;  %p5005_p0 = scmp.ge.s32.totalorder %s5999_s12, 1  ;;  %s5999_s12 = sphi %s6023_s12, %s13_s12  }
   0x2   : > { %p137_p1 = scmp.lt.s32.totalorder %s5999_s12, 3 }
   0x4   : > { %p138_p2 = pnand %p5005_p0, %p137_p1 }
   0x6   : > { %141 = sbr.rel (%p138_p2) target bundleno = 1478 (0x5c6), region = 32 }
   0xd   : > { %p161_p3 = scmp.lt.s32.totalorder %s5001_s13, 1  ;;  %vm333_vm0 = vcmask 27648   ;;  %vm590_vm1 = vcmask 24576   ;;  %vm591_vm2 = vsmask.f32 256  ;;  %s6001_s18 = smov 8  }
   0xe   : > { %v596_v63 = vld [vmem:[#allocation2 + $0x24] sm:$0x1]  ;;  %vm6116_vm3 = vmand %vm590_vm1, %vm591_vm2  ;;  %s6002_s19 = smov 4   ;;  %vm1071_vm4 = vcmask 1042432   ;;  %vm444_vm5 = vsmask.f32 7950 }
   0xf   : > { %s8575_s13 = smov (!%p161_p3, %s5001_s13), 1  ;;  %vm443_vm6 = vcmask 27651   ;;  %vm1683_vm8 = vcmask 1045504   ;;  %vm1184_vm9 = vcmask 31744   ;;  %vm1265_vm10 = vcmask 64512  }
  0x10   : > { %s5366_s14 = sshll.u32 %s8575_s13, 8  ;;  %vm6277_vm7 = vmand %vm443_vm6, %vm444_vm5  ;;  %vm1634_vm11 = vcmask 97280   ;;  %vm1330_vm12 = vsmask.f32 4352 }
  0x11   : > { %s6039_s17 = scalar_lea.vmem %s8470_s0, %s5366_s14  ;;  %s8351_s7 = scalar_lea.vmem %s8473_s3, %s5366_s14 }
  0x12   : > { %v174_v0 = vld [vmem:[%s6039_s17 + $0x10] sm:$0xff]  ;;  %v175_v1 = vld [vmem:[%s6039_s17 + $0x18] sm:$0xff]  ;;  %v172_v2 = vld [vmem:[%s6039_s17] sm:$0xff] }
  0x13   : > { %v5370_v3 = vpack.c.bf16 %v174_v0, %v174_v0  ;;  %v5371_v4 = vpack.c.bf16 %v175_v1, %v175_v1  ;;  %v173_v5 = vld [vmem:[%s6039_s17 + $0x8] sm:$0xff]  ;;  %v5368_v6 = vpack.c.bf16 %v172_v2, %v172_v2  ;;  %v176_v7 = vld [vmem:[%s6039_s17 + $0x20] sm:$0xff]  ;;  %v178_v12 = vld [vmem:[%s6039_s17 + $0x30] sm:$0xff] }
  0x14   : > { %v177_v8 = vld [vmem:[%s6039_s17 + $0x28] sm:$0xff]  ;;  %v5369_v9 = vpack.c.bf16 %v173_v5, %v173_v5  ;;  %v5372_v10 = vpack.c.bf16 %v176_v7, %v176_v7  ;;  %v179_v13 = vld [vmem:[%s6039_s17 + $0x38] sm:$0xff]  ;;  %v182_v14 = vld [vmem:[%s6039_s17 + $0x50] sm:$0xff]  ;;  %v5374_v15 = vpack.c.bf16 %v178_v12, %v178_v12 }
  0x15   : > { %v5373_v11 = vpack.c.bf16 %v177_v8, %v177_v8  ;;  %336 = vst.msk [vmem:[#allocation2 + $0x30] sm:$0xf] %vm333_vm0, %v5370_v3  ;;  %337 = vst.msk [vmem:[#allocation2 + $0x34] sm:$0xf] %vm333_vm0, %v5371_v4  ;;  %v5375_v16 = vpack.c.bf16 %v179_v13, %v179_v13  ;;  %v183_v17 = vld [vmem:[%s6039_s17 + $0x58] sm:$0xff]  ;;  %v5378_v18 = vpack.c.bf16 %v182_v14, %v182_v14  ;;  %v180_v19 = vld [vmem:[%s6039_s17 + $0x40] sm:$0xff] }
  0x16   : > { %366 = vst.msk [vmem:[#allocation2 + $0x8] sm:$0xf] %vm333_vm0, %v5370_v3  ;;  %367 = vst.msk [vmem:[#allocation2 + $0xc] sm:$0xf] %vm333_vm0, %v5371_v4  ;;  %v181_v20 = vld [vmem:[%s6039_s17 + $0x48] sm:$0xff]  ;;  %v5379_v21 = vpack.c.bf16 %v183_v17, %v183_v17  ;;  %v5376_v22 = vpack.c.bf16 %v180_v19, %v180_v19  ;;  %v186_v24 = vld [vmem:[%s6039_s17 + $0x70] sm:$0xff] }
  0x17   : > { %334 = vst.msk [vmem:[#allocation2 + $0x1c] sm:$0xf] %vm333_vm0, %v5368_v6  ;;  %335 = vst.msk [vmem:[#allocation2 + $0x20] sm:$0xf] %vm333_vm0, %v5369_v9  ;;  %v5377_v23 = vpack.c.bf16 %v181_v20, %v181_v20  ;;  %v187_v25 = vld [vmem:[%s6039_s17 + $0x78] sm:$0xff]  ;;  %v184_v26 = vld [vmem:[%s6039_s17 + $0x60] sm:$0xff]  ;;  %v5382_v27 = vpack.c.bf16 %v186_v24, %v186_v24 }
  0x18   : > { %338 = vst.msk [vmem:[#allocation2 + $0x44] sm:$0xf] %vm333_vm0, %v5372_v10  ;;  %339 = vst.msk [vmem:[#allocation2 + $0x48] sm:$0xf] %vm333_vm0, %v5373_v11  ;;  %v5383_v28 = vpack.c.bf16 %v187_v25, %v187_v25  ;;  %v185_v29 = vld [vmem:[%s6039_s17 + $0x68] sm:$0xff]  ;;  %v5380_v30 = vpack.c.bf16 %v184_v26, %v184_v26  ;;  %v190_v31 = vld [vmem:[%s6039_s17 + $0x90] sm:$0xff] }
  0x19   : > { %340 = vst.msk [vmem:[#allocation2 + $0x58] sm:$0xf] %vm333_vm0, %v5374_v15  ;;  %341 = vst.msk [vmem:[#allocation2 + $0x5c] sm:$0xf] %vm333_vm0, %v5375_v16  ;;  %v191_v32 = vld [vmem:[%s6039_s17 + $0x98] sm:$0xff]  ;;  %v5381_v33 = vpack.c.bf16 %v185_v29, %v185_v29  ;;  %v5386_v34 = vpack.c.bf16 %v190_v31, %v190_v31  ;;  %v188_v36 = vld [vmem:[%s6039_s17 + $0x80] sm:$0xff] }
  0x1a   : > { %344 = vst.msk [vmem:[#allocation2 + $0x80] sm:$0xf] %vm333_vm0, %v5378_v18  ;;  %345 = vst.msk [vmem:[#allocation2 + $0x84] sm:$0xf] %vm333_vm0, %v5379_v21  ;;  %v5387_v35 = vpack.c.bf16 %v191_v32, %v191_v32  ;;  %v189_v37 = vld [vmem:[%s6039_s17 + $0x88] sm:$0xff]  ;;  %v194_v38 = vld [vmem:[%s6039_s17 + $0xb0] sm:$0xff]  ;;  %v5384_v39 = vpack.c.bf16 %v188_v36, %v188_v36 }
  0x1b   : > { %342 = vst.msk [vmem:[#allocation2 + $0x6c] sm:$0xf] %vm333_vm0, %v5376_v22  ;;  %343 = vst.msk [vmem:[#allocation2 + $0x70] sm:$0xf] %vm333_vm0, %v5377_v23  ;;  %v5385_v40 = vpack.c.bf16 %v189_v37, %v189_v37  ;;  %v195_v41 = vld [vmem:[%s6039_s17 + $0xb8] sm:$0xff]  ;;  %v5390_v42 = vpack.c.bf16 %v194_v38, %v194_v38  ;;  %v192_v43 = vld [vmem:[%s6039_s17 + $0xa0] sm:$0xff] }
  0x1c   : > { %348 = vst.msk [vmem:[#allocation2 + $0xa8] sm:$0xf] %vm333_vm0, %v5382_v27  ;;  %349 = vst.msk [vmem:[#allocation2 + $0xac] sm:$0xf] %vm333_vm0, %v5383_v28  ;;  %v193_v44 = vld [vmem:[%s6039_s17 + $0xa8] sm:$0xff]  ;;  %v5391_v45 = vpack.c.bf16 %v195_v41, %v195_v41  ;;  %v5388_v46 = vpack.c.bf16 %v192_v43, %v192_v43  ;;  %v198_v48 = vld [vmem:[%s6039_s17 + $0xd0] sm:$0xff] }
  0x1d   : > { %346 = vst.msk [vmem:[#allocation2 + $0x94] sm:$0xf] %vm333_vm0, %v5380_v30  ;;  %347 = vst.msk [vmem:[#allocation2 + $0x98] sm:$0xf] %vm333_vm0, %v5381_v33  ;;  %v5389_v47 = vpack.c.bf16 %v193_v44, %v193_v44  ;;  %v199_v49 = vld [vmem:[%s6039_s17 + $0xd8] sm:$0xff]  ;;  %v196_v50 = vld [vmem:[%s6039_s17 + $0xc0] sm:$0xff]  ;;  %v5394_v51 = vpack.c.bf16 %v198_v48, %v198_v48 }
  0x1e   : > { %352 = vst.msk [vmem:[#allocation2 + $0xd0] sm:$0xf] %vm333_vm0, %v5386_v34  ;;  %353 = vst.msk [vmem:[#allocation2 + $0xd4] sm:$0xf] %vm333_vm0, %v5387_v35  ;;  %v5395_v52 = vpack.c.bf16 %v199_v49, %v199_v49  ;;  %v197_v53 = vld [vmem:[%s6039_s17 + $0xc8] sm:$0xff]  ;;  %v5392_v54 = vpack.c.bf16 %v196_v50, %v196_v50 }
  0x1f   : > { %350 = vst.msk [vmem:[#allocation2 + $0xbc] sm:$0xf] %vm333_vm0, %v5384_v39  ;;  %351 = vst.msk [vmem:[#allocation2 + $0xc0] sm:$0xf] %vm333_vm0, %v5385_v40  ;;  %v654_v55 = vld [vmem:[#allocation2 + $0x30] sm:$0xf]  ;;  %v5393_v58 = vpack.c.bf16 %v197_v53, %v197_v53 }
  0x20   : > { %356 = vst.msk [vmem:[#allocation2 + $0xf8] sm:$0xf] %vm333_vm0, %v5390_v42  ;;  %v655_v56 = vld [vmem:[#allocation2 + $0x34] sm:$0xf]  ;;  %v651_v57 = vld [vmem:[#allocation2 + $0x1c] sm:$0xf] }
  0x21   : > { %357 = vst.msk [vmem:[#allocation2 + $0xfc] sm:$0xf] %vm333_vm0, %v5391_v45  ;;  %354 = vst.msk [vmem:[#allocation2 + $0xe4] sm:$0xf] %vm333_vm0, %v5388_v46  ;;  %v6095_v59 = vcombine.low %v654_v55, %v655_v56  ;;  %v6097_v60 = vld [vmem:[#allocation2 + $0x20] sm:$0xf] }
  0x22   : > { %355 = vst.msk [vmem:[#allocation2 + $0xe8] sm:$0xf] %vm333_vm0, %v5389_v47  ;;  %v657_v61 = vld [vmem:[#allocation2 + $0x44] sm:$0xf]  ;;  %v658_v62 = vld [vmem:[#allocation2 + $0x48] sm:$0xf]  ;;  %v6103_v0 = vcombine.low %v651_v57, %v6097_v60 }
  0x23   : > { %360 = vst.msk [vmem:[#allocation2 + $0x120] sm:$0xf] %vm333_vm0, %v5394_v51  ;;  %361 = vst.msk [vmem:[#allocation2 + $0x124] sm:$0xf] %vm333_vm0, %v5395_v52  ;;  %v6105_v1 = vcombine.low %v657_v61, %v658_v62  ;;  %v660_v2 = vld [vmem:[#allocation2 + $0x58] sm:$0xf] }
  0x24   : > { %358 = vst.msk [vmem:[#allocation2 + $0x10c] sm:$0xf] %vm333_vm0, %v5392_v54  ;;  %v6107_v3 = vld [vmem:[#allocation2 + $0x5c] sm:$0xf]  ;;  %v666_v4 = vld [vmem:[#allocation2 + $0x80] sm:$0xf] }
  0x25   : > { %359 = vst.msk [vmem:[#allocation2 + $0x110] sm:$0xf] %vm333_vm0, %v5393_v58  ;;  %v1078_v5 = vrot.slane %v6095_v59, 5  ;;  %v6112_v6 = vcombine.low %v660_v2, %v6107_v3  ;;  %v667_v7 = vld [vmem:[#allocation2 + $0x84] sm:$0xf]  ;;  %v1075_v10 = vrot.slane %v6103_v0, 5 }
  0x26   : > { %v501_v8 = vld [vmem:[#allocation2 + $0x20] sm:$0x8]  ;;  %v6121_v11 = vcombine.low %v666_v4, %v667_v7  ;;  %v502_v13 = vld [vmem:[#allocation2 + $0x34] sm:$0x8]  ;;  %v599_v14 = vld [vmem:[#allocation2 + $0x38] sm:$0x1] }
  0x27   : > { %v5043_v12 = vrot.slane %v501_v8, 11  ;;  %v880_v15 = vshrl.u32 %v6095_v59, 16  ;;  %1128 = vrot.lane.b32.xlu0 %v1078_v5, %s6001_s18  ;;  %v1081_v16 = vrot.slane %v6105_v1, 5  ;;  %v896_v17 = vshrl.u32 %v6112_v6, 16  ;;  %v503_v20 = vld [vmem:[#allocation2 + $0x48] sm:$0x8]  ;;  %1124 = vrot.lane.b32.xlu1 %v1075_v10, %s6001_s18 }
  0x28   : > { %v899_v18 = vshll.u32 %v6112_v6, 16  ;;  %v872_v19 = vshrl.u32 %v6103_v0, 16  ;;  %v912_v21 = vshrl.u32 %v6121_v11, 16  ;;  %v915_v22 = vshll.u32 %v6121_v11, 16  ;;  %v602_v25 = vld [vmem:[#allocation2 + $0x4c] sm:$0x1] }
  0x29   : > { %v597_v23 = vsel %vm6116_vm3, %v5043_v12, %v596_v63  ;;  %v875_v24 = vshll.u32 %v6103_v0, 16  ;;  %v504_v26 = vld [vmem:[#allocation2 + $0x5c] sm:$0x8]  ;;  %v898_v27 = vrot.slane %v896_v17, 4  ;;  %v1084_v29 = vrot.slane %v6112_v6, 5  ;;  %v200_v4 = vld [vmem:[%s6039_s17 + $0xe0] sm:$0xff] }
  0x2a   : > { %v901_v28 = vrot.slane %v899_v18, 5  ;;  %598 = vst [vmem:[#allocation2 + $0x24] sm:$0x1] %v597_v23  ;;  %v5044_v30 = vrot.slane %v502_v13, 11  ;;  %v663_v31 = vld [vmem:[#allocation2 + $0x6c] sm:$0xf] }
  0x2b   : > { %v914_v32 = vrot.slane %v912_v21, 4  ;;  %v917_v33 = vrot.slane %v915_v22, 5  ;;  %v874_v34 = vrot.slane %v872_v19, 4  ;;  %v877_v35 = vrot.slane %v875_v24, 5  ;;  %v6140_v36 = vld [vmem:[#allocation2 + $0x70] sm:$0xf]  ;;  %1132 = vrot.lane.b32.xlu0 %v1081_v16, %s6001_s18 }
  0x2c   : > { %v902_v37 = vor.u32 %v901_v28, %v898_v27  ;;  %v600_v38 = vsel %vm6116_vm3, %v5044_v30, %v599_v14  ;;  %v883_v39 = vshll.u32 %v6095_v59, 16  ;;  %v5045_v40 = vrot.slane %v503_v20, 11  ;;  %v505_v41 = vld [vmem:[#allocation2 + $0x70] sm:$0x8]  ;;  %v506_v42 = vld [vmem:[#allocation2 + $0x84] sm:$0x8] }
  0x2d   : > { %v918_v43 = vor.u32 %v917_v33, %v914_v32  ;;  %601 = vst [vmem:[#allocation2 + $0x38] sm:$0x1] %v600_v38  ;;  %v888_v44 = vshrl.u32 %v6105_v1, 16  ;;  %v605_v45 = vld [vmem:[#allocation2 + $0x60] sm:$0x1]  ;;  %v891_v47 = vshll.u32 %v6105_v1, 16  ;;  %v6154_v49 = vcombine.low %v663_v31, %v6140_v36 }
  0x2e   : > { %999 = vrot.lane.b32.xlu1 %v902_v37, %s6002_s19  ;;  %v603_v46 = vsel %vm6116_vm3, %v5045_v40, %v602_v25  ;;  %v5046_v48 = vrot.slane %v504_v26, 11  ;;  %v608_v50 = vld [vmem:[#allocation2 + $0x74] sm:$0x1]  ;;  %v611_v51 = vld [vmem:[#allocation2 + $0x88] sm:$0x1]  ;;  %v5047_v52 = vrot.slane %v505_v41, 11  ;;  %v878_v54 = vor.u32 %v877_v35, %v874_v34 }
  0x2f   : > { %604 = vst [vmem:[#allocation2 + $0x4c] sm:$0x1] %v603_v46  ;;  %v5048_v53 = vrot.slane %v506_v42, 11  ;;  %1136 = vrot.lane.b32.xlu0 %v1084_v29, %s6001_s18  ;;  %v882_v55 = vrot.slane %v880_v15, 4  ;;  %v885_v56 = vrot.slane %v883_v39, 5  ;;  %v890_v7 = vrot.slane %v888_v44, 4 }
  0x30   : > { %v606_v57 = vsel %vm6116_vm3, %v5046_v48, %v605_v45  ;;  %v507_v58 = vld [vmem:[#allocation2 + $0x98] sm:$0x8]  ;;  %v508_v61 = vld [vmem:[#allocation2 + $0xac] sm:$0x8]  ;;  %v609_v63 = vsel %vm6116_vm3, %v5047_v52, %v608_v50  ;;  %v893_v8 = vrot.slane %v891_v47, 5  ;;  %v904_v12 = vshrl.u32 %v6154_v49, 16 }
  0x31   : > { %v5887_v62 = vld [vmem:[#allocation2 + $0x24] ss:$0 sps:$4 sm:$0x11]   ;;  %607 = vst [vmem:[#allocation2 + $0x60] sm:$0x1] %v606_v57  ;;  %v612_v2 = vsel %vm6116_vm3, %v5048_v53, %v611_v51  ;;  %v907_v15 = vshll.u32 %v6154_v49, 16  ;;  %v886_v21 = vor.u32 %v885_v56, %v882_v55  ;;  %v5396_v22 = vpack.c.bf16 %v200_v4, %v200_v4 }
  0x32   : > { %1003 = vrot.lane.b32.xlu1 %v918_v43, %s6002_s19  ;;  %610 = vst [vmem:[#allocation2 + $0x74] sm:$0x1] %v609_v63  ;;  %613 = vst [vmem:[#allocation2 + $0x88] sm:$0x1] %v612_v2  ;;  %v614_v13 = vld [vmem:[#allocation2 + $0x9c] sm:$0x1]  ;;  %v894_v0 = vor.u32 %v893_v8, %v890_v7 }
  0x33   : > { %v1076_v14 = vrot.slane %v5887_v62, 5  ;;  %v5049_v17 = vrot.slane %v507_v58, 11  ;;  %v5050_v18 = vrot.slane %v508_v61, 11  ;;  %v617_v19 = vld [vmem:[#allocation2 + $0xb0] sm:$0x1]  ;;  %993 = vrot.lane.b32.xlu0 %v878_v54, %s6002_s19  ;;  %v201_v24 = vld [vmem:[%s6039_s17 + $0xe8] sm:$0xff] }
  0x34   : > { %v5888_v20 = vld [vmem:[#allocation2 + $0x38] ss:$0 sps:$4 sm:$0x11]   ;;  %v202_v25 = vld [vmem:[%s6039_s17 + $0xf0] sm:$0xff]  ;;  %362 = vst.msk [vmem:[#allocation2 + $0x134] sm:$0xf] %vm333_vm0, %v5396_v22  ;;  %v5397_v37 = vpack.c.bf16 %v201_v24, %v201_v24 }
  0x35   : > { %v1077_v23 = vsel %vm1071_vm4, %v1075_v10, %v1076_v14  ;;  %v203_v26 = vld [vmem:[%s6039_s17 + $0xf8] sm:$0xff]  ;;  %v1079_v27 = vrot.slane %v5888_v20, 5  ;;  %v615_v30 = vsel %vm6116_vm3, %v5049_v17, %v614_v13  ;;  %v618_v31 = vsel %vm6116_vm3, %v5050_v18, %v617_v19  ;;  %369 = vst.msk [vmem:[#allocation2 + $0x15c] sm:$0xf] %vm333_vm0, %v5396_v22  ;;  %v6187_v39 = vld [vmem:[#allocation2 + $0x94] sm:$0xf] }
  0x36   : > { %1126 = vrot.lane.b32.xlu1 %v1077_v23, %s6001_s18  ;;  %v5889_v28 = vld [vmem:[#allocation2 + $0x4c] ss:$0 sps:$4 sm:$0x11]   ;;  %v906_v32 = vrot.slane %v904_v12, 4  ;;  %v909_v10 = vrot.slane %v907_v15, 5  ;;  %v5398_v38 = vpack.c.bf16 %v202_v25, %v202_v25  ;;  %v5399_v41 = vpack.c.bf16 %v203_v26, %v203_v26 }
  0x37   : > { %616 = vst [vmem:[#allocation2 + $0x9c] sm:$0x1] %v615_v30  ;;  %619 = vst [vmem:[#allocation2 + $0xb0] sm:$0x1] %v618_v31  ;;  %v1080_v33 = vsel %vm1071_vm4, %v1078_v5, %v1079_v27  ;;  %995 = vrot.lane.b32.xlu0 %v886_v21, %s6002_s19  ;;  %v1082_v34 = vrot.slane %v5889_v28, 5  ;;  %v1087_v1 = vrot.slane %v6154_v49, 5 }
  0x38   : > { %v5890_v35 = vld [vmem:[#allocation2 + $0x60] ss:$0 sps:$4 sm:$0x11]   ;;  %v670_v40 = vld [vmem:[#allocation2 + $0x98] sm:$0xf]  ;;  %v910_v46 = vor.u32 %v909_v10, %v906_v32  ;;  %v1090_v8 = vrot.slane %v6121_v11, 5 }
  0x39   : > { %v672_v42 = vld [vmem:[#allocation2 + $0xa8] sm:$0xf]  ;;  %v509_v43 = vld [vmem:[#allocation2 + $0xc0] sm:$0x8]  ;;  %363 = vst.msk [vmem:[#allocation2 + $0x138] sm:$0xf] %vm333_vm0, %v5397_v37  ;;  %v1083_v59 = vsel %vm1071_vm4, %v1081_v16, %v1082_v34  ;;  %v6201_v47 = vcombine.low %v6187_v39, %v670_v40 }
  0x3a   : > { %1130 = vrot.lane.b32.xlu1 %v1080_v33, %s6001_s18  ;;  %370 = vst.msk [vmem:[#allocation2 + $0x160] sm:$0xf] %vm333_vm0, %v5397_v37  ;;  %364 = vst.msk [vmem:[#allocation2 + $0x148] sm:$0xf] %vm333_vm0, %v5398_v38  ;;  %v1085_v5 = vrot.slane %v5890_v35, 5  ;;  %v5051_v50 = vrot.slane %v509_v43, 11 }
  0x3b   : > { %v5892_v44 = vld [vmem:[#allocation2 + $0x74] ss:$0 sps:$4 sm:$0x11]   ;;  %v6196_v45 = vld [vmem:[#allocation2 + $0xac] sm:$0xf]  ;;  %997 = vrot.lane.b32.xlu0 %v894_v0, %s6002_s19  ;;  %v920_v57 = vshrl.u32 %v6201_v47, 16 }
  0x3c   : > { %365 = vst.msk [vmem:[#allocation2 + $0x14c] sm:$0xf] %vm333_vm0, %v5399_v41  ;;  %v620_v48 = vld [vmem:[#allocation2 + $0xc4] sm:$0x1]  ;;  %v510_v51 = vld [vmem:[#allocation2 + $0xd4] sm:$0x8]  ;;  %v6206_v16 = vcombine.low %v672_v42, %v6196_v45  ;;  %v1086_v53 = vsel %vm1071_vm4, %v1084_v29, %v1085_v5 }
  0x3d   : > { %v623_v52 = vld [vmem:[#allocation2 + $0xd8] sm:$0x1]  ;;  %v1088_v54 = vrot.slane %v5892_v44, 5  ;;  %v5893_v55 = vld [vmem:[#allocation2 + $0x88] ss:$0 sps:$4 sm:$0x11]   ;;  %v621_v56 = vsel %vm6116_vm3, %v5051_v50, %v620_v48 }
  0x3e   : > { %1134 = vrot.lane.b32.xlu1 %v1083_v59, %s6001_s18  ;;  %v923_v58 = vshll.u32 %v6201_v47, 16  ;;  %622 = vst [vmem:[#allocation2 + $0xc4] sm:$0x1] %v621_v56  ;;  %v5052_v49 = vrot.slane %v510_v51, 11  ;;  %v626_v61 = vld [vmem:[#allocation2 + $0xec] sm:$0x1] }
  0x3f   : > { %1001 = vrot.lane.b32.xlu0 %v910_v46, %s6002_s19  ;;  %v629_v62 = vld [vmem:[#allocation2 + $0x100] sm:$0x1]  ;;  %v928_v6 = vshrl.u32 %v6206_v16, 16  ;;  %v931_v29 = vshll.u32 %v6206_v16, 16  ;;  %v511_v2 = vld [vmem:[#allocation2 + $0xe8] sm:$0x8]  ;;  %v1089_v7 = vsel %vm1071_vm4, %v1087_v1, %v1088_v54 }
  0x40   : > { %v624_v63 = vsel %vm6116_vm3, %v5052_v49, %v623_v52  ;;  %v512_v4 = vld [vmem:[#allocation2 + $0xfc] sm:$0x8]  ;;  %v1091_v12 = vrot.slane %v5893_v55, 5  ;;  %v678_v13 = vld [vmem:[#allocation2 + $0xd0] sm:$0xf]  ;;  %v5053_v14 = vrot.slane %v511_v2, 11 }
  0x41   : > { %625 = vst [vmem:[#allocation2 + $0xd8] sm:$0x1] %v624_v63  ;;  %v922_v15 = vrot.slane %v920_v57, 4  ;;  %v925_v17 = vrot.slane %v923_v58, 5  ;;  %v679_v18 = vld [vmem:[#allocation2 + $0xd4] sm:$0xf] }
  0x42   : > { %1138 = vrot.lane.b32.xlu1 %v1086_v53, %s6001_s18  ;;  %v5054_v19 = vrot.slane %v512_v4, 11  ;;  %v6224_v20 = vld [vmem:[#allocation2 + $0xbc] sm:$0xf]  ;;  %v6226_v21 = vld [vmem:[#allocation2 + $0xc0] sm:$0xf]  ;;  %v627_v22 = vsel %vm6116_vm3, %v5053_v14, %v626_v61  ;;  %v930_v11 = vrot.slane %v928_v6, 4  ;;  %v1092_v26 = vsel %vm1071_vm4, %v1090_v8, %v1091_v12 }
  0x43   : > { %1140 = vrot.lane.b32.xlu0 %v1087_v1, %s6001_s18  ;;  %v933_v23 = vrot.slane %v931_v29, 5  ;;  %628 = vst [vmem:[#allocation2 + $0xec] sm:$0x1] %v627_v22  ;;  %v513_v25 = vld [vmem:[#allocation2 + $0x110] sm:$0x8]  ;;  %v6234_v28 = vcombine.low %v678_v13, %v679_v18  ;;  %v926_v30 = vor.u32 %v925_v17, %v922_v15  ;;  %v6239_v31 = vcombine.low %v6224_v20, %v6226_v21 }
  0x44   : > { %v630_v24 = vsel %vm6116_vm3, %v5054_v19, %v629_v62  ;;  %v5896_v27 = vld [vmem:[#allocation2 + $0x9c] ss:$0 sps:$4 sm:$0x11]   ;;  %v632_v0 = vld [vmem:[#allocation2 + $0x114] sm:$0x1]  ;;  %v5055_v32 = vrot.slane %v513_v25, 11 }
  0x45   : > { %631 = vst [vmem:[#allocation2 + $0x100] sm:$0x1] %v630_v24  ;;  %v514_v10 = vld [vmem:[#allocation2 + $0x124] sm:$0x8]  ;;  %v934_v33 = vor.u32 %v933_v23, %v930_v11  ;;  %v635_v34 = vld [vmem:[#allocation2 + $0x128] sm:$0x1] }
  0x46   : > { %1142 = vrot.lane.b32.xlu1 %v1089_v7, %s6001_s18  ;;  %v1093_v35 = vrot.slane %v6201_v47, 5  ;;  %v1094_v37 = vrot.slane %v5896_v27, 5  ;;  %v5897_v38 = vld [vmem:[#allocation2 + $0xb0] ss:$0 sps:$4 sm:$0x11]   ;;  %v944_v40 = vshrl.u32 %v6234_v28, 16  ;;  %v633_v41 = vsel %vm6116_vm3, %v5055_v32, %v632_v0 }
  0x47   : > { %1144 = vrot.lane.b32.xlu0 %v1090_v8, %s6001_s18  ;;  %v947_v42 = vshll.u32 %v6234_v28, 16  ;;  %v936_v43 = vshrl.u32 %v6239_v31, 16  ;;  %v939_v59 = vshll.u32 %v6239_v31, 16  ;;  %v684_v5 = vld [vmem:[#allocation2 + $0xf8] sm:$0xf]  ;;  %v5056_v44 = vrot.slane %v514_v10, 11 }
  0x48   : > { %634 = vst [vmem:[#allocation2 + $0x114] sm:$0x1] %v633_v41  ;;  %v685_v46 = vld [vmem:[#allocation2 + $0xfc] sm:$0xf]  ;;  %v515_v47 = vld [vmem:[#allocation2 + $0x138] sm:$0x8]  ;;  %v1095_v1 = vsel %vm1071_vm4, %v1093_v35, %v1094_v37 }
  0x49   : > { %v6251_v48 = vld [vmem:[#allocation2 + $0xe4] sm:$0xf]  ;;  %v6253_v50 = vld [vmem:[#allocation2 + $0xe8] sm:$0xf]  ;;  %v636_v51 = vsel %vm6116_vm3, %v5056_v44, %v635_v34  ;;  %v1096_v52 = vrot.slane %v6206_v16, 5  ;;  %v1097_v53 = vrot.slane %v5897_v38, 5  ;;  %v6260_v29 = vcombine.low %v684_v5, %v685_v46 }
  0x4a   : > { %1146 = vrot.lane.b32.xlu1 %v1092_v26, %s6001_s18  ;;  %637 = vst [vmem:[#allocation2 + $0x128] sm:$0x1] %v636_v51  ;;  %v638_v54 = vld [vmem:[#allocation2 + $0x13c] sm:$0x1]  ;;  %v516_v55 = vld [vmem:[#allocation2 + $0x14c] sm:$0x8]  ;;  %v6264_v63 = vcombine.low %v6251_v48, %v6253_v50 }
  0x4b   : > { %1005 = vrot.lane.b32.xlu0 %v926_v30, %s6002_s19  ;;  %v938_v56 = vrot.slane %v936_v43, 4  ;;  %v941_v57 = vrot.slane %v939_v59, 5  ;;  %v5057_v58 = vrot.slane %v515_v47, 11  ;;  %v5058_v49 = vrot.slane %v516_v55, 11  ;;  %v641_v61 = vld [vmem:[#allocation2 + $0x150] sm:$0x1] }
  0x4c   : > { %v946_v62 = vrot.slane %v944_v40, 4  ;;  %v949_v6 = vrot.slane %v947_v42, 5  ;;  %v5900_v16 = vld [vmem:[#allocation2 + $0xc4] ss:$0 sps:$4 sm:$0x11]   ;;  %v1098_v8 = vsel %vm1071_vm4, %v1096_v52, %v1097_v53  ;;  %v1099_v14 = vrot.slane %v6239_v31, 5 }
  0x4d   : > { %v639_v2 = vsel %vm6116_vm3, %v5057_v58, %v638_v54  ;;  %v642_v4 = vsel %vm6116_vm3, %v5058_v49, %v641_v61  ;;  %v500_v7 = vld [vmem:[#allocation2 + $0xc] sm:$0x8]  ;;  %v942_v13 = vor.u32 %v941_v57, %v938_v56  ;;  %v593_v15 = vld [vmem:[#allocation2 + $0x10] sm:$0x1]  ;;  %v375_v17 = vld [vmem:[#allocation2 + $0x58] sm:$0x1] }
  0x4e   : > { %1007 = vrot.lane.b32.xlu1 %v934_v33, %s6002_s19  ;;  %640 = vst [vmem:[#allocation2 + $0x13c] sm:$0x1] %v639_v2  ;;  %643 = vst [vmem:[#allocation2 + $0x150] sm:$0x1] %v642_v4  ;;  %v5042_v12 = vrot.slane %v500_v7, 11  ;;  %v950_v18 = vor.u32 %v949_v6, %v946_v62  ;;  %v960_v19 = vshrl.u32 %v6260_v29, 16 }
  0x4f   : > { %1148 = vrot.lane.b32.xlu0 %v1093_v35, %s6001_s18  ;;  %v952_v22 = vshrl.u32 %v6264_v63, 16  ;;  %v458_v23 = vld [vmem:[#allocation2 + $0x54] sm:$0x8]  ;;  %v377_v24 = vld [vmem:[#allocation2 + $0x80] sm:$0x1]  ;;  %v1100_v25 = vrot.slane %v5900_v16, 5 }
  0x50   : > { %v955_v26 = vshll.u32 %v6264_v63, 16  ;;  %v594_v27 = vsel %vm6116_vm3, %v5042_v12, %v593_v15  ;;  %v411_v30 = vrot.slane %v375_v17, 5  ;;  %v5901_v31 = vld [vmem:[#allocation2 + $0xd8] ss:$0 sps:$4 sm:$0x11]   ;;  %v413_v32 = vrot.slane %v377_v24, 5 }
  0x51   : > { %v6285_v0 = vld [vmem:[#allocation2 + $0x120] sm:$0xf]  ;;  %595 = vst [vmem:[#allocation2 + $0x10] sm:$0x1] %v594_v27  ;;  %v464_v10 = vld [vmem:[#allocation2 + $0x7c] sm:$0x8]  ;;  %v1101_v46 = vsel %vm1071_vm4, %v1099_v14, %v1100_v25 }
  0x52   : > { %1150 = vrot.lane.b32.xlu1 %v1095_v1, %s6001_s18  ;;  %v6288_v33 = vld [vmem:[#allocation2 + $0x124] sm:$0xf]  ;;  %v459_v34 = vsel %vm6277_vm7, %v411_v30, %v458_v23  ;;  %v449_v35 = vld [vmem:[#allocation2 + $0x18] sm:$0x8]  ;;  %v372_v37 = vld [vmem:[#allocation2 + $0x1c] sm:$0x1]  ;;  %v465_v40 = vsel %vm6277_vm7, %v413_v32, %v464_v10 }
  0x53   : > { %1152 = vrot.lane.b32.xlu0 %v1096_v52, %s6001_s18  ;;  %v963_v38 = vshll.u32 %v6260_v29, 16  ;;  %460 = vst [vmem:[#allocation2 + $0x54] sm:$0x8] %v459_v34  ;;  %v408_v41 = vrot.slane %v372_v37, 5  ;;  %v373_v42 = vld [vmem:[#allocation2 + $0x30] sm:$0x1] }
  0x54   : > { %v452_v43 = vld [vmem:[#allocation2 + $0x2c] sm:$0x8]  ;;  %v1102_v59 = vrot.slane %v6234_v28, 5  ;;  %466 = vst [vmem:[#allocation2 + $0x7c] sm:$0x8] %v465_v40  ;;  %v409_v44 = vrot.slane %v373_v42, 5  ;;  %v6307_v28 = vcombine.low %v6285_v0, %v6288_v33 }
  0x55   : > { %v6297_v5 = vld [vmem:[#allocation2 + $0x10c] sm:$0xf]  ;;  %v1103_v47 = vrot.slane %v5901_v31, 5  ;;  %v962_v51 = vrot.slane %v960_v19, 4  ;;  %v6300_v1 = vld [vmem:[#allocation2 + $0x110] sm:$0xf]  ;;  %v450_v52 = vsel %vm6277_vm7, %v408_v41, %v449_v35 }
  0x56   : > { %1154 = vrot.lane.b32.xlu1 %v1098_v8, %s6001_s18  ;;  %v954_v53 = vrot.slane %v952_v22, 4  ;;  %v957_v54 = vrot.slane %v955_v26, 5  ;;  %451 = vst [vmem:[#allocation2 + $0x18] sm:$0x8] %v450_v52  ;;  %v453_v55 = vsel %vm6277_vm7, %v409_v44, %v452_v43  ;;  %v374_v56 = vld [vmem:[#allocation2 + $0x44] sm:$0x1]  ;;  %v6315_v6 = vcombine.low %v6297_v5, %v6300_v1 }
  0x57   : > { %1009 = vrot.lane.b32.xlu0 %v942_v13, %s6002_s19  ;;  %v455_v57 = vld [vmem:[#allocation2 + $0x40] sm:$0x8]  ;;  %v965_v58 = vrot.slane %v963_v38, 5  ;;  %454 = vst [vmem:[#allocation2 + $0x2c] sm:$0x8] %v453_v55  ;;  %v410_v49 = vrot.slane %v374_v56, 5  ;;  %v1104_v62 = vsel %vm1071_vm4, %v1102_v59, %v1103_v47 }
  0x58   : > { %v5904_v61 = vld [vmem:[#allocation2 + $0xec] ss:$0 sps:$4 sm:$0x11]   ;;  %v958_v7 = vor.u32 %v957_v54, %v954_v53  ;;  %v1108_v8 = vrot.slane %v6260_v29, 5  ;;  %v976_v12 = vshrl.u32 %v6307_v28, 16  ;;  %v1105_v22 = vrot.slane %v6264_v63, 5 }
  0x59   : > { %v456_v16 = vsel %vm6277_vm7, %v410_v49, %v455_v57  ;;  %v5916_v2 = vld [vmem:[%s8471_s1 + $0x8] sm:$0x3f]   ;;  %v5905_v15 = vld [vmem:[#allocation2 + $0x100] ss:$0 sps:$4 sm:$0x11]   ;;  %v966_v19 = vor.u32 %v965_v58, %v962_v51  ;;  %v1106_v27 = vrot.slane %v5904_v61, 5 }
  0x5a   : > { %1011 = vrot.lane.b32.xlu1 %v950_v18, %s6002_s19  ;;  %v376_v4 = vld [vmem:[#allocation2 + $0x6c] sm:$0x1]  ;;  %457 = vst [vmem:[#allocation2 + $0x40] sm:$0x8] %v456_v16  ;;  %5866 = vmatprep.subr.msk.bf16.mxu0 %vm1683_vm8, %v5916_v2  ;;  %v1685_v17 = vsel %vm1683_vm8, %v5916_v2, 0  ;;  %v979_v30 = vshll.u32 %v6307_v28, 16 }
  0x5b   : > { %1156 = vrot.lane.b32.xlu0 %v1099_v14, %s6001_s18  ;;  %v412_v13 = vrot.slane %v376_v4, 5  ;;  %v461_v14 = vld [vmem:[#allocation2 + $0x68] sm:$0x8]  ;;  %v379_v18 = vld [vmem:[#allocation2 + $0xa8] sm:$0x1]  ;;  %5535 = vmatpush3.bf16.msra.mxu0 %v1685_v17  ;;  %v968_v31 = vshrl.u32 %v6315_v6, 16  ;;  %v1107_v51 = vsel %vm1071_vm4, %v1105_v22, %v1106_v27 }
  0x5c   : > { %v415_v24 = vrot.slane %v379_v18, 5  ;;  %v470_v25 = vld [vmem:[#allocation2 + $0xa4] sm:$0x8]  ;;  %v378_v26 = vld [vmem:[#allocation2 + $0x94] sm:$0x1]  ;;  %v6334_v34 = vrot.slane %v976_v12, 4 }
  0x5d   : > { %v462_v23 = vsel %vm6277_vm7, %v412_v13, %v461_v14  ;;  %v414_v32 = vrot.slane %v378_v26, 5  ;;  %v467_v10 = vld [vmem:[#allocation2 + $0x90] sm:$0x8]  ;;  %v971_v63 = vshll.u32 %v6315_v6, 16  ;;  %v6344_v38 = vld [vmem:[%s8471_s1] sm:$0x3f]  }
  0x5e   : > { %1158 = vrot.lane.b32.xlu1 %v1101_v46, %s6001_s18  ;;  %463 = vst [vmem:[#allocation2 + $0x68] sm:$0x8] %v462_v23  ;;  %v471_v35 = vsel %vm6277_vm7, %v415_v24, %v470_v25  ;;  %v381_v40 = vld [vmem:[#allocation2 + $0xd0] sm:$0x1]  ;;  %v476_v41 = vld [vmem:[#allocation2 + $0xcc] sm:$0x8]  ;;  %5867 = vmatprep.subr.msk.bf16.mxu0 %vm1683_vm8, %v6344_v38 }
  0x5f   : > { %1160 = vrot.lane.b32.xlu0 %v1102_v59, %s6001_s18  ;;  %472 = vst [vmem:[#allocation2 + $0xa4] sm:$0x8] %v471_v35  ;;  %v468_v37 = vsel %vm6277_vm7, %v414_v32, %v467_v10  ;;  %v1111_v42 = vrot.slane %v6315_v6, 5  ;;  %v6348_v43 = vld [vmem:[#allocation2 + $0x134] sm:$0xf]  ;;  %v417_v44 = vrot.slane %v381_v40, 5 }
  0x60   : > { %v6350_v59 = vld [vmem:[#allocation2 + $0x138] sm:$0xf]  ;;  %469 = vst [vmem:[#allocation2 + $0x90] sm:$0x8] %v468_v37  ;;  %v380_v46 = vld [vmem:[#allocation2 + $0xbc] sm:$0x1] }
  0x61   : > { %v473_v47 = vld [vmem:[#allocation2 + $0xb8] sm:$0x8]  ;;  %v1109_v52 = vrot.slane %v5905_v15, 5  ;;  %v970_v53 = vrot.slane %v968_v31, 4  ;;  %v416_v54 = vrot.slane %v380_v46, 5  ;;  %v973_v56 = vrot.slane %v971_v63, 5 }
  0x62   : > { %1162 = vrot.lane.b32.xlu1 %v1104_v62, %s6001_s18  ;;  %v383_v55 = vld [vmem:[#allocation2 + $0xf8] sm:$0x1]  ;;  %v477_v57 = vsel %vm6277_vm7, %v417_v44, %v476_v41  ;;  %v482_v49 = vld [vmem:[#allocation2 + $0xf4] sm:$0x8]  ;;  %v382_v61 = vld [vmem:[#allocation2 + $0xe4] sm:$0x1]  ;;  %v6368_v18 = vcombine.low %v6348_v43, %v6350_v59 }
  0x63   : > { %1013 = vrot.lane.b32.xlu0 %v958_v7, %s6002_s19  ;;  %v419_v58 = vrot.slane %v383_v55, 5  ;;  %v981_v62 = vrot.slane %v979_v30, 5  ;;  %478 = vst [vmem:[#allocation2 + $0xcc] sm:$0x8] %v477_v57  ;;  %v474_v16 = vsel %vm6277_vm7, %v416_v54, %v473_v47  ;;  %v418_v2 = vrot.slane %v382_v61, 5 }
  0x64   : > { %v479_v4 = vld [vmem:[#allocation2 + $0xe0] sm:$0x8]  ;;  %v385_v7 = vld [vmem:[#allocation2 + $0x120] sm:$0x1]  ;;  %475 = vst [vmem:[#allocation2 + $0xb8] sm:$0x8] %v474_v16  ;;  %v1110_v17 = vsel %vm1071_vm4, %v1108_v8, %v1109_v52  ;;  %v974_v25 = vor.u32 %v973_v56, %v970_v53 }
  0x65   : > { %v5908_v12 = vld [vmem:[#allocation2 + $0x114] ss:$0 sps:$4 sm:$0x11]   ;;  %v483_v13 = vsel %vm6277_vm7, %v419_v58, %v482_v49  ;;  %v421_v14 = vrot.slane %v385_v7, 5  ;;  %v488_v15 = vld [vmem:[#allocation2 + $0x11c] sm:$0x8]  ;;  %v982_v32 = vor.u32 %v981_v62, %v6334_v34 }
  0x66   : > { %1015 = vrot.lane.b32.xlu1 %v966_v19, %s6002_s19  ;;  %484 = vst [vmem:[#allocation2 + $0xf4] sm:$0x8] %v483_v13  ;;  %v480_v19 = vsel %vm6277_vm7, %v418_v2, %v479_v4  ;;  %v485_v23 = vld [vmem:[#allocation2 + $0x108] sm:$0x8]  ;;  %v386_v24 = vld [vmem:[#allocation2 + $0x134] sm:$0x1] }
  0x67   : > { %1164 = vrot.lane.b32.xlu0 %v1105_v22, %s6001_s18  ;;  %v384_v22 = vld [vmem:[#allocation2 + $0x10c] sm:$0x1]  ;;  %481 = vst [vmem:[#allocation2 + $0xe0] sm:$0x8] %v480_v19  ;;  %v489_v26 = vsel %vm6277_vm7, %v421_v14, %v488_v15  ;;  %v422_v30 = vrot.slane %v386_v24, 5  ;;  %v1112_v29 = vrot.slane %v5908_v12, 5 }
  0x68   : > { %v420_v27 = vrot.slane %v384_v22, 5  ;;  %v491_v31 = vld [vmem:[#allocation2 + $0x130] sm:$0x8]  ;;  %v5909_v10 = vld [vmem:[#allocation2 + $0x128] ss:$0 sps:$4 sm:$0x11]  }
  0x69   : > { %v6378_v63 = vld [vmem:[#allocation2 + $0x148] sm:$0xf]  ;;  %v6380_v35 = vld [vmem:[#allocation2 + $0x14c] sm:$0xf]  ;;  %490 = vst [vmem:[#allocation2 + $0x11c] sm:$0x8] %v489_v26  ;;  %v492_v41 = vsel %vm6277_vm7, %v422_v30, %v491_v31  ;;  %v1113_v55 = vsel %vm1071_vm4, %v1111_v42, %v1112_v29 }
  0x6a   : > { %1166 = vrot.lane.b32.xlu1 %v1107_v51, %s6001_s18  ;;  %v387_v37 = vld [vmem:[#allocation2 + $0x148] sm:$0x1]  ;;  %v494_v40 = vld [vmem:[#allocation2 + $0x144] sm:$0x8]  ;;  %493 = vst [vmem:[#allocation2 + $0x130] sm:$0x8] %v492_v41  ;;  %v5126_v53 = vcombine.low %v6378_v63, %v6380_v35 }
  0x6b   : > { %1168 = vrot.lane.b32.xlu0 %v1108_v8, %s6001_s18  ;;  %v486_v8 = vsel %vm6277_vm7, %v420_v27, %v485_v23  ;;  %v423_v44 = vrot.slane %v387_v37, 5  ;;  %v984_v34 = vshrl.u32 %v6368_v18, 16  ;;  %v987_v46 = vshll.u32 %v6368_v18, 16  ;;  %v371_v51 = vld [vmem:[#allocation2 + $0x8] sm:$0x1] }
  0x6c   : > { %487 = vst [vmem:[#allocation2 + $0x108] sm:$0x8] %v486_v8  ;;  %v407_v52 = vrot.slane %v371_v51, 5  ;;  %v446_v54 = vld [vmem:[#allocation2 + $0x4] sm:$0x8]  ;;  %v1114_v56 = vrot.slane %v6307_v28, 5 }
  0x6d   : > { %v495_v47 = vsel %vm6277_vm7, %v423_v44, %v494_v40  ;;  %v1115_v57 = vrot.slane %v5909_v10, 5  ;;  %v986_v49 = vrot.slane %v984_v34, 4  ;;  %v989_v61 = vrot.slane %v987_v46, 5  ;;  %v6404_v62 = vld [vmem:[#allocation2 + $0x8] sm:$0xf] }
  0x6e   : > { %1170 = vrot.lane.b32.xlu1 %v1110_v17, %s6001_s18  ;;  %496 = vst [vmem:[#allocation2 + $0x144] sm:$0x8] %v495_v47  ;;  %v447_v58 = vsel %vm6277_vm7, %v407_v52, %v446_v54  ;;  %v6406_v16 = vld [vmem:[#allocation2 + $0xc] sm:$0xf]  ;;  %v517_v4 = vld [vmem:[#allocation2 + $0x160] sm:$0x8] }
  0x6f   : > { %1017 = vrot.lane.b32.xlu0 %v974_v25, %s6002_s19  ;;  %448 = vst [vmem:[#allocation2 + $0x4] sm:$0x8] %v447_v58  ;;  %v5912_v2 = vld [vmem:[#allocation2 + $0x13c] ss:$0 sps:$4 sm:$0x11]   ;;  %v1583_v28 = vshrl.u32 %v5126_v53, 16  ;;  %v1116_v13 = vsel %vm1071_vm4, %v1114_v56, %v1115_v57  ;;  %v990_v6 = vor.u32 %v989_v61, %v986_v49 }
  0x70   : > { %v1586_v7 = vshll.u32 %v5126_v53, 16  ;;  %v5059_v12 = vrot.slane %v517_v4, 11  ;;  %v644_v14 = vld [vmem:[#allocation2 + $0x164] sm:$0x1]  ;;  %v1118_v17 = vrot.slane %v5912_v2, 5  ;;  %v1117_v19 = vrot.slane %v6368_v18, 5 }
  0x71   : > { %v1585_v22 = vrot.slane %v1583_v28, 4  ;;  %v5913_v24 = vld [vmem:[#allocation2 + $0x150] ss:$0 sps:$4 sm:$0x11]   ;;  %v6417_v25 = vld [vmem:[#allocation2 + $0x15c] sm:$0xf] }
  0x72   : > { %1019 = vrot.lane.b32.xlu1 %v982_v32, %s6002_s19  ;;  %v645_v15 = vsel %vm6116_vm3, %v5059_v12, %v644_v14  ;;  %v1588_v23 = vrot.slane %v1586_v7, 5  ;;  %v6419_v26 = vld [vmem:[#allocation2 + $0x160] sm:$0xf]  ;;  %v1119_v31 = vsel %vm1071_vm4, %v1117_v19, %v1118_v17  ;;  %v1595_v18 = vrot.slane %v5126_v53, 5  ;;  %v650_v7 = vld [vmem:[#allocation2 + $0x18] sm:$0x8] }
  0x73   : > { %1172 = vrot.lane.b32.xlu0 %v1111_v42, %s6001_s18  ;;  %v5092_v42 = vcombine.low %v6404_v62, %v6406_v16  ;;  %646 = vst [vmem:[#allocation2 + $0x164] sm:$0x1] %v645_v15  ;;  %v5166_v10 = vcombine.low %v6417_v25, %v6419_v26  ;;  %v1596_v37 = vrot.slane %v5913_v24, 5  ;;  %v5915_v8 = vld [vmem:[#allocation2 + $0x10] ss:$0 sps:$4 sm:$0x11]  }
  0x74   : > { %v1589_v32 = vor.u32 %v1588_v23, %v1585_v22  ;;  %v1073_v47 = vrot.slane %v5915_v8, 5  ;;  %v5974_v14 = vld [vmem:[#allocation2 + $0x1c] sm:$0xf]  ;;  %v653_v15 = vld [vmem:[#allocation2 + $0x2c] sm:$0x8] }
  0x75   : > { %v864_v27 = vshrl.u32 %v5092_v42, 16  ;;  %v867_v30 = vshll.u32 %v5092_v42, 16  ;;  %v2030_v41 = vshrl.u32 %v5166_v10, 16  ;;  %v2033_v44 = vshll.u32 %v5166_v10, 16  ;;  %v659_v17 = vld [vmem:[#allocation2 + $0x54] sm:$0x8] }
  0x76   : > { %1174 = vrot.lane.b32.xlu1 %v1113_v55, %s6001_s18  ;;  %v1597_v34 = vsel %vm1071_vm4, %v1595_v18, %v1596_v37  ;;  %v1072_v51 = vrot.slane %v5092_v42, 5  ;;  %v2042_v57 = vrot.slane %v5166_v10, 5  ;;  %v5975_v23 = vld [vmem:[#allocation2 + $0x34] sm:$0xf]  ;;  %v5977_v10 = vld [vmem:[#allocation2 + $0x48] sm:$0xf] }
  0x77   : > { %1176 = vrot.lane.b32.xlu0 %v1114_v56, %s6001_s18  ;;  %v866_v40 = vrot.slane %v864_v27, 4  ;;  %v869_v29 = vrot.slane %v867_v30, 5  ;;  %v2032_v52 = vrot.slane %v2030_v41, 4  ;;  %v2035_v53 = vrot.slane %v2033_v44, 5  ;;  %v5978_v37 = vld [vmem:[#allocation2 + $0x58] sm:$0xf] }
  0x78   : > { %v1074_v55 = vsel %vm1071_vm4, %v1072_v51, %v1073_v47  ;;  %v5065_v24 = vcombine.low %v5975_v23, %v5975_v23  ;;  %v5071_v41 = vcombine.low %v6140_v36, %v6140_v36 }
  0x79   : > { %v870_v46 = vor.u32 %v869_v29, %v866_v40  ;;  %v2036_v56 = vor.u32 %v2035_v53, %v2032_v52  ;;  %v5068_v40 = vcombine.low %v659_v17, %v5978_v37  ;;  %v5979_v53 = vld [vmem:[#allocation2 + $0x44] sm:$0xf] }
  0x7a   : > { %1178 = vrot.lane.b32.xlu1 %v1116_v13, %s6001_s18  ;;  %v5921_v54 = vld [vmem:[#allocation2 + $0x164] ss:$0 sps:$4 sm:$0x11]   ;;  %v5063_v13 = vcombine.low %v6097_v60, %v6097_v60 }
  0x7b   : > { %1021 = vrot.lane.b32.xlu0 %v990_v6, %s6002_s19  ;;  %v2043_v58 = vrot.slane %v5921_v54, 5  ;;  %v5062_v6 = vcombine.low %v650_v7, %v5974_v14 }
  0x7d   : > { %v2044_v49 = vsel %vm1071_vm4, %v2042_v57, %v2043_v58 }
  0x7e   : > { %1180 = vrot.lane.b32.xlu1 %v1117_v19, %s6001_s18  ;;  %v5069_v19 = vcombine.low %v6107_v3, %v6107_v3 }
  0x7f   : > { %1182 = vrot.lane.b32.xlu0 %v1119_v31, %s6001_s18  ;;  %v5976_v31 = vld [vmem:[#allocation2 + $0x30] sm:$0xf] }
  0x80   : > { %v5064_v60 = vcombine.low %v653_v15, %v5976_v31 }
  0x82   : > { %1590 = vrot.lane.b32.xlu1 %v1589_v32, %s6002_s19  ;;  %v656_v32 = vld [vmem:[#allocation2 + $0x40] sm:$0x8] }
  0x83   : > { %1598 = vrot.lane.b32.xlu0 %v1595_v18, %s6001_s18  ;;  %v5067_v18 = vcombine.low %v5977_v10, %v5977_v10  ;;  %v5066_v54 = vcombine.low %v656_v32, %v5979_v53 }
  0x86   : > { %1600 = vrot.lane.b32.xlu1 %v1597_v34, %s6001_s18 }
  0x87   : > { %991 = vrot.lane.b32.xlu0 %v870_v46, %s6002_s19 }
  0x8a   : > { %1120 = vrot.lane.b32.xlu1 %v1072_v51, %s6001_s18 }
  0x8b   : > { %1122 = vrot.lane.b32.xlu0 %v1074_v55, %s6001_s18  ;;  %v6457_v55 = vsel %vm1683_vm8, %v6344_v38, 0 }
  0x8e   : > { %2037 = vrot.lane.b32.xlu1 %v2036_v56, %s6002_s19 }
  0x8f   : > { %2045 = vrot.lane.b32.xlu0 %v2042_v57, %s6001_s18 }
  0x92   : > { %2047 = vrot.lane.b32.xlu1 %v2044_v49, %s6001_s18 }
  0x99   : > { %v1129_v61 = vpop.permute.xlu0 %1128  ;;  %v1125_v2 = vpop.permute.xlu1 %1124 }
  0x9d   : > { %v6439_v4 = vpop.permute.xlu0 %1132 }
  0xa0   : > { %v6441_v28 = vpop.permute.xlu1 %999 }
  0xa1   : > { %v1137_v12 = vpop.permute.xlu0 %1136 }
  0xa4   : > { %v6445_v42 = vpop.permute.xlu1 %1003 }
  0xa5   : > { %v994_v22 = vpop.permute.xlu0 %993 }
  0xa6   : > { %v1192_v27 = vsel %vm1184_vm9, %v5062_v6, %v994_v22  ;;  %v1194_v30 = vsel %vm1184_vm9, %v5063_v13, %v994_v22 }
  0xa7   : > { %v1271_v8 = vsel %vm1265_vm10, %v1192_v27, %v1125_v2  ;;  %v1207_v2 = vsel %vm1184_vm9, %v5068_v40, %v6441_v28 }
  0xa8   : > { %v1127_v29 = vpop.permute.xlu1 %1126  ;;  %v1346_v34 = vshrl.u32 %v1271_v8, 16  ;;  %v1349_v46 = vshll.u32 %v1271_v8, 16  ;;  %v1283_v23 = vsel %vm1265_vm10, %v1207_v2, %v1137_v12 }
  0xa9   : > { %v1273_v44 = vsel %vm1265_vm10, %v1194_v30, %v1127_v29  ;;  %v996_v52 = vpop.permute.xlu0 %995 }
  0xaa   : > { %v1353_v47 = vshrl.u32 %v1273_v44, 16  ;;  %v1356_v51 = vshll.u32 %v1273_v44, 16  ;;  %v1197_v56 = vsel %vm1184_vm9, %v5064_v60, %v996_v52  ;;  %v1199_v57 = vsel %vm1184_vm9, %v5065_v24, %v996_v52  ;;  %v665_v52 = vld [vmem:[#allocation2 + $0x7c] sm:$0x8] }
  0xab   : > { %v1348_v58 = vrot.slane %v1346_v34, 3  ;;  %v1351_v49 = vrot.slane %v1349_v46, 4  ;;  %v1275_v13 = vsel %vm1265_vm10, %v1197_v56, %v1129_v61  ;;  %v662_v61 = vld [vmem:[#allocation2 + $0x68] sm:$0x8] }
  0xac   : > { %v1131_v7 = vpop.permute.xlu1 %1130  ;;  %v1355_v14 = vrot.slane %v1353_v47, 3  ;;  %v1358_v6 = vrot.slane %v1356_v51, 4  ;;  %v1361_v17 = vshrl.u32 %v1275_v13, 16  ;;  %v1364_v22 = vshll.u32 %v1275_v13, 16  ;;  %v6479_v13 = vld [vmem:[%s8471_s1 + $0x10] sm:$0x3f]  }
  0xad   : > { %v1277_v15 = vsel %vm1265_vm10, %v1199_v57, %v1131_v7  ;;  %v1352_v38 = vor.u32 %v1351_v49, %v1348_v58  ;;  %v998_v24 = vpop.permute.xlu0 %997  ;;  %v1391_v49 = vshrl.u32 %v1283_v23, 16 }
  0xae   : > { %v1368_v27 = vshrl.u32 %v1277_v15, 16  ;;  %v1371_v30 = vshll.u32 %v1277_v15, 16  ;;  %v1359_v31 = vor.u32 %v1358_v6, %v1355_v14  ;;  %v1363_v60 = vrot.slane %v1361_v17, 3 }
  0xaf   : > { %v1366_v32 = vrot.slane %v1364_v22, 4  ;;  %v1202_v10 = vsel %vm1184_vm9, %v5066_v54, %v998_v24  ;;  %v1204_v37 = vsel %vm1184_vm9, %v5067_v18, %v998_v24  ;;  %v5980_v54 = vld [vmem:[#allocation2 + $0x6c] sm:$0xf]  ;;  %v1209_v14 = vsel %vm1184_vm9, %v5069_v19, %v6441_v28 }
  0xb0   : > { %v1370_v40 = vrot.slane %v1368_v27, 3  ;;  %v1373_v29 = vrot.slane %v1371_v30, 4  ;;  %v1135_v8 = vpop.permute.xlu1 %1134  ;;  %v1279_v44 = vsel %vm1265_vm10, %v1202_v10, %v6439_v4  ;;  %v6471_v34 = vsel %vm1330_vm12, %v1352_v38, %v1359_v31  ;;  %v5981_v38 = vld [vmem:[#allocation2 + $0x80] sm:$0xf]  ;;  %v5982_v27 = vld [vmem:[#allocation2 + $0x84] sm:$0xf] }
  0xb1   : > { %v1281_v12 = vsel %vm1265_vm10, %v1204_v37, %v1135_v8  ;;  %v1376_v46 = vshrl.u32 %v1279_v44, 16  ;;  %v1379_v47 = vshll.u32 %v1279_v44, 16  ;;  %5536 = vmatprep.mubr.msk.bf16.mxu0 %vm1634_vm11, %v6471_v34  ;;  %v1367_v51 = vor.u32 %v1366_v32, %v1363_v60  ;;  %v1002_v57 = vpop.permute.xlu0 %1001 }
  0xb2   : > { %v1383_v18 = vshrl.u32 %v1281_v12, 16  ;;  %v1386_v53 = vshll.u32 %v1281_v12, 16  ;;  %v5070_v56 = vcombine.low %v662_v61, %v5980_v54  ;;  %v1374_v58 = vor.u32 %v1373_v29, %v1370_v40  ;;  %v668_v54 = vld [vmem:[#allocation2 + $0x90] sm:$0x8] }
  0xb3   : > { %v1394_v4 = vshll.u32 %v1283_v23, 16  ;;  %v1378_v2 = vrot.slane %v1376_v46, 3  ;;  %v1381_v7 = vrot.slane %v1379_v47, 4  ;;  %v5072_v23 = vcombine.low %v665_v52, %v5981_v38 }
  0xb4   : > { %v1385_v6 = vrot.slane %v1383_v18, 3  ;;  %v1388_v15 = vrot.slane %v1386_v53, 4  ;;  %v1139_v17 = vpop.permute.xlu1 %1138  ;;  %v6487_v22 = vsel %vm1330_vm12, %v1367_v51, %v1374_v58  ;;  %v5073_v30 = vcombine.low %v5982_v27, %v5982_v27 }
  0xb5   : > { %v1382_v24 = vor.u32 %v1381_v7, %v1378_v2  ;;  %v1285_v31 = vsel %vm1265_vm10, %v1209_v14, %v1139_v17  ;;  %5537 = vmatmul.mubr.msk.bf16.vlgmr.msra.gmra.mrb[0].mxu0 %vm1634_vm11, %v6487_v22  ;;  %v1212_v28 = vsel %vm1184_vm9, %v5070_v56, %v1002_v57  ;;  %v1141_v19 = vpop.permute.xlu0 %1140  ;;  %v1393_v10 = vrot.slane %v1391_v49, 3 }
  0xb6   : > { %v1389_v60 = vor.u32 %v1388_v15, %v1385_v6  ;;  %v1398_v3 = vshrl.u32 %v1285_v31, 16  ;;  %v1401_v32 = vshll.u32 %v1285_v31, 16  ;;  %5569 = vmatpush3.bf16.msra.mxu0 %v6457_v55  ;;  %v1396_v37 = vrot.slane %v1394_v4, 4 }
  0xb7   : > { %v1214_v61 = vsel %vm1184_vm9, %v5071_v41, %v1002_v57  ;;  %v1287_v40 = vsel %vm1265_vm10, %v1212_v28, %v1141_v19  ;;  %5868 = vmatprep.subr.msk.bf16.mxu0 %vm1683_vm8, %v6479_v13  ;;  %v1217_v55 = vsel %vm1184_vm9, %v5072_v23, %v6445_v42  ;;  %v1219_v57 = vsel %vm1184_vm9, %v5073_v30, %v6445_v42  ;;  %v671_v30 = vld [vmem:[#allocation2 + $0xa4] sm:$0x8] }
  0xb8   : > { %v1400_v29 = vrot.slane %v1398_v3, 3  ;;  %v1403_v8 = vrot.slane %v1401_v32, 4  ;;  %v1143_v44 = vpop.permute.xlu1 %1142  ;;  %v1406_v12 = vshrl.u32 %v1287_v40, 16  ;;  %v1409_v46 = vshll.u32 %v1287_v40, 16 }
  0xb9   : > { %v1289_v47 = vsel %vm1265_vm10, %v1214_v61, %v1143_v44  ;;  %v6505_v51 = vsel %vm1330_vm12, %v1382_v24, %v1389_v60  ;;  %v1145_v53 = vpop.permute.xlu0 %1144  ;;  %v1397_v56 = vor.u32 %v1396_v37, %v1393_v10  ;;  %v5074_v23 = vcombine.low %v668_v54, %v6187_v39  ;;  %v5983_v10 = vld [vmem:[#allocation2 + $0x98] sm:$0xf]  ;;  %v5984_v39 = vld [vmem:[#allocation2 + $0xa8] sm:$0xf] }
  0xba   : > { %v1404_v36 = vor.u32 %v1403_v8, %v1400_v29  ;;  %v1413_v41 = vshrl.u32 %v1289_v47, 16  ;;  %v1416_v52 = vshll.u32 %v1289_v47, 16  ;;  %v1408_v18 = vrot.slane %v1406_v12, 3  ;;  %5540 = vmatprep.mubr.msk.bf16.mxu0 %vm1634_vm11, %v6505_v51 }
  0xbb   : > { %v1411_v58 = vrot.slane %v1409_v46, 4  ;;  %v1291_v49 = vsel %vm1265_vm10, %v1217_v55, %v1145_v53  ;;  %v5075_v37 = vcombine.low %v5983_v10, %v5983_v10  ;;  %v5076_v29 = vcombine.low %v671_v30, %v5984_v39 }
  0xbc   : > { %v1415_v4 = vrot.slane %v1413_v41, 3  ;;  %v1418_v2 = vrot.slane %v1416_v52, 4  ;;  %v1147_v7 = vpop.permute.xlu1 %1146  ;;  %v1421_v14 = vshrl.u32 %v1291_v49, 16  ;;  %v1424_v6 = vshll.u32 %v1291_v49, 16 }
  0xbd   : > { %v1412_v15 = vor.u32 %v1411_v58, %v1408_v18  ;;  %v1293_v17 = vsel %vm1265_vm10, %v1219_v57, %v1147_v7  ;;  %v6514_v38 = vsel %vm1330_vm12, %v1397_v56, %v1404_v36  ;;  %v1006_v60 = vpop.permute.xlu0 %1005  ;;  %v5077_v46 = vcombine.low %v6196_v45, %v6196_v45 }
  0xbe   : > { %v1419_v27 = vor.u32 %v1418_v2, %v1415_v4  ;;  %v1428_v24 = vshrl.u32 %v1293_v17, 16  ;;  %v1431_v31 = vshll.u32 %v1293_v17, 16  ;;  %v1423_v42 = vrot.slane %v1421_v14, 3  ;;  %5541 = vmatmul.mubr.msk.bf16.gmra.mrb[4].mxu0 %vm1634_vm11, %v6514_v38  ;;  %v674_v4 = vld [vmem:[#allocation2 + $0xb8] sm:$0x8] }
  0xbf   : > { %v1426_v3 = vrot.slane %v1424_v6, 4  ;;  %v1222_v44 = vsel %vm1184_vm9, %v5074_v23, %v1006_v60  ;;  %v1224_v47 = vsel %vm1184_vm9, %v5075_v37, %v1006_v60  ;;  %v5079_v39 = vcombine.low %v6226_v21, %v6226_v21 }
  0xc0   : > { %v1430_v32 = vrot.slane %v1428_v24, 3  ;;  %v1433_v28 = vrot.slane %v1431_v31, 4  ;;  %v1008_v19 = vpop.permute.xlu1 %1007  ;;  %v6520_v61 = vsel %vm1330_vm12, %v1412_v15, %v1419_v27  ;;  %v5078_v31 = vcombine.low %v674_v4, %v6224_v20 }
  0xc1   : > { %v1427_v40 = vor.u32 %v1426_v3, %v1423_v42  ;;  %5544 = vmatprep.mubr.msk.bf16.mxu0 %vm1634_vm11, %v6520_v61  ;;  %v1149_v12 = vpop.permute.xlu0 %1148  ;;  %v1227_v53 = vsel %vm1184_vm9, %v5076_v29, %v1008_v19  ;;  %v1229_v2 = vsel %vm1184_vm9, %v5077_v46, %v1008_v19 }
  0xc2   : > { %v1434_v8 = vor.u32 %v1433_v28, %v1430_v32  ;;  %v1295_v55 = vsel %vm1265_vm10, %v1222_v44, %v1149_v12  ;;  %v677_v32 = vld [vmem:[#allocation2 + $0xcc] sm:$0x8]  ;;  %v5985_v44 = vld [vmem:[#allocation2 + $0xd0] sm:$0xf] }
  0xc3   : > { %v1436_v41 = vshrl.u32 %v1295_v55, 16  ;;  %v1439_v52 = vshll.u32 %v1295_v55, 16  ;;  %v5080_v12 = vcombine.low %v677_v32, %v5985_v44 }
  0xc4   : > { %v1151_v36 = vpop.permute.xlu1 %1150  ;;  %v6530_v18 = vsel %vm1330_vm12, %v1427_v40, %v1434_v8 }
  0xc5   : > { %v1297_v54 = vsel %vm1265_vm10, %v1224_v47, %v1151_v36  ;;  %v1438_v58 = vrot.slane %v1436_v41, 3  ;;  %v1441_v49 = vrot.slane %v1439_v52, 4  ;;  %v1153_v45 = vpop.permute.xlu0 %1152  ;;  %v5986_v47 = vld [vmem:[#allocation2 + $0xd4] sm:$0xf] }
  0xc6   : > { %v1443_v56 = vshrl.u32 %v1297_v54, 16  ;;  %v1446_v57 = vshll.u32 %v1297_v54, 16  ;;  %5545 = vmatmul.mubr.msk.bf16.gmra.mrb[8].mxu0 %vm1634_vm11, %v6530_v18  ;;  %v1299_v7 = vsel %vm1265_vm10, %v1227_v53, %v1153_v45  ;;  %v5081_v36 = vcombine.low %v5986_v47, %v5986_v47 }
  0xc7   : > { %v1442_v15 = vor.u32 %v1441_v49, %v1438_v58  ;;  %v1451_v23 = vshrl.u32 %v1299_v7, 16  ;;  %v1454_v24 = vshll.u32 %v1299_v7, 16 }
  0xc8   : > { %v1445_v14 = vrot.slane %v1443_v56, 3  ;;  %v1448_v6 = vrot.slane %v1446_v57, 4  ;;  %v1155_v17 = vpop.permute.xlu1 %1154 }
  0xc9   : > { %v1301_v27 = vsel %vm1265_vm10, %v1229_v2, %v1155_v17  ;;  %v1453_v3 = vrot.slane %v1451_v23, 3  ;;  %v1010_v28 = vpop.permute.xlu0 %1009  ;;  %v1456_v10 = vrot.slane %v1454_v24, 4 }
  0xca   : > { %v1449_v42 = vor.u32 %v1448_v6, %v1445_v14  ;;  %v1458_v30 = vshrl.u32 %v1301_v27, 16  ;;  %v1461_v60 = vshll.u32 %v1301_v27, 16  ;;  %v1232_v46 = vsel %vm1184_vm9, %v5078_v31, %v1010_v28  ;;  %v680_v14 = vld [vmem:[#allocation2 + $0xe0] sm:$0x8] }
  0xcb   : > { %v1457_v8 = vor.u32 %v1456_v10, %v1453_v3  ;;  %v1234_v52 = vsel %vm1184_vm9, %v5079_v39, %v1010_v28 }
  0xcc   : > { %v1460_v19 = vrot.slane %v1458_v30, 3  ;;  %v1463_v37 = vrot.slane %v1461_v60, 4  ;;  %v1012_v40 = vpop.permute.xlu1 %1011  ;;  %v6543_v29 = vsel %vm1330_vm12, %v1442_v15, %v1449_v42  ;;  %v5082_v60 = vcombine.low %v680_v14, %v6251_v48 }
  0xcd   : > { %5548 = vmatprep.mubr.msk.bf16.mxu0 %vm1634_vm11, %v6543_v29  ;;  %v1157_v55 = vpop.permute.xlu0 %1156  ;;  %v1237_v57 = vsel %vm1184_vm9, %v5080_v12, %v1012_v40  ;;  %v1239_v6 = vsel %vm1184_vm9, %v5081_v36, %v1012_v40  ;;  %v5083_v12 = vcombine.low %v6253_v50, %v6253_v50 }
  0xce   : > { %v1464_v20 = vor.u32 %v1463_v37, %v1460_v19  ;;  %v1303_v41 = vsel %vm1265_vm10, %v1232_v46, %v1157_v55  ;;  %v683_v19 = vld [vmem:[#allocation2 + $0xf4] sm:$0x8]  ;;  %v5987_v55 = vld [vmem:[#allocation2 + $0xf8] sm:$0xf] }
  0xcf   : > { %v1466_v53 = vshrl.u32 %v1303_v41, 16  ;;  %v1469_v54 = vshll.u32 %v1303_v41, 16  ;;  %v5084_v47 = vcombine.low %v683_v19, %v5987_v55 }
  0xd0   : > { %v1159_v21 = vpop.permute.xlu1 %1158  ;;  %v6551_v56 = vsel %vm1330_vm12, %v1457_v8, %v1464_v20 }
  0xd1   : > { %v1305_v58 = vsel %vm1265_vm10, %v1234_v52, %v1159_v21  ;;  %5549 = vmatmul.mubr.msk.bf16.gmra.mrb[12].mxu0 %vm1634_vm11, %v6551_v56  ;;  %v1468_v4 = vrot.slane %v1466_v53, 3  ;;  %v1471_v2 = vrot.slane %v1469_v54, 4  ;;  %v1161_v7 = vpop.permute.xlu0 %1160  ;;  %v5988_v52 = vld [vmem:[#allocation2 + $0xfc] sm:$0xf] }
  0xd2   : > { %v1473_v49 = vshrl.u32 %v1305_v58, 16  ;;  %v1476_v45 = vshll.u32 %v1305_v58, 16  ;;  %v1307_v15 = vsel %vm1265_vm10, %v1237_v57, %v1161_v7  ;;  %v5085_v21 = vcombine.low %v5988_v52, %v5988_v52 }
  0xd3   : > { %v1472_v27 = vor.u32 %v1471_v2, %v1468_v4  ;;  %v1481_v31 = vshrl.u32 %v1307_v15, 16  ;;  %v1484_v30 = vshll.u32 %v1307_v15, 16 }
  0xd4   : > { %v1475_v17 = vrot.slane %v1473_v49, 3  ;;  %v1478_v23 = vrot.slane %v1476_v45, 4  ;;  %v1163_v24 = vpop.permute.xlu1 %1162 }
  0xd5   : > { %v1309_v42 = vsel %vm1265_vm10, %v1239_v6, %v1163_v24  ;;  %v1483_v10 = vrot.slane %v1481_v31, 3  ;;  %v1014_v37 = vpop.permute.xlu0 %1013  ;;  %v1486_v39 = vrot.slane %v1484_v30, 4 }
  0xd6   : > { %v1479_v3 = vor.u32 %v1478_v23, %v1475_v17  ;;  %v1488_v32 = vshrl.u32 %v1309_v42, 16  ;;  %v1491_v28 = vshll.u32 %v1309_v42, 16  ;;  %v1242_v36 = vsel %vm1184_vm9, %v5082_v60, %v1014_v37  ;;  %v686_v17 = vld [vmem:[#allocation2 + $0x108] sm:$0x8] }
  0xd7   : > { %v1487_v46 = vor.u32 %v1486_v39, %v1483_v10  ;;  %v1244_v54 = vsel %vm1184_vm9, %v5083_v12, %v1014_v37 }
  0xd8   : > { %v1490_v40 = vrot.slane %v1488_v32, 3  ;;  %v1493_v8 = vrot.slane %v1491_v28, 4  ;;  %v1016_v44 = vpop.permute.xlu1 %1015  ;;  %v6564_v20 = vsel %vm1330_vm12, %v1472_v27, %v1479_v3  ;;  %v5086_v28 = vcombine.low %v686_v17, %v6297_v5 }
  0xd9   : > { %5552 = vmatprep.mubr.msk.bf16.mxu0 %vm1634_vm11, %v6564_v20  ;;  %v1165_v41 = vpop.permute.xlu0 %1164  ;;  %v1247_v45 = vsel %vm1184_vm9, %v5084_v47, %v1016_v44  ;;  %v1249_v23 = vsel %vm1184_vm9, %v5085_v21, %v1016_v44  ;;  %v5087_v47 = vcombine.low %v6300_v1, %v6300_v1 }
  0xda   : > { %v1494_v48 = vor.u32 %v1493_v8, %v1490_v40  ;;  %v1311_v53 = vsel %vm1265_vm10, %v1242_v36, %v1165_v41  ;;  %v689_v40 = vld [vmem:[#allocation2 + $0x11c] sm:$0x8] }
  0xdb   : > { %v1496_v57 = vshrl.u32 %v1311_v53, 16  ;;  %v1499_v58 = vshll.u32 %v1311_v53, 16  ;;  %v5088_v41 = vcombine.low %v689_v40, %v6285_v0  ;;  %v5089_v53 = vcombine.low %v6288_v33, %v6288_v33  ;;  %v692_v0 = vld [vmem:[#allocation2 + $0x130] sm:$0x8] }
  0xdc   : > { %v1167_v50 = vpop.permute.xlu1 %1166  ;;  %v6572_v49 = vsel %vm1330_vm12, %v1487_v46, %v1494_v48 }
  0xdd   : > { %v1313_v4 = vsel %vm1265_vm10, %v1244_v54, %v1167_v50  ;;  %5553 = vmatmul.mubr.msk.bf16.gmra.mrb[16].mxu0 %vm1634_vm11, %v6572_v49  ;;  %v1498_v14 = vrot.slane %v1496_v57, 3  ;;  %v1501_v6 = vrot.slane %v1499_v58, 4  ;;  %v1169_v15 = vpop.permute.xlu0 %1168 }
  0xde   : > { %v1503_v2 = vshrl.u32 %v1313_v4, 16  ;;  %v1506_v7 = vshll.u32 %v1313_v4, 16  ;;  %v1315_v27 = vsel %vm1265_vm10, %v1247_v45, %v1169_v15 }
  0xdf   : > { %v1502_v42 = vor.u32 %v1501_v6, %v1498_v14  ;;  %v1511_v60 = vshrl.u32 %v1315_v27, 16  ;;  %v1514_v32 = vshll.u32 %v1315_v27, 16 }
  0xe0   : > { %v1505_v24 = vrot.slane %v1503_v2, 3  ;;  %v1508_v31 = vrot.slane %v1506_v7, 4  ;;  %v1171_v30 = vpop.permute.xlu1 %1170  ;;  %v388_v7 = vld [vmem:[#allocation2 + $0x15c] sm:$0x1] }
  0xe1   : > { %v1317_v3 = vsel %vm1265_vm10, %v1249_v23, %v1171_v30  ;;  %v1513_v39 = vrot.slane %v1511_v60, 3  ;;  %v1018_v8 = vpop.permute.xlu0 %1017  ;;  %v1516_v12 = vrot.slane %v1514_v32, 4 }
  0xe2   : > { %v1509_v10 = vor.u32 %v1508_v31, %v1505_v24  ;;  %v1518_v19 = vshrl.u32 %v1317_v3, 16  ;;  %v1521_v37 = vshll.u32 %v1317_v3, 16  ;;  %v1252_v52 = vsel %vm1184_vm9, %v5086_v28, %v1018_v8 }
  0xe3   : > { %v1517_v36 = vor.u32 %v1516_v12, %v1513_v39  ;;  %v1254_v1 = vsel %vm1184_vm9, %v5087_v47, %v1018_v8  ;;  %v5090_v24 = vcombine.low %v692_v0, %v6348_v43  ;;  %v424_v31 = vrot.slane %v388_v7, 5 }
  0xe4   : > { %v1520_v44 = vrot.slane %v1518_v19, 3  ;;  %v1523_v46 = vrot.slane %v1521_v37, 4  ;;  %v1020_v55 = vpop.permute.xlu1 %1019  ;;  %v6585_v48 = vsel %vm1330_vm12, %v1502_v42, %v1509_v10  ;;  %v497_v42 = vld [vmem:[#allocation2 + $0x158] sm:$0x8]  ;;  %v5091_v37 = vcombine.low %v6350_v59, %v6350_v59 }
  0xe5   : > { %5556 = vmatprep.mubr.msk.bf16.mxu0 %vm1634_vm11, %v6585_v48  ;;  %v1173_v21 = vpop.permute.xlu0 %1172  ;;  %v1257_v4 = vsel %vm1184_vm9, %v5088_v41, %v1020_v55  ;;  %v1259_v23 = vsel %vm1184_vm9, %v5089_v53, %v1020_v55  ;;  %v498_v39 = vsel %vm6277_vm7, %v424_v31, %v497_v42 }
  0xe6   : > { %v1524_v5 = vor.u32 %v1523_v46, %v1520_v44  ;;  %v1319_v54 = vsel %vm1265_vm10, %v1252_v52, %v1173_v21  ;;  %v695_v46 = vld [vmem:[#allocation2 + $0x144] sm:$0x8]  ;;  %499 = vst [vmem:[#allocation2 + $0x158] sm:$0x8] %v498_v39 }
  0xe7   : > { %v1526_v57 = vshrl.u32 %v1319_v54, 16  ;;  %v1529_v58 = vshll.u32 %v1319_v54, 16  ;;  %v5124_v53 = vcombine.low %v695_v46, %v6378_v63 }
  0xe8   : > { %v1175_v50 = vpop.permute.xlu1 %1174  ;;  %v6596_v45 = vsel %vm1330_vm12, %v1517_v36, %v1524_v5 }
  0xe9   : > { %v1321_v2 = vsel %vm1265_vm10, %v1254_v1, %v1175_v50  ;;  %5557 = vmatmul.mubr.msk.bf16.gmra.mrb[20].mxu0 %vm1634_vm11, %v6596_v45  ;;  %v1528_v6 = vrot.slane %v1526_v57, 3  ;;  %v1531_v15 = vrot.slane %v1529_v58, 4  ;;  %v1177_v17 = vpop.permute.xlu0 %1176 }
  0xea   : > { %v1533_v33 = vshrl.u32 %v1321_v2, 16  ;;  %v1536_v14 = vshll.u32 %v1321_v2, 16  ;;  %v1323_v27 = vsel %vm1265_vm10, %v1257_v4, %v1177_v17  ;;  %v5125_v4 = vcombine.low %v6380_v35, %v6380_v35 }
  0xeb   : > { %v1532_v3 = vor.u32 %v1531_v15, %v1528_v6  ;;  %v1541_v28 = vshrl.u32 %v1323_v27, 16  ;;  %v1544_v19 = vshll.u32 %v1323_v27, 16 }
  0xec   : > { %v1535_v30 = vrot.slane %v1533_v33, 3  ;;  %v1538_v60 = vrot.slane %v1536_v14, 4  ;;  %v1179_v32 = vpop.permute.xlu1 %1178  ;;  %v647_v14 = vld [vmem:[#allocation2 + $0x4] sm:$0x8] }
  0xed   : > { %v1325_v10 = vsel %vm1265_vm10, %v1259_v23, %v1179_v32  ;;  %v1543_v43 = vrot.slane %v1541_v28, 3  ;;  %v1022_v44 = vpop.permute.xlu0 %1021  ;;  %v1546_v55 = vrot.slane %v1544_v19, 4  ;;  %v5060_v35 = vcombine.low %v647_v14, %v6404_v62 }
  0xee   : > { %v1539_v40 = vor.u32 %v1538_v60, %v1535_v30  ;;  %v1548_v8 = vshrl.u32 %v1325_v10, 16  ;;  %v1551_v12 = vshll.u32 %v1325_v10, 16  ;;  %v1262_v47 = vsel %vm1184_vm9, %v5090_v24, %v1022_v44 }
  0xef   : > { %v1547_v59 = vor.u32 %v1546_v55, %v1543_v43  ;;  %v1264_v1 = vsel %vm1184_vm9, %v5091_v37, %v1022_v44  ;;  %v5061_v19 = vcombine.low %v6406_v16, %v6406_v16  ;;  %v2085_v14 = vsel %vm1683_vm8, %v6479_v13, 0 }
  0xf0   : > { %v1550_v36 = vrot.slane %v1548_v8, 3  ;;  %v1553_v41 = vrot.slane %v1551_v12, 4  ;;  %v1181_v5 = vpop.permute.xlu1 %1180  ;;  %v6612_v52 = vsel %vm1330_vm12, %v1532_v3, %v1539_v40 }
  0xf1   : > { %v1327_v21 = vsel %vm1265_vm10, %v1262_v47, %v1181_v5  ;;  %5560 = vmatprep.mubr.msk.bf16.mxu0 %vm1634_vm11, %v6612_v52  ;;  %v1183_v58 = vpop.permute.xlu0 %1182 }
  0xf2   : > { %v1554_v54 = vor.u32 %v1553_v41, %v1550_v36  ;;  %v1556_v50 = vshrl.u32 %v1327_v21, 16  ;;  %v1559_v57 = vshll.u32 %v1327_v21, 16  ;;  %v1329_v0 = vsel %vm1265_vm10, %v1264_v1, %v1183_v58 }
  0xf3   : > { %v1563_v7 = vshrl.u32 %v1329_v0, 16  ;;  %v1566_v33 = vshll.u32 %v1329_v0, 16 }
  0xf4   : > { %v1591_v2 = vpop.permute.xlu1 %1590  ;;  %v1558_v6 = vrot.slane %v1556_v50, 3  ;;  %v1561_v15 = vrot.slane %v1559_v57, 4  ;;  %v6623_v17 = vsel %vm1330_vm12, %v1547_v59, %v1554_v54 }
  0xf5   : > { %v1604_v63 = vsel %vm1184_vm9, %v5124_v53, %v1591_v2  ;;  %v1565_v23 = vrot.slane %v1563_v7, 3  ;;  %v1568_v27 = vrot.slane %v1566_v33, 4  ;;  %5561 = vmatmul.mubr.msk.bf16.gmra.mrb[24].mxu0 %vm1634_vm11, %v6623_v17  ;;  %v1599_v24 = vpop.permute.xlu0 %1598  ;;  %v1606_v42 = vsel %vm1184_vm9, %v5125_v4, %v1591_v2 }
  0xf6   : > { %v1608_v31 = vsel %vm1265_vm10, %v1604_v63, %v1599_v24  ;;  %v1562_v28 = vor.u32 %v1561_v15, %v1558_v6 }
  0xf7   : > { %v1569_v30 = vor.u32 %v1568_v27, %v1565_v23  ;;  %v1611_v3 = vshrl.u32 %v1608_v31, 16  ;;  %v1614_v32 = vshll.u32 %v1608_v31, 16 }
  0xf8   : > { %v1601_v60 = vpop.permute.xlu1 %1600 }
  0xf9   : > { %v1610_v10 = vsel %vm1265_vm10, %v1606_v42, %v1601_v60  ;;  %v1613_v40 = vrot.slane %v1611_v3, 3  ;;  %v1616_v8 = vrot.slane %v1614_v32, 4  ;;  %v992_v12 = vpop.permute.xlu0 %991  ;;  %v6636_v62 = vsel %vm1330_vm12, %v1562_v28, %v1569_v30 }
  0xfa   : > { %v1618_v37 = vshrl.u32 %v1610_v10, 16  ;;  %v1621_v39 = vshll.u32 %v1610_v10, 16  ;;  %v1187_v43 = vsel %vm1184_vm9, %v5060_v35, %v992_v12  ;;  %5564 = vmatprep.mubr.msk.bf16.mxu0 %vm1634_vm11, %v6636_v62  ;;  %v1189_v41 = vsel %vm1184_vm9, %v5061_v19, %v992_v12 }
  0xfb   : > { %v1617_v47 = vor.u32 %v1616_v8, %v1613_v40 }
  0xfc   : > { %v1620_v44 = vrot.slane %v1618_v37, 3  ;;  %v1623_v46 = vrot.slane %v1621_v39, 4  ;;  %v1121_v55 = vpop.permute.xlu1 %1120 }
  0xfd   : > { %v1267_v36 = vsel %vm1265_vm10, %v1187_v43, %v1121_v55  ;;  %v1123_v21 = vpop.permute.xlu0 %1122 }
  0xfe   : > { %v1624_v16 = vor.u32 %v1623_v46, %v1620_v44  ;;  %v1331_v5 = vshrl.u32 %v1267_v36, 16  ;;  %v1334_v59 = vshll.u32 %v1267_v36, 16  ;;  %v1269_v53 = vsel %vm1265_vm10, %v1189_v41, %v1123_v21 }
  0xff   : > { %v1338_v50 = vshrl.u32 %v1269_v53, 16  ;;  %v1341_v57 = vshll.u32 %v1269_v53, 16 }
 0x100   : > { %v1333_v54 = vrot.slane %v1331_v5, 3  ;;  %v1336_v1 = vrot.slane %v1334_v59, 4  ;;  %v1625_v58 = vsel %vm1330_vm12, %v1617_v47, %v1624_v16  ;;  %v2038_v13 = vpop.permute.xlu1 %2037 }
 0x101   : > { %v1340_v0 = vrot.slane %v1338_v50, 3  ;;  %v1343_v4 = vrot.slane %v1341_v57, 4  ;;  %5565 = vmatmul.mubr.msk.bf16.gmra.mrb[28].mxu0 %vm1634_vm11, %v1625_v58 }
 0x102   : > { %v1337_v2 = vor.u32 %v1336_v1, %v1333_v54 }
 0x103   : > { %v1344_v7 = vor.u32 %v1343_v4, %v1340_v0 }
 0x105   : > { %v1345_v33 = vsel %vm1330_vm12, %v1337_v2, %v1344_v7 }
 0x106   : > { %5570 = vmatprep.mubr.msk.bf16.mxu0 %vm1634_vm11, %v1345_v33 }
 0x109   : > { %5571 = vmatmul.mubr.msk.bf16.vlgmr.msra.gmra.mrb[0].mxu0 %vm1634_vm11, %v6471_v34  ;;  %v698_v34 = vld [vmem:[#allocation2 + $0x158] sm:$0x8] }
 0x10a   : > { %5603 = vmatpush3.bf16.msra.mxu0 %v2085_v14  ;;  %5574 = vmatprep.mubr.msk.bf16.mxu0 %vm1634_vm11, %v6487_v22 }
 0x111   : > { %5575 = vmatmul.mubr.msk.bf16.gmra.mrb[4].mxu0 %vm1634_vm11, %v6505_v51 }
 0x112   : > { %5578 = vmatprep.mubr.msk.bf16.mxu0 %vm1634_vm11, %v6514_v38 }
 0x119   : > { %5579 = vmatmul.mubr.msk.bf16.gmra.mrb[8].mxu0 %vm1634_vm11, %v6520_v61 }
 0x11a   : > { %5582 = vmatprep.mubr.msk.bf16.mxu0 %vm1634_vm11, %v6530_v18 }
 0x121   : > { %5583 = vmatmul.mubr.msk.bf16.gmra.mrb[12].mxu0 %vm1634_vm11, %v6543_v29 }
 0x122   : > { %5586 = vmatprep.mubr.msk.bf16.mxu0 %vm1634_vm11, %v6551_v56 }
 0x129   : > { %5587 = vmatmul.mubr.msk.bf16.gmra.mrb[16].mxu0 %vm1634_vm11, %v6564_v20 }
 0x12a   : > { %5590 = vmatprep.mubr.msk.bf16.mxu0 %vm1634_vm11, %v6572_v49 }
 0x131   : > { %5591 = vmatmul.mubr.msk.bf16.gmra.mrb[20].mxu0 %vm1634_vm11, %v6585_v48 }
 0x132   : > { %5594 = vmatprep.mubr.msk.bf16.mxu0 %vm1634_vm11, %v6596_v45 }
 0x139   : > { %5595 = vmatmul.mubr.msk.bf16.gmra.mrb[24].mxu0 %vm1634_vm11, %v6612_v52 }
 0x13a   : > { %5598 = vmatprep.mubr.msk.bf16.mxu0 %vm1634_vm11, %v6623_v17 }
 0x141   : > { %5599 = vmatmul.mubr.msk.bf16.gmra.mrb[28].mxu0 %vm1634_vm11, %v6636_v62 }
 0x142   : > { %5604 = vmatprep.mubr.msk.bf16.mxu0 %vm1634_vm11, %v6487_v22  ;;  %v5164_v22 = vcombine.low %v698_v34, %v6417_v25 }
 0x149   : > { %5605 = vmatmul.mubr.msk.bf16.vlgmr.msra.gmra.mrb[0].mxu0 %vm1634_vm11, %v6505_v51  ;;  %v5165_v51 = vcombine.low %v6419_v26, %v6419_v26 }
 0x14a   : > { %5608 = vmatprep.mubr.msk.bf16.mxu0 %vm1634_vm11, %v6514_v38  ;;  %v2051_v38 = vsel %vm1184_vm9, %v5164_v22, %v2038_v13 }
 0x151   : > { %5609 = vmatmul.mubr.msk.bf16.gmra.mrb[4].mxu0 %vm1634_vm11, %v6520_v61  ;;  %v2053_v61 = vsel %vm1184_vm9, %v5165_v51, %v2038_v13 }
 0x152   : > { %5612 = vmatprep.mubr.msk.bf16.mxu0 %vm1634_vm11, %v6530_v18  ;;  %v2048_v18 = vpop.permute.xlu1 %2047 }
 0x159   : > { %5613 = vmatmul.mubr.msk.bf16.gmra.mrb[8].mxu0 %vm1634_vm11, %v6543_v29  ;;  %v2046_v29 = vpop.permute.xlu0 %2045 }
 0x15a   : > { %5616 = vmatprep.mubr.msk.bf16.mxu0 %vm1634_vm11, %v6551_v56  ;;  %v2057_v56 = vsel %vm1265_vm10, %v2053_v61, %v2048_v18 }
 0x15b   : > { %v2065_v25 = vshrl.u32 %v2057_v56, 16 }
 0x161   : > { %5617 = vmatmul.mubr.msk.bf16.gmra.mrb[12].mxu0 %vm1634_vm11, %v6564_v20  ;;  %v2055_v20 = vsel %vm1265_vm10, %v2051_v38, %v2046_v29 }
 0x162   : > { %5620 = vmatprep.mubr.msk.bf16.mxu0 %vm1634_vm11, %v6572_v49  ;;  %v2068_v49 = vshll.u32 %v2057_v56, 16  ;;  %v2061_v26 = vshll.u32 %v2055_v20, 16 }
 0x164   : > { %v2070_v6 = vrot.slane %v2068_v49, 4  ;;  %v2063_v63 = vrot.slane %v2061_v26, 4 }
 0x169   : > { %5621 = vmatmul.mubr.msk.bf16.gmra.mrb[16].mxu0 %vm1634_vm11, %v6585_v48  ;;  %v2058_v48 = vshrl.u32 %v2055_v20, 16 }
 0x16a   : > { %5624 = vmatprep.mubr.msk.bf16.mxu0 %vm1634_vm11, %v6596_v45  ;;  %v2067_v45 = vrot.slane %v2065_v25, 3 }
 0x16b   : > { %v2060_v15 = vrot.slane %v2058_v48, 3 }
 0x16d   : > { %v2064_v23 = vor.u32 %v2063_v63, %v2060_v15 }
 0x171   : > { %5625 = vmatmul.mubr.msk.bf16.gmra.mrb[20].mxu0 %vm1634_vm11, %v6612_v52  ;;  %v2071_v52 = vor.u32 %v2070_v6, %v2067_v45 }
 0x172   : > { %5628 = vmatprep.mubr.msk.bf16.mxu0 %vm1634_vm11, %v6623_v17 }
 0x173   : > { %v2072_v27 = vsel %vm1330_vm12, %v2064_v23, %v2071_v52 }
 0x179   : > { %5629 = vmatmul.mubr.msk.bf16.gmra.mrb[24].mxu0 %vm1634_vm11, %v6636_v62 }
 0x17a   : > { %5632 = vmatprep.mubr.msk.bf16.mxu0 %vm1634_vm11, %v1625_v58 }
 0x181   : > { %5633 = vmatmul.mubr.msk.bf16.gmra.mrb[28].mxu0 %vm1634_vm11, %v2072_v27 }
 0x21c   : > { %v6717_v17 = vpop.f32.mrb[0].mxu0 }
 0x21d   : > { %v6719_v24 = vpop.f32.mrb[1].mxu0  ;;  %v2283_v3 = vsel %vm1184_vm9, %v6717_v17, 0.0 }
 0x21e   : > { %v6721_v31 = vpop.f32.mrb[2].mxu0  ;;  %v2280_v42 = vsel %vm1184_vm9, %v6719_v24, 0.0 }
 0x21f   : > { %v6723_v35 = vpop.f32.mrb[3].mxu0  ;;  %v2285_v28 = vsel %vm1184_vm9, %v6721_v31, 0.0 }
 0x220   : > { %v2281_v30 = vsel %vm1184_vm9, %v6723_v35, 0.0 }
 0x221   : > { %v2282_v60 = vadd.f32 %v2281_v30, %v2280_v42 }
 0x223   : > { %v2284_v32 = vadd.f32 %v2283_v3, %v2282_v60 }
 0x224   : > { %v6733_v10 = vpop.f32.mrb[4].mxu0 }
 0x225   : > { %v6735_v19 = vpop.f32.mrb[5].mxu0  ;;  %v2286_v37 = vadd.f32 %v2285_v28, %v2284_v32  ;;  %v2291_v44 = vsel %vm1184_vm9, %v6733_v10, 0.0 }
 0x226   : > { %v2287_v39 = vsel %vm1184_vm9, %v6735_v19, 0.0  ;;  %v6739_v40 = vpop.f32.mrb[6].mxu0 }
 0x227   : > { %v2288_v8 = vadd.f32 %v2287_v39, %v2286_v37  ;;  %v6741_v12 = vpop.f32.mrb[7].mxu0  ;;  %v2293_v55 = vsel %vm1184_vm9, %v6739_v40, 0.0 }
 0x228   : > { %v2289_v43 = vsel %vm1184_vm9, %v6741_v12, 0.0 }
 0x229   : > { %v2290_v62 = vadd.f32 %v2289_v43, %v2288_v8 }
 0x22b   : > { %v2292_v46 = vadd.f32 %v2291_v44, %v2290_v62 }
 0x22c   : > { %v6749_v47 = vpop.f32.mrb[8].mxu0 }
 0x22d   : > { %v6751_v36 = vpop.f32.mrb[9].mxu0  ;;  %v2294_v16 = vadd.f32 %v2293_v55, %v2292_v46  ;;  %v2299_v1 = vsel %vm1184_vm9, %v6749_v47, 0.0 }
 0x22e   : > { %v2295_v41 = vsel %vm1184_vm9, %v6751_v36, 0.0  ;;  %v6755_v5 = vpop.f32.mrb[10].mxu0 }
 0x22f   : > { %v2296_v59 = vadd.f32 %v2295_v41, %v2294_v16  ;;  %v6757_v21 = vpop.f32.mrb[11].mxu0  ;;  %v2301_v57 = vsel %vm1184_vm9, %v6755_v5, 0.0 }
 0x230   : > { %v2297_v53 = vsel %vm1184_vm9, %v6757_v21, 0.0 }
 0x231   : > { %v2298_v54 = vadd.f32 %v2297_v53, %v2296_v59 }
 0x233   : > { %v2300_v50 = vadd.f32 %v2299_v1, %v2298_v54 }
 0x234   : > { %v6765_v58 = vpop.f32.mrb[12].mxu0 }
 0x235   : > { %v6767_v0 = vpop.f32.mrb[13].mxu0  ;;  %v2302_v4 = vadd.f32 %v2301_v57, %v2300_v50  ;;  %v2307_v22 = vsel %vm1184_vm9, %v6765_v58, 0.0 }
 0x236   : > { %v2303_v2 = vsel %vm1184_vm9, %v6767_v0, 0.0  ;;  %v6771_v7 = vpop.f32.mrb[14].mxu0 }
 0x237   : > { %v2304_v33 = vadd.f32 %v2303_v2, %v2302_v4  ;;  %v6773_v14 = vpop.f32.mrb[15].mxu0  ;;  %v2309_v38 = vsel %vm1184_vm9, %v6771_v7, 0.0 }
 0x238   : > { %v2305_v34 = vsel %vm1184_vm9, %v6773_v14, 0.0 }
 0x239   : > { %v2306_v13 = vadd.f32 %v2305_v34, %v2304_v33 }
 0x23b   : > { %v2308_v51 = vadd.f32 %v2307_v22, %v2306_v13 }
 0x23c   : > { %v6781_v61 = vpop.f32.mrb[16].mxu0 }
 0x23d   : > { %v6783_v18 = vpop.f32.mrb[17].mxu0  ;;  %v2310_v29 = vadd.f32 %v2309_v38, %v2308_v51  ;;  %v2315_v45 = vsel %vm1184_vm9, %v6781_v61, 0.0 }
 0x23e   : > { %v2311_v56 = vsel %vm1184_vm9, %v6783_v18, 0.0  ;;  %v6787_v20 = vpop.f32.mrb[18].mxu0 }
 0x23f   : > { %v2312_v25 = vadd.f32 %v2311_v56, %v2310_v29  ;;  %v6789_v49 = vpop.f32.mrb[19].mxu0  ;;  %v2317_v15 = vsel %vm1184_vm9, %v6787_v20, 0.0 }
 0x240   : > { %v2313_v48 = vsel %vm1184_vm9, %v6789_v49, 0.0 }
 0x241   : > { %v2314_v26 = vadd.f32 %v2313_v48, %v2312_v25 }
 0x243   : > { %v2316_v6 = vadd.f32 %v2315_v45, %v2314_v26 }
 0x244   : > { %v6797_v63 = vpop.f32.mrb[20].mxu0 }
 0x245   : > { %v6799_v52 = vpop.f32.mrb[21].mxu0  ;;  %v2318_v23 = vadd.f32 %v2317_v15, %v2316_v6  ;;  %v2323_v28 = vsel %vm1184_vm9, %v6797_v63, 0.0 }
 0x246   : > { %v2319_v27 = vsel %vm1184_vm9, %v6799_v52, 0.0  ;;  %v6803_v42 = vpop.f32.mrb[22].mxu0 }
 0x247   : > { %v2320_v30 = vadd.f32 %v2319_v27, %v2318_v23  ;;  %v2204_v60 = vpop.f32.mrb[23].mxu0  ;;  %v2325_v39 = vsel %vm1184_vm9, %v6803_v42, 0.0 }
 0x248   : > { %v2321_v3 = vsel %vm1184_vm9, %v2204_v60, 0.0 }
 0x249   : > { %v2322_v32 = vadd.f32 %v2321_v3, %v2320_v30 }
 0x24b   : > { %v2324_v37 = vadd.f32 %v2323_v28, %v2322_v32 }
 0x24c   : > { %v5630_v8 = vpop.f32.mrb[24].mxu0 }
 0x24d   : > { %v2217_v43 = vpop.f32.mrb[25].mxu0  ;;  %v2326_v62 = vadd.f32 %v2325_v39, %v2324_v37  ;;  %v2331_v53 = vsel %vm1184_vm9, %v5630_v8, 0.0 }
 0x24e   : > { %v2327_v44 = vsel %vm1184_vm9, %v2217_v43, 0.0  ;;  %v5631_v46 = vpop.f32.mrb[26].mxu0 }
 0x24f   : > { %v2328_v55 = vadd.f32 %v2327_v44, %v2326_v62  ;;  %v2220_v16 = vpop.f32.mrb[27].mxu0  ;;  %v2333_v1 = vsel %vm1184_vm9, %v5631_v46, 0.0 }
 0x250   : > { %v2329_v41 = vsel %vm1184_vm9, %v2220_v16, 0.0 }
 0x251   : > { %v2330_v59 = vadd.f32 %v2329_v41, %v2328_v55 }
 0x253   : > { %v2332_v54 = vadd.f32 %v2331_v53, %v2330_v59 }
 0x254   : > { %v5634_v50 = vpop.f32.mrb[28].mxu0 }
 0x255   : > { %v2233_v57 = vpop.f32.mrb[29].mxu0  ;;  %v2334_v4 = vadd.f32 %v2333_v1, %v2332_v54  ;;  %v2339_v38 = vsel %vm1184_vm9, %v5634_v50, 0.0 }
 0x256   : > { %v2335_v2 = vsel %vm1184_vm9, %v2233_v57, 0.0  ;;  %v5635_v33 = vpop.f32.mrb[30].mxu0 }
 0x257   : > { %v2336_v34 = vadd.f32 %v2335_v2, %v2334_v4  ;;  %v2236_v13 = vpop.f32.mrb[31].mxu0  ;;  %v2341_v56 = vsel %vm1184_vm9, %v5635_v33, 0.0 }
 0x258   : > { %v2337_v22 = vsel %vm1184_vm9, %v2236_v13, 0.0 }
 0x259   : > { %v2338_v51 = vadd.f32 %v2337_v22, %v2336_v34 }
 0x25b   : > { %v2340_v29 = vadd.f32 %v2339_v38, %v2338_v51 }
 0x25d   : > { %v2342_v25 = vadd.f32 %v2341_v56, %v2340_v29 }
 0x25f   : > { %v2343_v48 = vrot.slane %v2342_v25, 4 }
 0x261   : > { %v2344_v26 = vadd.f32 %v2343_v48, %v2342_v25 }
 0x263   : > { %v2345_v45 = vrot.slane %v2344_v26, 2 }
 0x265   : > { %v2346_v6 = vadd.f32 %v2345_v45, %v2344_v26 }
 0x267   : > { %v2347_v15 = vrot.slane %v2346_v6, 1 }
 0x269   : > { %v2348_v23 = vadd.f32 %v2347_v15, %v2346_v6 }
 0x26b   : > { %v2350_v27 = vmul.f32 0.00390625, %v2348_v23 }
 0x26d   : > { %v6819_v30 = vsub.f32 %v6719_v24, %v2350_v27  ;;  %v6822_v3 = vsub.f32 %v6723_v35, %v2350_v27  ;;  %v6825_v32 = vsub.f32 %v6717_v17, %v2350_v27  ;;  %v6828_v28 = vsub.f32 %v6721_v31, %v2350_v27 }
 0x26e   : > { %v6831_v37 = vsub.f32 %v6735_v19, %v2350_v27  ;;  %v6834_v39 = vsub.f32 %v6741_v12, %v2350_v27  ;;  %v6837_v62 = vsub.f32 %v6733_v10, %v2350_v27  ;;  %v6840_v24 = vsub.f32 %v6739_v40, %v2350_v27 }
 0x26f   : > { %v6843_v35 = vsub.f32 %v6751_v36, %v2350_v27  ;;  %v6846_v17 = vsub.f32 %v6757_v21, %v2350_v27  ;;  %v6849_v31 = vsub.f32 %v6749_v47, %v2350_v27  ;;  %v6852_v19 = vsub.f32 %v6755_v5, %v2350_v27 }
 0x270   : > { %v6855_v12 = vsub.f32 %v6767_v0, %v2350_v27  ;;  %v6858_v10 = vsub.f32 %v6773_v14, %v2350_v27  ;;  %v6861_v40 = vsub.f32 %v6765_v58, %v2350_v27  ;;  %v6864_v36 = vsub.f32 %v6771_v7, %v2350_v27 }
 0x271   : > { %v6867_v21 = vsub.f32 %v6783_v18, %v2350_v27  ;;  %v6870_v47 = vsub.f32 %v6789_v49, %v2350_v27  ;;  %v6873_v5 = vsub.f32 %v6781_v61, %v2350_v27  ;;  %v6876_v0 = vsub.f32 %v6787_v20, %v2350_v27 }
 0x272   : > { %v6879_v14 = vsub.f32 %v6799_v52, %v2350_v27  ;;  %v6881_v58 = vsub.f32 %v2204_v60, %v2350_v27  ;;  %v6884_v7 = vsub.f32 %v6797_v63, %v2350_v27  ;;  %v6887_v18 = vsub.f32 %v6803_v42, %v2350_v27 }
 0x273   : > { %v6889_v44 = vsub.f32 %v2217_v43, %v2350_v27  ;;  %v6891_v49 = vsub.f32 %v2220_v16, %v2350_v27  ;;  %v6893_v61 = vsub.f32 %v5630_v8, %v2350_v27  ;;  %v6895_v55 = vsub.f32 %v5631_v46, %v2350_v27 }
 0x274   : > { %v6897_v20 = vsub.f32 %v2233_v57, %v2350_v27  ;;  %v6899_v52 = vsub.f32 %v2236_v13, %v2350_v27  ;;  %v6901_v60 = vsub.f32 %v5634_v50, %v2350_v27  ;;  %v6903_v41 = vsub.f32 %v5635_v33, %v2350_v27 }
 0x275   : > { %v2383_v63 = vmul.f32 %v6819_v30, %v6819_v30  ;;  %v2384_v42 = vmul.f32 %v6822_v3, %v6822_v3  ;;  %v2385_v8 = vmul.f32 %v6825_v32, %v6825_v32  ;;  %v2386_v43 = vmul.f32 %v6828_v28, %v6828_v28 }
 0x276   : > { %v2387_v53 = vmul.f32 %v6831_v37, %v6831_v37  ;;  %v2388_v50 = vmul.f32 %v6834_v39, %v6834_v39  ;;  %v2389_v2 = vmul.f32 %v6837_v62, %v6837_v62  ;;  %v2390_v13 = vmul.f32 %v6840_v24, %v6840_v24 }
 0x277   : > { %v2415_v46 = vsel %vm1184_vm9, %v2383_v63, 0.0  ;;  %v2416_v16 = vsel %vm1184_vm9, %v2384_v42, 0.0  ;;  %v2418_v54 = vsel %vm1184_vm9, %v2385_v8, 0.0  ;;  %v2420_v57 = vsel %vm1184_vm9, %v2386_v43, 0.0 }
 0x278   : > { %v2417_v59 = vadd.f32 %v2416_v16, %v2415_v46  ;;  %v2422_v33 = vsel %vm1184_vm9, %v2387_v53, 0.0  ;;  %v2424_v22 = vsel %vm1184_vm9, %v2388_v50, 0.0  ;;  %v2391_v38 = vmul.f32 %v6843_v35, %v6843_v35 }
 0x279   : > { %v2426_v29 = vsel %vm1184_vm9, %v2389_v2, 0.0  ;;  %v2392_v25 = vmul.f32 %v6846_v17, %v6846_v17  ;;  %v2428_v48 = vsel %vm1184_vm9, %v2390_v13, 0.0  ;;  %v2393_v45 = vmul.f32 %v6849_v31, %v6849_v31 }
 0x27a   : > { %v2419_v1 = vadd.f32 %v2418_v54, %v2417_v59  ;;  %v2430_v6 = vsel %vm1184_vm9, %v2391_v38, 0.0  ;;  %v2394_v23 = vmul.f32 %v6852_v19, %v6852_v19  ;;  %v2395_v42 = vmul.f32 %v6855_v12, %v6855_v12 }
 0x27b   : > { %v2432_v27 = vsel %vm1184_vm9, %v2392_v25, 0.0  ;;  %v2434_v8 = vsel %vm1184_vm9, %v2393_v45, 0.0  ;;  %v2396_v46 = vmul.f32 %v6858_v10, %v6858_v10  ;;  %v2397_v53 = vmul.f32 %v6861_v40, %v6861_v40 }
 0x27c   : > { %v2421_v4 = vadd.f32 %v2420_v57, %v2419_v1  ;;  %v2436_v16 = vsel %vm1184_vm9, %v2394_v23, 0.0  ;;  %v2438_v54 = vsel %vm1184_vm9, %v2395_v42, 0.0  ;;  %v2398_v50 = vmul.f32 %v6864_v36, %v6864_v36 }
 0x27d   : > { %v2440_v57 = vsel %vm1184_vm9, %v2396_v46, 0.0  ;;  %v2399_v2 = vmul.f32 %v6867_v21, %v6867_v21  ;;  %v2400_v13 = vmul.f32 %v6870_v47, %v6870_v47  ;;  %v2401_v38 = vmul.f32 %v6873_v5, %v6873_v5 }
 0x27e   : > { %v2423_v34 = vadd.f32 %v2422_v33, %v2421_v4  ;;  %v2442_v33 = vsel %vm1184_vm9, %v2397_v53, 0.0  ;;  %v2402_v25 = vmul.f32 %v6876_v0, %v6876_v0  ;;  %v2403_v45 = vmul.f32 %v6879_v14, %v6879_v14 }
 0x27f   : > { %v2404_v23 = vmul.f32 %v6881_v58, %v6881_v58  ;;  %v2405_v42 = vmul.f32 %v6884_v7, %v6884_v7  ;;  %v2406_v46 = vmul.f32 %v6887_v18, %v6887_v18  ;;  %v2407_v53 = vmul.f32 %v6889_v44, %v6889_v44 }
 0x280   : > { %v2425_v51 = vadd.f32 %v2424_v22, %v2423_v34  ;;  %v2444_v22 = vsel %vm1184_vm9, %v2398_v50, 0.0  ;;  %v2408_v50 = vmul.f32 %v6891_v49, %v6891_v49 }
 0x282   : > { %v2427_v56 = vadd.f32 %v2426_v29, %v2425_v51  ;;  %v2446_v29 = vsel %vm1184_vm9, %v2399_v2, 0.0  ;;  %v2409_v2 = vmul.f32 %v6893_v61, %v6893_v61 }
 0x284   : > { %v2429_v26 = vadd.f32 %v2428_v48, %v2427_v56  ;;  %v2448_v48 = vsel %vm1184_vm9, %v2400_v13, 0.0  ;;  %v2410_v13 = vmul.f32 %v6895_v55, %v6895_v55 }
 0x286   : > { %v2431_v15 = vadd.f32 %v2430_v6, %v2429_v26  ;;  %v2450_v6 = vsel %vm1184_vm9, %v2401_v38, 0.0  ;;  %v2411_v38 = vmul.f32 %v6897_v20, %v6897_v20 }
 0x288   : > { %v2433_v63 = vadd.f32 %v2432_v27, %v2431_v15  ;;  %v2452_v27 = vsel %vm1184_vm9, %v2402_v25, 0.0  ;;  %v2412_v25 = vmul.f32 %v6899_v52, %v6899_v52 }
 0x28a   : > { %v2435_v43 = vadd.f32 %v2434_v8, %v2433_v63  ;;  %v2454_v8 = vsel %vm1184_vm9, %v2403_v45, 0.0  ;;  %v2413_v45 = vmul.f32 %v6901_v60, %v6901_v60 }
 0x28c   : > { %v2437_v59 = vadd.f32 %v2436_v16, %v2435_v43  ;;  %v2456_v16 = vsel %vm1184_vm9, %v2404_v23, 0.0  ;;  %v2414_v23 = vmul.f32 %v6903_v41, %v6903_v41 }
 0x28e   : > { %v2439_v1 = vadd.f32 %v2438_v54, %v2437_v59  ;;  %v2458_v54 = vsel %vm1184_vm9, %v2405_v42, 0.0  ;;  %v2474_v42 = vsel %vm1184_vm9, %v2413_v45, 0.0 }
 0x290   : > { %v2441_v4 = vadd.f32 %v2440_v57, %v2439_v1  ;;  %v2460_v57 = vsel %vm1184_vm9, %v2406_v46, 0.0 }
 0x292   : > { %v2443_v34 = vadd.f32 %v2442_v33, %v2441_v4  ;;  %v2462_v33 = vsel %vm1184_vm9, %v2407_v53, 0.0 }
 0x294   : > { %v2445_v51 = vadd.f32 %v2444_v22, %v2443_v34  ;;  %v2464_v22 = vsel %vm1184_vm9, %v2408_v50, 0.0 }
 0x296   : > { %v2447_v56 = vadd.f32 %v2446_v29, %v2445_v51  ;;  %v2466_v29 = vsel %vm1184_vm9, %v2409_v2, 0.0 }
 0x298   : > { %v2449_v26 = vadd.f32 %v2448_v48, %v2447_v56  ;;  %v2468_v48 = vsel %vm1184_vm9, %v2410_v13, 0.0 }
 0x29a   : > { %v2451_v15 = vadd.f32 %v2450_v6, %v2449_v26  ;;  %v2470_v6 = vsel %vm1184_vm9, %v2411_v38, 0.0 }
 0x29c   : > { %v2453_v63 = vadd.f32 %v2452_v27, %v2451_v15  ;;  %v2472_v27 = vsel %vm1184_vm9, %v2412_v25, 0.0 }
 0x29e   : > { %v2455_v43 = vadd.f32 %v2454_v8, %v2453_v63 }
 0x2a0   : > { %v2457_v59 = vadd.f32 %v2456_v16, %v2455_v43  ;;  %v2476_v43 = vsel %vm1184_vm9, %v2414_v23, 0.0 }
 0x2a2   : > { %v2459_v1 = vadd.f32 %v2458_v54, %v2457_v59 }
 0x2a4   : > { %v2461_v4 = vadd.f32 %v2460_v57, %v2459_v1 }
 0x2a6   : > { %v2463_v34 = vadd.f32 %v2462_v33, %v2461_v4 }
 0x2a8   : > { %v2465_v51 = vadd.f32 %v2464_v22, %v2463_v34 }
 0x2aa   : > { %v2467_v56 = vadd.f32 %v2466_v29, %v2465_v51 }
 0x2ac   : > { %v2469_v26 = vadd.f32 %v2468_v48, %v2467_v56 }
 0x2ae   : > { %v2471_v15 = vadd.f32 %v2470_v6, %v2469_v26 }
 0x2b0   : > { %v2473_v63 = vadd.f32 %v2472_v27, %v2471_v15 }
 0x2b2   : > { %v2475_v8 = vadd.f32 %v2474_v42, %v2473_v63 }
 0x2b4   : > { %v2477_v46 = vadd.f32 %v2476_v43, %v2475_v8 }
 0x2b6   : > { %v2478_v16 = vrot.slane %v2477_v46, 4 }
 0x2b8   : > { %v2479_v59 = vadd.f32 %v2478_v16, %v2477_v46 }
 0x2ba   : > { %v2480_v53 = vrot.slane %v2479_v59, 2 }
 0x2bc   : > { %v2481_v54 = vadd.f32 %v2480_v53, %v2479_v59 }
 0x2be   : > { %v2482_v1 = vrot.slane %v2481_v54, 1 }
 0x2c0   : > { %v2483_v50 = vadd.f32 %v2482_v1, %v2481_v54 }
 0x2c2   : > { %v2484_v57 = vmul.f32 0.00390625, %v2483_v50 }
 0x2c4   : > { %v2485_v4 = vadd.f32 1e-05, %v2484_v57 }
 0x2c6   : > { %5970 = vrsqrt.f32 %v2485_v4 }
 0x2d0   : > { %v5971_v2 = vpop.eup %5970 }
 0x2d1   : > { %v2516_v33 = vmul.f32 %v5971_v2, %v6899_v52  ;;  %v2487_v34 = vmul.f32 %v5971_v2, %v6819_v30  ;;  %v2488_v13 = vmul.f32 %v5971_v2, %v6822_v3  ;;  %v2489_v22 = vmul.f32 %v5971_v2, %v6825_v32 }
 0x2d2   : > { %v2490_v51 = vmul.f32 %v5971_v2, %v6828_v28  ;;  %v7007_v38 = vmul.f32 %v5971_v2, %v6831_v37  ;;  %v7010_v29 = vmul.f32 %v5971_v2, %v6834_v39  ;;  %v7013_v56 = vmul.f32 %v5971_v2, %v6837_v62 }
 0x2d3   : > { %v2548_v25 = vmax.f32 %v2516_v33, 0.0  ;;  %v7016_v52 = vmul.f32 %v5971_v2, %v6840_v24  ;;  %v7019_v30 = vmul.f32 %v5971_v2, %v6843_v35  ;;  %v7022_v3 = vmul.f32 %v5971_v2, %v6846_v17 }
 0x2d4   : > { %v7025_v32 = vmul.f32 %v5971_v2, %v6849_v31  ;;  %v7028_v28 = vmul.f32 %v5971_v2, %v6852_v19  ;;  %v7031_v37 = vmul.f32 %v5971_v2, %v6855_v12  ;;  %v7034_v39 = vmul.f32 %v5971_v2, %v6858_v10 }
 0x2d5   : > { %v5429_v62 = vpack.c.bf16 %v2548_v25, %v2548_v25  ;;  %v7037_v24 = vmul.f32 %v5971_v2, %v6861_v40  ;;  %v7040_v35 = vmul.f32 %v5971_v2, %v6864_v36  ;;  %v7043_v17 = vmul.f32 %v5971_v2, %v6867_v21 }
 0x2d6   : > { %v7046_v31 = vmul.f32 %v5971_v2, %v6870_v47  ;;  %v7049_v19 = vmul.f32 %v5971_v2, %v6873_v5  ;;  %v7052_v12 = vmul.f32 %v5971_v2, %v6876_v0  ;;  %v7055_v10 = vmul.f32 %v5971_v2, %v6879_v14 }
 0x2d7   : > { %2708 = vst.msk [vmem:[#allocation2 + $0x138] sm:$0xf] %vm333_vm0, %v5429_v62  ;;  %2714 = vst.msk [vmem:[#allocation2 + $0x160] sm:$0xf] %vm333_vm0, %v5429_v62  ;;  %v7060_v40 = vmul.f32 %v5971_v2, %v6881_v58  ;;  %v7063_v36 = vmul.f32 %v5971_v2, %v6884_v7  ;;  %v7066_v21 = vmul.f32 %v5971_v2, %v6887_v18  ;;  %v2520_v48 = vmax.f32 %v2488_v13, 0.0 }
 0x2d8   : > { %v7069_v47 = vmul.f32 %v5971_v2, %v6889_v44  ;;  %v7072_v5 = vmul.f32 %v5971_v2, %v6891_v49  ;;  %v7075_v0 = vmul.f32 %v5971_v2, %v6893_v61  ;;  %v7078_v14 = vmul.f32 %v5971_v2, %v6895_v55 }
 0x2d9   : > { %v7081_v58 = vmul.f32 %v5971_v2, %v6897_v20  ;;  %v7084_v7 = vmul.f32 %v5971_v2, %v6901_v60  ;;  %v7087_v18 = vmul.f32 %v5971_v2, %v6903_v41  ;;  %v2519_v44 = vmax.f32 %v2487_v34, 0.0 }
 0x2da   : > { %v2521_v26 = vmax.f32 %v2489_v22, 0.0  ;;  %v2522_v49 = vmax.f32 %v2490_v51, 0.0  ;;  %v2523_v45 = vmax.f32 %v7007_v38, 0.0  ;;  %v2524_v61 = vmax.f32 %v7010_v29, 0.0 }
 0x2db   : > { %v5400_v6 = vpack.c.bf16 %v2519_v44, %v2519_v44  ;;  %v5401_v55 = vpack.c.bf16 %v2520_v48, %v2520_v48  ;;  %v2525_v15 = vmax.f32 %v7013_v56, 0.0  ;;  %v2526_v20 = vmax.f32 %v7016_v52, 0.0 }
 0x2dc   : > { %v2527_v60 = vmax.f32 %v7019_v30, 0.0  ;;  %v2528_v23 = vmax.f32 %v7022_v3, 0.0  ;;  %v2529_v41 = vmax.f32 %v7025_v32, 0.0  ;;  %v2530_v27 = vmax.f32 %v7028_v28, 0.0 }
 0x2dd   : > { %2679 = vst.msk [vmem:[#allocation2 + $0x1c] sm:$0xf] %vm333_vm0, %v5400_v6  ;;  %2680 = vst.msk [vmem:[#allocation2 + $0x20] sm:$0xf] %vm333_vm0, %v5401_v55  ;;  %v2531_v63 = vmax.f32 %v7031_v37, 0.0  ;;  %v2532_v42 = vmax.f32 %v7034_v39, 0.0  ;;  %v5402_v54 = vpack.c.bf16 %v2521_v26, %v2521_v26  ;;  %v5403_v1 = vpack.c.bf16 %v2522_v49, %v2522_v49 }
 0x2de   : > { %v2533_v8 = vmax.f32 %v7037_v24, 0.0  ;;  %v2534_v43 = vmax.f32 %v7040_v35, 0.0  ;;  %v7103_v46 = vld [vmem:[#allocation2 + $0x138] sm:$0x8]  ;;  %v7105_v16 = vld [vmem:[#allocation2 + $0x160] sm:$0x8]  ;;  %v5404_v3 = vpack.c.bf16 %v2523_v45, %v2523_v45  ;;  %v5405_v32 = vpack.c.bf16 %v2524_v61, %v2524_v61 }
 0x2df   : > { %v2535_v59 = vmax.f32 %v7043_v17, 0.0  ;;  %v2536_v53 = vmax.f32 %v7046_v31, 0.0  ;;  %v5234_v50 = vrot.slane %v7103_v46, 11  ;;  %v5236_v57 = vrot.slane %v7105_v16, 11  ;;  %2681 = vst.msk [vmem:[#allocation2 + $0x30] sm:$0xf] %vm333_vm0, %v5402_v54 }
 0x2e0   : > { %v2537_v4 = vmax.f32 %v7049_v19, 0.0  ;;  %v2538_v2 = vmax.f32 %v7052_v12, 0.0  ;;  %v2539_v33 = vmax.f32 %v7055_v10, 0.0  ;;  %v2540_v34 = vmax.f32 %v7060_v40, 0.0  ;;  %2682 = vst.msk [vmem:[#allocation2 + $0x34] sm:$0xf] %vm333_vm0, %v5403_v1 }
 0x2e1   : > { %v2541_v13 = vmax.f32 %v7063_v36, 0.0  ;;  %v2542_v22 = vmax.f32 %v7066_v21, 0.0  ;;  %2711 = vst.msk [vmem:[#allocation2 + $0x8] sm:$0xf] %vm333_vm0, %v5402_v54  ;;  %2712 = vst.msk [vmem:[#allocation2 + $0xc] sm:$0xf] %vm333_vm0, %v5403_v1  ;;  %v5406_v28 = vpack.c.bf16 %v2525_v15, %v2525_v15  ;;  %v5407_v37 = vpack.c.bf16 %v2526_v20, %v2526_v20 }
 0x2e2   : > { %v2543_v51 = vmax.f32 %v7069_v47, 0.0  ;;  %v2544_v38 = vmax.f32 %v7072_v5, 0.0  ;;  %v2545_v29 = vmax.f32 %v7075_v0, 0.0  ;;  %v2546_v56 = vmax.f32 %v7078_v14, 0.0  ;;  %2683 = vst.msk [vmem:[#allocation2 + $0x44] sm:$0xf] %vm333_vm0, %v5404_v3 }
 0x2e3   : > { %v2547_v25 = vmax.f32 %v7081_v58, 0.0  ;;  %v2549_v52 = vmax.f32 %v7084_v7, 0.0  ;;  %v2550_v30 = vmax.f32 %v7087_v18, 0.0  ;;  %v5408_v39 = vpack.c.bf16 %v2527_v60, %v2527_v60  ;;  %2684 = vst.msk [vmem:[#allocation2 + $0x48] sm:$0xf] %vm333_vm0, %v5405_v32 }
 0x2e4   : > { %v2989_v62 = vld [vmem:[#allocation2 + $0x1c] sm:$0xf]  ;;  %v2990_v24 = vld [vmem:[#allocation2 + $0x20] sm:$0xf]  ;;  %v5409_v35 = vpack.c.bf16 %v2528_v23, %v2528_v23  ;;  %v5410_v17 = vpack.c.bf16 %v2529_v41, %v2529_v41  ;;  %v5411_v31 = vpack.c.bf16 %v2530_v27, %v2530_v27  ;;  %v5412_v19 = vpack.c.bf16 %v2531_v63, %v2531_v63  ;;  %2685 = vst.msk [vmem:[#allocation2 + $0x58] sm:$0xf] %vm333_vm0, %v5406_v28 }
 0x2e5   : > { %v7129_v12 = vcombine.low %v2989_v62, %v2990_v24  ;;  %v5413_v10 = vpack.c.bf16 %v2532_v42, %v2532_v42  ;;  %v5414_v40 = vpack.c.bf16 %v2533_v8, %v2533_v8  ;;  %v5415_v36 = vpack.c.bf16 %v2534_v43, %v2534_v43  ;;  %2686 = vst.msk [vmem:[#allocation2 + $0x5c] sm:$0xf] %vm333_vm0, %v5407_v37  ;;  %v7135_v21 = vld [vmem:[#allocation2 + $0x1c] sm:$0x1]  ;;  %v2842_v45 = vld [vmem:[#allocation2 + $0x20] sm:$0x8] }
 0x2e6   : > { %2687 = vst.msk [vmem:[#allocation2 + $0x6c] sm:$0xf] %vm333_vm0, %v5408_v39  ;;  %v5416_v47 = vpack.c.bf16 %v2535_v59, %v2535_v59  ;;  %v5417_v5 = vpack.c.bf16 %v2536_v53, %v2536_v53  ;;  %v5418_v0 = vpack.c.bf16 %v2537_v4, %v2537_v4  ;;  %v5419_v14 = vpack.c.bf16 %v2538_v2, %v2538_v2  ;;  %v7142_v7 = vld [vmem:[#allocation2 + $0x30] sm:$0xf]  ;;  %v2934_v23 = vld [vmem:[#allocation2 + $0x24] sm:$0x1] }
 0x2e7   : > { %2688 = vst.msk [vmem:[#allocation2 + $0x70] sm:$0xf] %vm333_vm0, %v5409_v35  ;;  %2689 = vst.msk [vmem:[#allocation2 + $0x80] sm:$0xf] %vm333_vm0, %v5410_v17  ;;  %v8480_v58 = vrot.slane %v7129_v12, 5  ;;  %v5420_v48 = vpack.c.bf16 %v2539_v33, %v2539_v33  ;;  %v5421_v26 = vpack.c.bf16 %v2540_v34, %v2540_v34  ;;  %v5422_v49 = vpack.c.bf16 %v2541_v13, %v2541_v13 }
 0x2e8   : > { %2690 = vst.msk [vmem:[#allocation2 + $0x84] sm:$0xf] %vm333_vm0, %v5411_v31  ;;  %2691 = vst.msk [vmem:[#allocation2 + $0x94] sm:$0xf] %vm333_vm0, %v5412_v19  ;;  %v2993_v44 = vld [vmem:[#allocation2 + $0x34] sm:$0xf]  ;;  %v5423_v6 = vpack.c.bf16 %v2542_v22, %v2542_v22  ;;  %v5424_v55 = vpack.c.bf16 %v2543_v51, %v2543_v51  ;;  %v5425_v15 = vpack.c.bf16 %v2544_v38, %v2544_v38 }
 0x2e9   : > { %2692 = vst.msk [vmem:[#allocation2 + $0x98] sm:$0xf] %vm333_vm0, %v5413_v10  ;;  %2693 = vst.msk [vmem:[#allocation2 + $0xa8] sm:$0xf] %vm333_vm0, %v5414_v40  ;;  %v7148_v61 = vcombine.low %v7142_v7, %v2993_v44  ;;  %v2717_v20 = vld [vmem:[#allocation2 + $0x30] sm:$0x1]  ;;  %3461 = vrot.lane.b32.xlu0 %v8480_v58, %s6001_s18  ;;  %v5426_v41 = vpack.c.bf16 %v2545_v29, %v2545_v29  ;;  %v5427_v27 = vpack.c.bf16 %v2546_v56, %v2546_v56 }
 0x2ea   : > { %2694 = vst.msk [vmem:[#allocation2 + $0xac] sm:$0xf] %vm333_vm0, %v5415_v36  ;;  %v2843_v60 = vld [vmem:[#allocation2 + $0x34] sm:$0x8]  ;;  %2695 = vst.msk [vmem:[#allocation2 + $0xbc] sm:$0xf] %vm333_vm0, %v5416_v47  ;;  %v5428_v63 = vpack.c.bf16 %v2547_v25, %v2547_v25  ;;  %v5430_v42 = vpack.c.bf16 %v2549_v52, %v2549_v52  ;;  %v5431_v1 = vpack.c.bf16 %v2550_v30, %v2550_v30 }
 0x2eb   : > { %2696 = vst.msk [vmem:[#allocation2 + $0xc0] sm:$0xf] %vm333_vm0, %v5417_v5  ;;  %2697 = vst.msk [vmem:[#allocation2 + $0xd0] sm:$0xf] %vm333_vm0, %v5418_v0  ;;  %v2937_v8 = vld [vmem:[#allocation2 + $0x38] sm:$0x1] }
 0x2ec   : > { %2698 = vst.msk [vmem:[#allocation2 + $0xd4] sm:$0xf] %vm333_vm0, %v5419_v14  ;;  %2699 = vst.msk [vmem:[#allocation2 + $0xe4] sm:$0xf] %vm333_vm0, %v5420_v48  ;;  %v2976_v43 = vld [vmem:[#allocation2 + $0x13c] sm:$0x1] }
 0x2ed   : > { %2700 = vst.msk [vmem:[#allocation2 + $0xe8] sm:$0xf] %vm333_vm0, %v5421_v26  ;;  %2701 = vst.msk [vmem:[#allocation2 + $0xf8] sm:$0xf] %vm333_vm0, %v5422_v49  ;;  %v2982_v59 = vld [vmem:[#allocation2 + $0x164] sm:$0x1]  ;;  %v2977_v52 = vsel %vm6116_vm3, %v5234_v50, %v2976_v43 }
 0x2ee   : > { %v3218_v53 = vshrl.u32 %v7148_v61, 16  ;;  %v3221_v54 = vshll.u32 %v7148_v61, 16  ;;  %v2752_v4 = vrot.slane %v7135_v21, 5  ;;  %2702 = vst.msk [vmem:[#allocation2 + $0xfc] sm:$0xf] %vm333_vm0, %v5423_v6  ;;  %v5220_v34 = vrot.slane %v2842_v45, 11 }
 0x2ef   : > { %2703 = vst.msk [vmem:[#allocation2 + $0x10c] sm:$0xf] %vm333_vm0, %v5424_v55  ;;  %2704 = vst.msk [vmem:[#allocation2 + $0x110] sm:$0xf] %vm333_vm0, %v5425_v15  ;;  %v2715_v2 = vld [vmem:[#allocation2 + $0x8] sm:$0x1]  ;;  %v2983_v46 = vsel %vm6116_vm3, %v5236_v57, %v2982_v59 }
 0x2f0   : > { %v2793_v33 = vld [vmem:[#allocation2 + $0x2c] sm:$0x8]  ;;  %v8478_v13 = vrot.slane %v7148_v61, 5  ;;  %2705 = vst.msk [vmem:[#allocation2 + $0x120] sm:$0xf] %vm333_vm0, %v5426_v41  ;;  %v2753_v18 = vrot.slane %v2717_v20, 5  ;;  %v2935_v3 = vsel %vm6116_vm3, %v5220_v34, %v2934_v23 }
 0x2f1   : > { %2706 = vst.msk [vmem:[#allocation2 + $0x124] sm:$0xf] %vm333_vm0, %v5427_v27  ;;  %2707 = vst.msk [vmem:[#allocation2 + $0x134] sm:$0xf] %vm333_vm0, %v5428_v63  ;;  %v2841_v22 = vld [vmem:[#allocation2 + $0xc] sm:$0x8] }
 0x2f2   : > { %2709 = vst.msk [vmem:[#allocation2 + $0x148] sm:$0xf] %vm333_vm0, %v5430_v42  ;;  %2713 = vst.msk [vmem:[#allocation2 + $0x15c] sm:$0xf] %vm333_vm0, %v5428_v63  ;;  %v5221_v51 = vrot.slane %v2843_v60, 11  ;;  %v3220_v38 = vrot.slane %v3218_v53, 4  ;;  %3465 = vrot.lane.b32.xlu0 %v8478_v13, %s6001_s18  ;;  %v2794_v31 = vsel %vm6277_vm7, %v2753_v18, %v2793_v33 }
 0x2f3   : > { %v3223_v29 = vrot.slane %v3221_v54, 5  ;;  %2710 = vst.msk [vmem:[#allocation2 + $0x14c] sm:$0xf] %vm333_vm0, %v5431_v1  ;;  %v7176_v56 = vld [vmem:[#allocation2 + $0x58] sm:$0xf]  ;;  %v2751_v39 = vrot.slane %v2715_v2, 5 }
 0x2f4   : > { %v7178_v25 = vld [vmem:[#allocation2 + $0x5c] sm:$0xf]  ;;  %v2938_v32 = vsel %vm6116_vm3, %v5221_v51, %v2937_v8  ;;  %2978 = vst [vmem:[#allocation2 + $0x13c] sm:$0x1] %v2977_v52  ;;  %v2931_v28 = vld [vmem:[#allocation2 + $0x10] sm:$0x1] }
 0x2f5   : > { %v7189_v30 = vcombine.low %v7176_v56, %v7178_v25  ;;  %v2790_v50 = vld [vmem:[#allocation2 + $0x18] sm:$0x8]  ;;  %v3224_v37 = vor.u32 %v3223_v29, %v3220_v38  ;;  %v5219_v62 = vrot.slane %v2841_v22, 11  ;;  %2936 = vst [vmem:[#allocation2 + $0x24] sm:$0x1] %v2935_v3 }
 0x2f6   : > { %2939 = vst [vmem:[#allocation2 + $0x38] sm:$0x1] %v2938_v32  ;;  %2984 = vst [vmem:[#allocation2 + $0x164] sm:$0x1] %v2983_v46  ;;  %v2787_v24 = vld [vmem:[#allocation2 + $0x4] sm:$0x8]  ;;  %v2791_v57 = vsel %vm6277_vm7, %v2752_v4, %v2790_v50 }
 0x2f7   : > { %v3234_v35 = vshrl.u32 %v7189_v30, 16  ;;  %v3237_v17 = vshll.u32 %v7189_v30, 16  ;;  %3333 = vrot.lane.b32.xlu1 %v3224_v37, %s6002_s19  ;;  %v2932_v16 = vsel %vm6116_vm3, %v5219_v62, %v2931_v28  ;;  %2795 = vst [vmem:[#allocation2 + $0x2c] sm:$0x8] %v2794_v31  ;;  %2792 = vst [vmem:[#allocation2 + $0x18] sm:$0x8] %v2791_v57  ;;  %v2788_v40 = vsel %vm6277_vm7, %v2751_v39, %v2787_v24 }
 0x2f8   : > { %2933 = vst [vmem:[#allocation2 + $0x10] sm:$0x1] %v2932_v16  ;;  %2789 = vst [vmem:[#allocation2 + $0x4] sm:$0x8] %v2788_v40  ;;  %v7211_v21 = vld [vmem:[#allocation2 + $0x44] sm:$0xf] }
 0x2f9   : > { %v3236_v19 = vrot.slane %v3234_v35, 4  ;;  %v3239_v10 = vrot.slane %v3237_v17, 5  ;;  %v7213_v47 = vld [vmem:[#allocation2 + $0x48] sm:$0xf]  ;;  %v2845_v14 = vld [vmem:[#allocation2 + $0x5c] sm:$0x8] }
 0x2fa   : > { %v7217_v5 = vcombine.low %v7211_v21, %v7213_v47  ;;  %v2844_v0 = vld [vmem:[#allocation2 + $0x48] sm:$0x8]  ;;  %v7220_v48 = vld [vmem:[#allocation2 + $0x80] sm:$0xf]  ;;  %v7222_v26 = vld [vmem:[#allocation2 + $0x84] sm:$0xf] }
 0x2fb   : > { %v3240_v36 = vor.u32 %v3239_v10, %v3236_v19  ;;  %v7224_v49 = vld [vmem:[#allocation2 + $0xa8] sm:$0xf]  ;;  %v5222_v45 = vrot.slane %v2844_v0, 11  ;;  %v5223_v6 = vrot.slane %v2845_v14, 11  ;;  %v7229_v55 = vld [vmem:[#allocation2 + $0xac] sm:$0xf]  ;;  %v7239_v27 = vcombine.low %v7220_v48, %v7222_v26 }
 0x2fc   : > { %v8477_v44 = vrot.slane %v7217_v5, 5  ;;  %v7231_v15 = vld [vmem:[#allocation2 + $0x6c] sm:$0xf]  ;;  %v7233_v20 = vld [vmem:[#allocation2 + $0x70] sm:$0xf]  ;;  %v8476_v63 = vrot.slane %v7189_v30, 5  ;;  %v7244_v42 = vcombine.low %v7224_v49, %v7229_v55 }
 0x2fd   : > { %3337 = vrot.lane.b32.xlu1 %v3240_v36, %s6002_s19  ;;  %8510 = vst [vmem:[#allocation3_spill] sm:$0xff] %v7231_v15  ;;  %8511 = vst [vmem:[#allocation4_spill] sm:$0xff] %v7233_v20  ;;  %v2940_v60 = vld [vmem:[#allocation2 + $0x4c] sm:$0x1]  ;;  %v2943_v23 = vld [vmem:[#allocation2 + $0x60] sm:$0x1]  ;;  %v7248_v8 = vcombine.low %v7231_v15, %v7233_v20 }
 0x2fe   : > { %3469 = vrot.lane.b32.xlu0 %v8477_v44, %s6001_s18  ;;  %v7235_v41 = vld [vmem:[#allocation2 + $0xd0] sm:$0xf]  ;;  %v7250_v43 = vld [vmem:[#allocation2 + $0xd4] sm:$0xf]  ;;  %v2941_v53 = vsel %vm6116_vm3, %v5222_v45, %v2940_v60  ;;  %v2944_v54 = vsel %vm6116_vm3, %v5223_v6, %v2943_v23  ;;  %v3250_v1 = vshrl.u32 %v7239_v27, 16  ;;  %v3253_v4 = vshll.u32 %v7239_v27, 16 }
 0x2ff   : > { %8512 = vst [vmem:[#allocation5_spill] sm:$0xff] %v7235_v41  ;;  %v7254_v59 = vcombine.low %v7235_v41, %v7250_v43  ;;  %v3266_v2 = vshrl.u32 %v7244_v42, 16  ;;  %v3269_v33 = vshll.u32 %v7244_v42, 16  ;;  %2942 = vst [vmem:[#allocation2 + $0x4c] sm:$0x1] %v2941_v53  ;;  %v8475_v22 = vrot.slane %v7248_v8, 5 }
 0x300   : > { %2945 = vst [vmem:[#allocation2 + $0x60] sm:$0x1] %v2944_v54  ;;  %v3252_v34 = vrot.slane %v3250_v1, 4  ;;  %v3255_v18 = vrot.slane %v3253_v4, 5  ;;  %v7268_v51 = vld [vmem:[#allocation2 + $0x94] sm:$0xf] }
 0x301   : > { %8513 = vst [vmem:[#allocation6_spill] sm:$0xff] %v7268_v51  ;;  %v3282_v38 = vshrl.u32 %v7254_v59, 16  ;;  %v7271_v29 = vld [vmem:[#allocation2 + $0x98] sm:$0xf]  ;;  %v2846_v52 = vld [vmem:[#allocation2 + $0x70] sm:$0x8] }
 0x302   : > { %3473 = vrot.lane.b32.xlu0 %v8476_v63, %s6001_s18  ;;  %8514 = vst [vmem:[#allocation7_spill] sm:$0xff] %v7271_v29  ;;  %v3256_v3 = vor.u32 %v3255_v18, %v3252_v34  ;;  %v3268_v32 = vrot.slane %v3266_v2, 4  ;;  %v3271_v28 = vrot.slane %v3269_v33, 5  ;;  %v3285_v46 = vshll.u32 %v7254_v59, 16  ;;  %v2847_v50 = vld [vmem:[#allocation2 + $0x84] sm:$0x8] }
 0x303   : > { %v7277_v37 = vld [vmem:[#allocation2 + $0x98] sm:$0x8]  ;;  %v7281_v62 = vld [vmem:[#allocation2 + $0xfc] sm:$0xf]  ;;  %v7283_v24 = vld [vmem:[#allocation2 + $0xac] sm:$0x8]  ;;  %v7293_v16 = vcombine.low %v7268_v51, %v7271_v29 }
 0x304   : > { %v7279_v39 = vld [vmem:[#allocation2 + $0xf8] sm:$0xf]  ;;  %v7285_v35 = vld [vmem:[#allocation2 + $0xc0] sm:$0x8]  ;;  %3341 = vrot.lane.b32.xlu1 %v3256_v3, %s6002_s19  ;;  %v8474_v17 = vrot.slane %v7239_v27, 5  ;;  %v3272_v40 = vor.u32 %v3271_v28, %v3268_v32  ;;  %v3284_v36 = vrot.slane %v3282_v38, 4 }
 0x305   : > { %8515 = vst [vmem:[#allocation8_spill] sm:$0xff] %v7279_v39  ;;  %v7289_v31 = vld [vmem:[#allocation2 + $0x138] sm:$0xf]  ;;  %v7295_v57 = vld [vmem:[#allocation2 + $0xd4] sm:$0x8]  ;;  %v3287_v0 = vrot.slane %v3285_v46, 5  ;;  %v7304_v14 = vcombine.low %v7279_v39, %v7281_v62 }
 0x306   : > { %3477 = vrot.lane.b32.xlu0 %v8475_v22, %s6001_s18  ;;  %8516 = vst [vmem:[#allocation9_spill] sm:$0xff] %v7289_v31  ;;  %v3031_v19 = vld [vmem:[#allocation2 + $0x134] sm:$0xf]  ;;  %v7297_v10 = vld [vmem:[#allocation2 + $0x120] sm:$0xf]  ;;  %v5224_v60 = vrot.slane %v2846_v52, 11 }
 0x307   : > { %8517 = vst [vmem:[#allocation10_spill] sm:$0xff] %v7297_v10  ;;  %v7306_v45 = vld [vmem:[#allocation2 + $0x124] sm:$0xf]  ;;  %v2946_v6 = vld [vmem:[#allocation2 + $0x74] sm:$0x1]  ;;  %v3210_v23 = vshrl.u32 %v7129_v12, 16  ;;  %v7322_v3 = vcombine.low %v3031_v19, %v7289_v31 }
 0x308   : > { %8518 = vst [vmem:[#allocation11_spill] sm:$0xff] %v7306_v45  ;;  %v3213_v53 = vshll.u32 %v7129_v12, 16  ;;  %v2949_v54 = vld [vmem:[#allocation2 + $0x88] sm:$0x1]  ;;  %v7310_v1 = vld [vmem:[#allocation2 + $0xe8] sm:$0x8]  ;;  %3345 = vrot.lane.b32.xlu1 %v3272_v40, %s6002_s19  ;;  %v7326_v32 = vcombine.low %v7297_v10, %v7306_v45  ;;  %v3288_v40 = vor.u32 %v3287_v0, %v3284_v36  ;;  %v2947_v44 = vsel %vm6116_vm3, %v5224_v60, %v2946_v6 }
 0x309   : > { %v5225_v4 = vrot.slane %v2847_v50, 11  ;;  %v5226_v2 = vrot.slane %v7277_v37, 11  ;;  %v8479_v33 = vrot.slane %v7293_v16, 5  ;;  %v7315_v34 = vld [vmem:[#allocation2 + $0xfc] sm:$0x8]  ;;  %v5227_v38 = vrot.slane %v7283_v24, 11 }
 0x30a   : > { %3481 = vrot.lane.b32.xlu0 %v8474_v17, %s6001_s18  ;;  %v7317_v18 = vld [vmem:[#allocation2 + $0x110] sm:$0x8]  ;;  %v5228_v52 = vrot.slane %v7285_v35, 11  ;;  %v2952_v28 = vld [vmem:[#allocation2 + $0x9c] sm:$0x1]  ;;  %v5229_v37 = vrot.slane %v7295_v57, 11 }
 0x30b   : > { %v2955_v46 = vld [vmem:[#allocation2 + $0xb0] sm:$0x1]  ;;  %v7328_v50 = vld [vmem:[#allocation2 + $0x124] sm:$0x8]  ;;  %v3298_v24 = vshrl.u32 %v7304_v14, 16  ;;  %v3301_v35 = vshll.u32 %v7304_v14, 16  ;;  %v2950_v6 = vsel %vm6116_vm3, %v5225_v4, %v2949_v54  ;;  %v2953_v54 = vsel %vm6116_vm3, %v5226_v2, %v2952_v28 }
 0x30c   : > { %v7336_v19 = vld [vmem:[#allocation2 + $0x14c] sm:$0x8]  ;;  %v5230_v17 = vrot.slane %v7310_v1, 11  ;;  %v3212_v22 = vrot.slane %v3210_v23, 4  ;;  %v3215_v63 = vrot.slane %v3213_v53, 5  ;;  %3349 = vrot.lane.b32.xlu1 %v3288_v40, %s6002_s19  ;;  %v5232_v60 = vrot.slane %v7317_v18, 11 }
 0x30d   : > { %v2958_v13 = vld [vmem:[#allocation2 + $0xc4] sm:$0x1]  ;;  %v2961_v57 = vld [vmem:[#allocation2 + $0xd8] sm:$0x1]  ;;  %v7343_v0 = vld [vmem:[#allocation2 + $0x80] sm:$0x1]  ;;  %v2956_v4 = vsel %vm6116_vm3, %v5227_v38, %v2955_v46 }
 0x30e   : > { %3485 = vrot.lane.b32.xlu0 %v8479_v33, %s6001_s18  ;;  %v7341_v36 = vld [vmem:[#allocation2 + $0x58] sm:$0x1]  ;;  %v5231_v33 = vrot.slane %v7315_v34, 11  ;;  %v7348_v51 = vld [vmem:[#allocation2 + $0xbc] sm:$0xf]  ;;  %v3314_v53 = vshrl.u32 %v7326_v32, 16  ;;  %v3216_v20 = vor.u32 %v3215_v63, %v3212_v22  ;;  %v2959_v46 = vsel %vm6116_vm3, %v5228_v52, %v2958_v13 }
 0x30f   : > { %8519 = vst [vmem:[#allocation12_spill] sm:$0xff] %v7348_v51  ;;  %v7350_v1 = vld [vmem:[#allocation2 + $0xc0] sm:$0xf]  ;;  %2948 = vst [vmem:[#allocation2 + $0x74] sm:$0x1] %v2947_v44  ;;  %v3317_v34 = vshll.u32 %v7326_v32, 16  ;;  %v2962_v63 = vsel %vm6116_vm3, %v5229_v37, %v2961_v57 }
 0x310   : > { %8520 = vst [vmem:[#allocation13_spill] sm:$0xff] %v7350_v1  ;;  %2951 = vst [vmem:[#allocation2 + $0x88] sm:$0x1] %v2950_v6  ;;  %v2964_v40 = vld [vmem:[#allocation2 + $0xec] sm:$0x1]  ;;  %v3300_v58 = vrot.slane %v3298_v24, 4  ;;  %v7371_v24 = vcombine.low %v7348_v51, %v7350_v1 }
 0x311   : > { %v7358_v15 = vld [vmem:[#allocation2 + $0xa8] sm:$0x1]  ;;  %v3303_v29 = vrot.slane %v3301_v35, 5  ;;  %v8521_v44 = vrot.slane %v7244_v42, 5  ;;  %v2967_v18 = vld [vmem:[#allocation2 + $0x100] sm:$0x1]  ;;  %v2965_v13 = vsel %vm6116_vm3, %v5230_v17, %v2964_v40 }
 0x312   : > { %v5233_v23 = vrot.slane %v7328_v50, 11  ;;  %v5235_v6 = vrot.slane %v7336_v19, 11  ;;  %2954 = vst [vmem:[#allocation2 + $0x9c] sm:$0x1] %v2953_v54  ;;  %2957 = vst [vmem:[#allocation2 + $0xb0] sm:$0x1] %v2956_v4 }
 0x313   : > { %3489 = vrot.lane.b32.xlu0 %v8521_v44, %s6001_s18  ;;  %v2970_v35 = vld [vmem:[#allocation2 + $0x114] sm:$0x1]  ;;  %v2973_v44 = vld [vmem:[#allocation2 + $0x128] sm:$0x1]  ;;  %v8522_v2 = vrot.slane %v7322_v3, 5  ;;  %v3226_v38 = vshrl.u32 %v7217_v5, 16  ;;  %v3304_v10 = vor.u32 %v3303_v29, %v3300_v58 }
 0x314   : > { %v3229_v28 = vshll.u32 %v7217_v5, 16  ;;  %v2979_v22 = vld [vmem:[#allocation2 + $0x150] sm:$0x1]  ;;  %v2755_v19 = vrot.slane %v7341_v36, 5  ;;  %v2757_v54 = vrot.slane %v7343_v0, 5  ;;  %v2759_v4 = vrot.slane %v7358_v15, 5 }
 0x315   : > { %3517 = vrot.lane.b32.xlu1 %v8522_v2, %s6001_s18  ;;  %v2725_v50 = vld [vmem:[#allocation2 + $0xd0] sm:$0x1]  ;;  %2960 = vst [vmem:[#allocation2 + $0xc4] sm:$0x1] %v2959_v46  ;;  %2963 = vst [vmem:[#allocation2 + $0xd8] sm:$0x1] %v2962_v63  ;;  %v2968_v15 = vsel %vm6116_vm3, %v5231_v33, %v2967_v18  ;;  %v2971_v36 = vsel %vm6116_vm3, %v5232_v60, %v2970_v35  ;;  %v2980_v17 = vsel %vm6116_vm3, %v5235_v6, %v2979_v22 }
 0x316   : > { %v2799_v2 = vld [vmem:[#allocation2 + $0x54] sm:$0x8]  ;;  %v2727_v51 = vld [vmem:[#allocation2 + $0xf8] sm:$0x1]  ;;  %v2729_v1 = vld [vmem:[#allocation2 + $0x120] sm:$0x1] }
 0x317   : > { %v3316_v39 = vrot.slane %v3314_v53, 4  ;;  %v3319_v41 = vrot.slane %v3317_v34, 5  ;;  %3331 = vrot.lane.b32.xlu0 %v3216_v20, %s6002_s19  ;;  %v2805_v52 = vld [vmem:[#allocation2 + $0x7c] sm:$0x8]  ;;  %v3436_v57 = vrot.slane %v7371_v24, 5  ;;  %v3228_v58 = vrot.slane %v3226_v38, 4 }
 0x318   : > { %v5935_v37 = vld [vmem:[#allocation2 + $0x24] ss:$0 sps:$4 sm:$0x11]   ;;  %2966 = vst [vmem:[#allocation2 + $0xec] sm:$0x1] %v2965_v13  ;;  %v3231_v29 = vrot.slane %v3229_v28, 5  ;;  %v2974_v20 = vsel %vm6116_vm3, %v5233_v23, %v2973_v44  ;;  %v2800_v23 = vsel %vm6277_vm7, %v2755_v19, %v2799_v2 }
 0x319   : > { %v2811_v0 = vld [vmem:[#allocation2 + $0xa4] sm:$0x8]  ;;  %3353 = vrot.lane.b32.xlu1 %v3304_v10, %s6002_s19  ;;  %2969 = vst [vmem:[#allocation2 + $0x100] sm:$0x1] %v2968_v15  ;;  %2972 = vst [vmem:[#allocation2 + $0x114] sm:$0x1] %v2971_v36  ;;  %v3320_v10 = vor.u32 %v3319_v41, %v3316_v39 }
 0x31a   : > { %v2817_v53 = vld [vmem:[#allocation2 + $0xcc] sm:$0x8]  ;;  %v2761_v34 = vrot.slane %v2725_v50, 5  ;;  %v2763_v40 = vrot.slane %v2727_v51, 5  ;;  %2975 = vst [vmem:[#allocation2 + $0x128] sm:$0x1] %v2974_v20  ;;  %v2806_v51 = vsel %vm6277_vm7, %v2757_v54, %v2805_v52  ;;  %v3232_v6 = vor.u32 %v3231_v29, %v3228_v58 }
 0x31b   : > { %2981 = vst [vmem:[#allocation2 + $0x150] sm:$0x1] %v2980_v17  ;;  %v2823_v33 = vld [vmem:[#allocation2 + $0xf4] sm:$0x8]  ;;  %v2829_v60 = vld [vmem:[#allocation2 + $0x11c] sm:$0x8]  ;;  %3493 = vrot.lane.b32.xlu0 %v3436_v57, %s6001_s18  ;;  %v2812_v39 = vsel %vm6277_vm7, %v2759_v4, %v2811_v0 }
 0x31c   : > { %v2718_v18 = vld [vmem:[#allocation2 + $0x44] sm:$0x1]  ;;  %v2765_v35 = vrot.slane %v2729_v1, 5  ;;  %v3413_v44 = vrot.slane %v5935_v37, 5  ;;  %2801 = vst [vmem:[#allocation2 + $0x54] sm:$0x8] %v2800_v23  ;;  %v2818_v1 = vsel %vm6277_vm7, %v2761_v34, %v2817_v53  ;;  %v2824_v28 = vsel %vm6277_vm7, %v2763_v40, %v2823_v33 }
 0x31d   : > { %v5937_v9 = vld [vmem:[#allocation2 + $0x38] ss:$0 sps:$4 sm:$0x11]   ;;  %3357 = vrot.lane.b32.xlu1 %v3320_v10, %s6002_s19  ;;  %v3242_v38 = vshrl.u32 %v7248_v8, 16  ;;  %v3245_v41 = vshll.u32 %v7248_v8, 16  ;;  %v2754_v46 = vrot.slane %v2718_v18, 5 }
 0x31e   : > { %2807 = vst [vmem:[#allocation2 + $0x7c] sm:$0x8] %v2806_v51  ;;  %2813 = vst [vmem:[#allocation2 + $0xa4] sm:$0x8] %v2812_v39  ;;  %v2830_v63 = vsel %vm6277_vm7, %v2765_v35, %v2829_v60  ;;  %v2796_v22 = vld [vmem:[#allocation2 + $0x40] sm:$0x8] }
 0x31f   : > { %3335 = vrot.lane.b32.xlu0 %v3232_v6, %s6002_s19  ;;  %2819 = vst [vmem:[#allocation2 + $0xcc] sm:$0x8] %v2818_v1  ;;  %2825 = vst [vmem:[#allocation2 + $0xf4] sm:$0x8] %v2824_v28  ;;  %v8523_v50 = vrot.slane %v7129_v12, 5  ;;  %v3416_v54 = vrot.slane %v5937_v9, 5  ;;  %v2797_v12 = vsel %vm6277_vm7, %v2754_v46, %v2796_v22 }
 0x320   : > { %v5938_v4 = vld [vmem:[#allocation2 + $0x4c] ss:$0 sps:$4 sm:$0x11]   ;;  %2831 = vst [vmem:[#allocation2 + $0x11c] sm:$0x8] %v2830_v63  ;;  %v3439_v2 = vrot.slane %v7254_v59, 5 }
 0x321   : > { %v3414_v19 = vsel %vm1071_vm4, %v8523_v50, %v3413_v44  ;;  %v3244_v13 = vrot.slane %v3242_v38, 4  ;;  %v3247_v52 = vrot.slane %v3245_v41, 5  ;;  %v7422_v37 = vld [vmem:[#allocation2 + $0xe4] sm:$0xf]  ;;  %v7424_v15 = vld [vmem:[#allocation2 + $0xe8] sm:$0xf] }
 0x322   : > { %3463 = vrot.lane.b32.xlu1 %v3414_v19, %s6001_s18  ;;  %v8524_v36 = vrot.slane %v7148_v61, 5  ;;  %v3419_v58 = vrot.slane %v5938_v4, 5  ;;  %v5939_v29 = vld [vmem:[#allocation2 + $0x60] ss:$0 sps:$4 sm:$0x11]   ;;  %v7437_v17 = vcombine.low %v7422_v37, %v7424_v15  ;;  %v3258_v53 = vshrl.u32 %v7293_v16, 16 }
 0x323   : > { %3497 = vrot.lane.b32.xlu0 %v3439_v2, %s6001_s18  ;;  %2798 = vst [vmem:[#allocation2 + $0x40] sm:$0x8] %v2797_v12  ;;  %v3248_v20 = vor.u32 %v3247_v52, %v3244_v13  ;;  %v3261_v34 = vshll.u32 %v7293_v16, 16  ;;  %v2720_v40 = vld [vmem:[#allocation2 + $0x6c] sm:$0x1]  ;;  %v8525_v10 = vrot.slane %v7217_v5, 5 }
 0x324   : > { %v3417_v0 = vsel %vm1071_vm4, %v8524_v36, %v3416_v54  ;;  %v2722_v33 = vld [vmem:[#allocation2 + $0x94] sm:$0x1]  ;;  %v2724_v60 = vld [vmem:[#allocation2 + $0xbc] sm:$0x1]  ;;  %v2726_v61 = vld [vmem:[#allocation2 + $0xe4] sm:$0x1] }
 0x325   : > { %v2728_v18 = vld [vmem:[#allocation2 + $0x10c] sm:$0x1]  ;;  %v2730_v35 = vld [vmem:[#allocation2 + $0x134] sm:$0x1]  ;;  %v3420_v23 = vsel %vm1071_vm4, %v8525_v10, %v3419_v58  ;;  %v3422_v44 = vrot.slane %v5939_v29, 5  ;;  %v3442_v6 = vrot.slane %v7437_v17, 5 }
 0x326   : > { %3467 = vrot.lane.b32.xlu1 %v3417_v0, %s6001_s18  ;;  %v5940_v9 = vld [vmem:[#allocation2 + $0x74] ss:$0 sps:$4 sm:$0x11]   ;;  %v2731_v51 = vld [vmem:[#allocation2 + $0x148] sm:$0x1]  ;;  %v3260_v38 = vrot.slane %v3258_v53, 4 }
 0x327   : > { %3339 = vrot.lane.b32.xlu0 %v3248_v20, %s6002_s19  ;;  %v3263_v41 = vrot.slane %v3261_v34, 5  ;;  %v2802_v39 = vld [vmem:[#allocation2 + $0x68] sm:$0x8]  ;;  %v2808_v1 = vld [vmem:[#allocation2 + $0x90] sm:$0x8]  ;;  %v2756_v46 = vrot.slane %v2720_v40, 5 }
 0x328   : > { %v2732_v28 = vld [vmem:[#allocation2 + $0x15c] sm:$0x1]  ;;  %v2758_v63 = vrot.slane %v2722_v33, 5  ;;  %v5965_v5 = vld [vmem:[%s8472_s2 + $0x8] sm:$0x3f]   ;;  %v2760_v50 = vrot.slane %v2724_v60, 5 }
 0x329   : > { %v2814_v22 = vld [vmem:[#allocation2 + $0xb8] sm:$0x8]  ;;  %v2762_v19 = vrot.slane %v2726_v61, 5  ;;  %v2764_v54 = vrot.slane %v2728_v18, 5  ;;  %v7456_v4 = vld [vmem:[%s8472_s2] sm:$0x3f]   ;;  %5869 = vmatprep.subr.msk.bf16.mxu1 %vm1683_vm8, %v5965_v5  ;;  %v3264_v20 = vor.u32 %v3263_v41, %v3260_v38 }
 0x32a   : > { %3471 = vrot.lane.b32.xlu1 %v3420_v23, %s6001_s18  ;;  %v2820_v13 = vld [vmem:[#allocation2 + $0xe0] sm:$0x8]  ;;  %v2766_v52 = vrot.slane %v2730_v35, 5  ;;  %v2767_v12 = vrot.slane %v2731_v51, 5  ;;  %v8526_v36 = vrot.slane %v7189_v30, 5  ;;  %v3425_v58 = vrot.slane %v5940_v9, 5 }
 0x32b   : > { %3501 = vrot.lane.b32.xlu0 %v3442_v6, %s6001_s18  ;;  %v5942_v29 = vld [vmem:[#allocation2 + $0x88] ss:$0 sps:$4 sm:$0x11]   ;;  %v3274_v53 = vshrl.u32 %v7371_v24, 16  ;;  %v3277_v34 = vshll.u32 %v7371_v24, 16  ;;  %v4017_v40 = vsel %vm1683_vm8, %v5965_v5, 0  ;;  %v2803_v30 = vsel %vm6277_vm7, %v2756_v46, %v2802_v39 }
 0x32c   : > { %v3423_v0 = vsel %vm1071_vm4, %v8526_v36, %v3422_v44  ;;  %v2826_v33 = vld [vmem:[#allocation2 + $0x108] sm:$0x8]  ;;  %v2768_v60 = vrot.slane %v2732_v28, 5  ;;  %5637 = vmatpush3.bf16.msra.mxu1 %v4017_v40  ;;  %v2809_v61 = vsel %vm6277_vm7, %v2758_v63, %v2808_v1  ;;  %v2832_v18 = vld [vmem:[#allocation2 + $0x130] sm:$0x8]  ;;  %v3445_v10 = vrot.slane %v7304_v14, 5 }
 0x32d   : > { %v2835_v35 = vld [vmem:[#allocation2 + $0x144] sm:$0x8]  ;;  %5870 = vmatprep.subr.msk.bf16.mxu1 %vm1683_vm8, %v7456_v4  ;;  %2804 = vst [vmem:[#allocation2 + $0x68] sm:$0x8] %v2803_v30  ;;  %2810 = vst [vmem:[#allocation2 + $0x90] sm:$0x8] %v2809_v61  ;;  %v2815_v23 = vsel %vm6277_vm7, %v2760_v50, %v2814_v22  ;;  %v2821_v39 = vsel %vm6277_vm7, %v2762_v19, %v2820_v13  ;;  %v2827_v1 = vsel %vm6277_vm7, %v2764_v54, %v2826_v33 }
 0x32e   : > { %3475 = vrot.lane.b32.xlu1 %v3423_v0, %s6001_s18  ;;  %v2838_v44 = vld [vmem:[#allocation2 + $0x158] sm:$0x8]  ;;  %v8527_v9 = vrot.slane %v7248_v8, 5  ;;  %v3428_v38 = vrot.slane %v5942_v29, 5  ;;  %2816 = vst [vmem:[#allocation2 + $0xb8] sm:$0x8] %v2815_v23  ;;  %v2833_v8 = vsel %vm6277_vm7, %v2766_v52, %v2832_v18  ;;  %v2836_v63 = vsel %vm6277_vm7, %v2767_v12, %v2835_v35 }
 0x32f   : > { %3343 = vrot.lane.b32.xlu0 %v3264_v20, %s6002_s19  ;;  %v5943_v41 = vld [vmem:[#allocation2 + $0x9c] ss:$0 sps:$4 sm:$0x11]   ;;  %v3276_v28 = vrot.slane %v3274_v53, 4  ;;  %v3279_v46 = vrot.slane %v3277_v34, 5  ;;  %v2839_v50 = vsel %vm6277_vm7, %v2768_v60, %v2838_v44  ;;  %v8528_v19 = vrot.slane %v7239_v27, 5 }
 0x330   : > { %v3426_v51 = vsel %vm1071_vm4, %v8527_v9, %v3425_v58  ;;  %2822 = vst [vmem:[#allocation2 + $0xe0] sm:$0x8] %v2821_v39  ;;  %2828 = vst [vmem:[#allocation2 + $0x108] sm:$0x8] %v2827_v1  ;;  %v7488_v5 = vld [vmem:[#allocation2 + $0x10c] sm:$0xf] }
 0x331   : > { %v7490_v22 = vld [vmem:[#allocation2 + $0x110] sm:$0xf]  ;;  %2834 = vst [vmem:[#allocation2 + $0x130] sm:$0x8] %v2833_v8  ;;  %2837 = vst [vmem:[#allocation2 + $0x144] sm:$0x8] %v2836_v63  ;;  %v3429_v54 = vsel %vm1071_vm4, %v8528_v19, %v3428_v38  ;;  %v3280_v12 = vor.u32 %v3279_v46, %v3276_v28 }
 0x332   : > { %3479 = vrot.lane.b32.xlu1 %v3426_v51, %s6001_s18  ;;  %2840 = vst [vmem:[#allocation2 + $0x158] sm:$0x8] %v2839_v50  ;;  %v3431_v13 = vrot.slane %v5943_v41, 5  ;;  %v5944_v52 = vld [vmem:[#allocation2 + $0xb0] ss:$0 sps:$4 sm:$0x11]   ;;  %v7503_v36 = vcombine.low %v7488_v5, %v7490_v22 }
 0x333   : > { %3505 = vrot.lane.b32.xlu0 %v3445_v10, %s6001_s18  ;;  %v3290_v11 = vshrl.u32 %v7437_v17, 16  ;;  %v3293_v0 = vshll.u32 %v7437_v17, 16  ;;  %v8529_v58 = vrot.slane %v7293_v16, 5  ;;  %v3434_v29 = vrot.slane %v5944_v52, 5  ;;  %v7533_v8 = vld [vmem:[#allocation2 + $0x8] sm:$0xf] }
 0x334   : > { %v5945_v20 = vld [vmem:[#allocation2 + $0xc4] ss:$0 sps:$4 sm:$0x11]   ;;  %v3448_v53 = vrot.slane %v7503_v36, 5  ;;  %v8530_v33 = vrot.slane %v7244_v42, 5  ;;  %v3306_v18 = vshrl.u32 %v7503_v36, 16 }
 0x335   : > { %v3432_v27 = vsel %vm1071_vm4, %v8529_v58, %v3431_v13  ;;  %v3292_v34 = vrot.slane %v3290_v11, 4  ;;  %v3295_v40 = vrot.slane %v3293_v0, 5  ;;  %v3437_v30 = vrot.slane %v5945_v20, 5  ;;  %v5947_v61 = vld [vmem:[#allocation2 + $0xd8] ss:$0 sps:$4 sm:$0x11]  }
 0x336   : > { %3483 = vrot.lane.b32.xlu1 %v3429_v54, %s6001_s18  ;;  %v3435_v60 = vsel %vm1071_vm4, %v8530_v33, %v3434_v29  ;;  %v3309_v35 = vshll.u32 %v7503_v36, 16  ;;  %v3440_v44 = vrot.slane %v5947_v61, 5  ;;  %v5948_v9 = vld [vmem:[#allocation2 + $0xec] ss:$0 sps:$4 sm:$0x11]   ;;  %v3451_v42 = vrot.slane %v7326_v32, 5 }
 0x337   : > { %3347 = vrot.lane.b32.xlu0 %v3280_v12, %s6002_s19  ;;  %v3296_v16 = vor.u32 %v3295_v40, %v3292_v34  ;;  %v3438_v23 = vsel %vm1071_vm4, %v3436_v57, %v3437_v30  ;;  %v3308_v51 = vrot.slane %v3306_v18, 4  ;;  %v3322_v41 = vshrl.u32 %v7322_v3, 16  ;;  %v5949_v57 = vld [vmem:[#allocation2 + $0x100] ss:$0 sps:$4 sm:$0x11]   ;;  %8531 = vst [vmem:[#allocation14_spill] sm:$0xff] %v7533_v8 }
 0x338   : > { %v3311_v38 = vrot.slane %v3309_v35, 5  ;;  %v3325_v39 = vshll.u32 %v7322_v3, 16  ;;  %v3441_v24 = vsel %vm1071_vm4, %v3439_v2, %v3440_v44  ;;  %v3443_v1 = vrot.slane %v5948_v9, 5  ;;  %v7535_v63 = vld [vmem:[#allocation2 + $0x148] sm:$0xf] }
 0x339   : > { %v3324_v32 = vrot.slane %v3322_v41, 4  ;;  %8532 = vst [vmem:[#allocation15_spill] sm:$0xff] %v7535_v63  ;;  %v7537_v50 = vld [vmem:[#allocation2 + $0x14c] sm:$0xf]  ;;  %v3446_v2 = vrot.slane %v5949_v57, 5 }
 0x33a   : > { %3487 = vrot.lane.b32.xlu1 %v3432_v27, %s6001_s18  ;;  %v3312_v28 = vor.u32 %v3311_v38, %v3308_v51  ;;  %v3327_v46 = vrot.slane %v3325_v39, 5  ;;  %8533 = vst [vmem:[#allocation16_spill] sm:$0xff] %v7537_v50  ;;  %v7539_v19 = vld [vmem:[#allocation2 + $0xc] sm:$0xf]  ;;  %v3444_v59 = vsel %vm1071_vm4, %v3442_v6, %v3443_v1  ;;  %v5303_v52 = vcombine.low %v7535_v63, %v7537_v50  ;;  %v7562_v35 = vld [vmem:[#allocation2 + $0x160] sm:$0xf] }
 0x33b   : > { %3509 = vrot.lane.b32.xlu0 %v3448_v53, %s6001_s18  ;;  %8534 = vst [vmem:[#allocation17_spill] sm:$0xff] %v7539_v19  ;;  %v5950_v54 = vld [vmem:[#allocation2 + $0x114] ss:$0 sps:$4 sm:$0x11]   ;;  %v5269_v12 = vcombine.low %v7533_v8, %v7539_v19  ;;  %v3447_v17 = vsel %vm1071_vm4, %v3445_v10, %v3446_v2  ;;  %v8535_v10 = vrot.slane %v7322_v3, 5  ;;  %8536 = vst [vmem:[#allocation18_spill] sm:$0xff] %v7562_v35 }
 0x33c   : > { %v3328_v13 = vor.u32 %v3327_v46, %v3324_v32  ;;  %v5953_v36 = vld [vmem:[#allocation2 + $0x13c] ss:$0 sps:$4 sm:$0x11]   ;;  %v3449_v11 = vrot.slane %v5950_v54, 5  ;;  %v3929_v0 = vrot.slane %v5303_v52, 5  ;;  %v3917_v20 = vshrl.u32 %v5303_v52, 16 }
 0x33d   : > { %v5951_v6 = vld [vmem:[#allocation2 + $0x128] ss:$0 sps:$4 sm:$0x11]   ;;  %v3202_v58 = vshrl.u32 %v5269_v12, 16  ;;  %v3205_v27 = vshll.u32 %v5269_v12, 16  ;;  %v3455_v29 = vrot.slane %v5953_v36, 5 }
 0x33e   : > { %3491 = vrot.lane.b32.xlu1 %v3435_v60, %s6001_s18  ;;  %v3920_v34 = vshll.u32 %v5303_v52, 16  ;;  %v3450_v40 = vsel %vm1071_vm4, %v3448_v53, %v3449_v11  ;;  %v3452_v33 = vrot.slane %v5951_v6, 5  ;;  %v5956_v61 = vld [vmem:[#allocation2 + $0x10] ss:$0 sps:$4 sm:$0x11]   ;;  %v3409_v39 = vrot.slane %v5269_v12, 5 }
 0x33f   : > { %3351 = vrot.lane.b32.xlu0 %v3296_v16, %s6002_s19  ;;  %v3204_v14 = vrot.slane %v3202_v58, 4  ;;  %v3207_v60 = vrot.slane %v3205_v27, 5  ;;  %v3456_v30 = vsel %vm1071_vm4, %v8535_v10, %v3455_v29  ;;  %v3919_v16 = vrot.slane %v3917_v20, 4  ;;  %v5954_v44 = vld [vmem:[#allocation2 + $0x150] ss:$0 sps:$4 sm:$0x11]  }
 0x340   : > { %v3922_v18 = vrot.slane %v3920_v34, 5  ;;  %v7565_v53 = vld [vmem:[#allocation2 + $0x15c] sm:$0xf]  ;;  %v3410_v51 = vrot.slane %v5956_v61, 5  ;;  %v3930_v41 = vrot.slane %v5954_v44, 5  ;;  %v8545_v63 = vld [vmem:[#allocation3_spill] sm:$0xff] }
 0x341   : > { %8537 = vst [vmem:[#allocation19_spill] sm:$0xff] %v7565_v53  ;;  %v3208_v9 = vor.u32 %v3207_v60, %v3204_v14  ;;  %v5343_v3 = vcombine.low %v7565_v53, %v7562_v35  ;;  %v2988_v60 = vld [vmem:[#allocation2 + $0x18] sm:$0x8] }
 0x342   : > { %3495 = vrot.lane.b32.xlu1 %v3438_v23, %s6001_s18  ;;  %v3453_v23 = vsel %vm1071_vm4, %v3451_v42, %v3452_v33  ;;  %v3923_v38 = vor.u32 %v3922_v18, %v3919_v16  ;;  %v3931_v57 = vsel %vm1071_vm4, %v3929_v0, %v3930_v41  ;;  %v5989_v16 = vld [vmem:[#allocation2 + $0x1c] sm:$0xf]  ;;  %v2994_v41 = vld [vmem:[#allocation2 + $0x40] sm:$0x8] }
 0x343   : > { %3513 = vrot.lane.b32.xlu0 %v3451_v42, %s6001_s18  ;;  %v4362_v42 = vshrl.u32 %v5343_v3, 16  ;;  %v4365_v1 = vshll.u32 %v5343_v3, 16  ;;  %v5239_v18 = vcombine.low %v2988_v60, %v5989_v16  ;;  %v7635_v60 = vld [vmem:[#allocation2 + $0xf4] sm:$0x8]  ;;  %v5243_v16 = vcombine.low %v2994_v41, %v7211_v21 }
 0x344   : > { %v8540_v41 = vld [vmem:[#allocation8_spill] sm:$0xff] }
 0x345   : > { %v4364_v32 = vrot.slane %v4362_v42, 4  ;;  %v4367_v46 = vrot.slane %v4365_v1, 5  ;;  %v7620_v1 = vld [vmem:[#allocation2 + $0xa4] sm:$0x8] }
 0x346   : > { %3499 = vrot.lane.b32.xlu1 %v3441_v24, %s6001_s18  ;;  %v3411_v24 = vsel %vm1071_vm4, %v3409_v39, %v3410_v51 }
 0x347   : > { %3355 = vrot.lane.b32.xlu0 %v3312_v28, %s6002_s19  ;;  %v4374_v28 = vrot.slane %v5343_v3, 5  ;;  %v4368_v2 = vor.u32 %v4367_v46, %v4364_v32 }
 0x34a   : > { %3503 = vrot.lane.b32.xlu1 %v3444_v59, %s6001_s18  ;;  %v5958_v59 = vld [vmem:[#allocation2 + $0x164] ss:$0 sps:$4 sm:$0x11]  }
 0x34b   : > { %3359 = vrot.lane.b32.xlu0 %v3328_v13, %s6002_s19  ;;  %v4375_v54 = vrot.slane %v5958_v59, 5  ;;  %v7626_v59 = vld [vmem:[#allocation2 + $0xcc] sm:$0x8] }
 0x34d   : > { %v4376_v52 = vsel %vm1071_vm4, %v4374_v28, %v4375_v54  ;;  %v8539_v54 = vld [vmem:[#allocation5_spill] sm:$0xff] }
 0x34e   : > { %3507 = vrot.lane.b32.xlu1 %v3447_v17, %s6001_s18 }
 0x34f   : > { %3932 = vrot.lane.b32.xlu0 %v3929_v0, %s6001_s18 }
 0x352   : > { %3511 = vrot.lane.b32.xlu1 %v3450_v40, %s6001_s18  ;;  %v2991_v40 = vld [vmem:[#allocation2 + $0x2c] sm:$0x8] }
 0x353   : > { %3519 = vrot.lane.b32.xlu0 %v3456_v30, %s6001_s18  ;;  %v5241_v10 = vcombine.low %v2991_v40, %v7142_v7 }
 0x356   : > { %3515 = vrot.lane.b32.xlu1 %v3453_v23, %s6001_s18 }
 0x357   : > { %3329 = vrot.lane.b32.xlu0 %v3208_v9, %s6002_s19  ;;  %v5990_v9 = vld [vmem:[#allocation2 + $0x34] sm:$0xf] }
 0x358   : > { %v5242_v51 = vcombine.low %v5990_v9, %v5990_v9 }
 0x35a   : > { %3924 = vrot.lane.b32.xlu1 %v3923_v38, %s6002_s19 }
 0x35b   : > { %3459 = vrot.lane.b32.xlu0 %v3411_v24, %s6001_s18  ;;  %v3462_v13 = vpop.permute.xlu0 %3461  ;;  %v7616_v24 = vld [vmem:[#allocation2 + $0x7c] sm:$0x8] }
 0x35c   : > { %v5249_v32 = vcombine.low %v7616_v24, %v7220_v48  ;;  %v8542_v24 = vld [vmem:[#allocation4_spill] sm:$0xff] }
 0x35e   : > { %3934 = vrot.lane.b32.xlu1 %v3931_v57, %s6001_s18  ;;  %v5991_v57 = vld [vmem:[#allocation2 + $0x20] sm:$0xf] }
 0x35f   : > { %4377 = vrot.lane.b32.xlu0 %v4374_v28, %s6001_s18  ;;  %v5240_v28 = vcombine.low %v5991_v57, %v5991_v57 }
 0x362   : > { %3457 = vrot.lane.b32.xlu1 %v3409_v39, %s6001_s18  ;;  %v2997_v39 = vld [vmem:[#allocation2 + $0x54] sm:$0x8] }
 0x363   : > { %v5245_v57 = vcombine.low %v2997_v39, %v7176_v56  ;;  %v3000_v56 = vld [vmem:[#allocation2 + $0x68] sm:$0x8] }
 0x364   : > { %v3466_v12 = vpop.permute.xlu0 %3465 }
 0x366   : > { %4369 = vrot.lane.b32.xlu1 %v4368_v2, %s6002_s19 }
 0x369   : > { %v7581_v36 = vpop.permute.xlu1 %3333 }
 0x36a   : > { %4379 = vrot.lane.b32.xlu1 %v4376_v52, %s6001_s18  ;;  %v3533_v61 = vsel %vm1184_vm9, %v5241_v10, %v7581_v36  ;;  %v7637_v10 = vld [vmem:[#allocation2 + $0x11c] sm:$0x8]  ;;  %v3535_v2 = vsel %vm1184_vm9, %v5242_v51, %v7581_v36 }
 0x36b   : > { %v3610_v38 = vsel %vm1265_vm10, %v3533_v61, %v3466_v12 }
 0x36c   : > { %v3695_v40 = vshrl.u32 %v3610_v38, 16  ;;  %v3698_v9 = vshll.u32 %v3610_v38, 16  ;;  %v8541_v38 = vld [vmem:[#allocation10_spill] sm:$0xff] }
 0x36e   : > { %v3697_v42 = vrot.slane %v3695_v40, 3 }
 0x36f   : > { %v7585_v11 = vpop.permute.xlu1 %3337 }
 0x370   : > { %v7583_v17 = vpop.permute.xlu0 %3469  ;;  %v3543_v40 = vsel %vm1184_vm9, %v5245_v57, %v7585_v11  ;;  %v5247_v57 = vcombine.low %v3000_v56, %v8545_v63 }
 0x374   : > { %v7587_v6 = vpop.permute.xlu0 %3473 }
 0x376   : > { %v7591_v58 = vpop.permute.xlu1 %3341 }
 0x378   : > { %v7589_v0 = vpop.permute.xlu0 %3477 }
 0x37a   : > { %v7595_v29 = vpop.permute.xlu1 %3345 }
 0x37c   : > { %v7593_v27 = vpop.permute.xlu0 %3481 }
 0x37e   : > { %v7599_v34 = vpop.permute.xlu1 %3349 }
 0x380   : > { %v7597_v20 = vpop.permute.xlu0 %3485 }
 0x385   : > { %v7601_v33 = vpop.permute.xlu0 %3489 }
 0x387   : > { %v7603_v14 = vpop.permute.xlu1 %3517 }
 0x388   : > { %8538 = vst [vmem:[#allocation20_spill] sm:$0xff] %v7603_v14 }
 0x389   : > { %v3332_v30 = vpop.permute.xlu0 %3331 }
 0x38a   : > { %v3528_v44 = vsel %vm1184_vm9, %v5239_v18, %v3332_v30  ;;  %v5244_v18 = vcombine.low %v7213_v47, %v7213_v47  ;;  %v3530_v39 = vsel %vm1184_vm9, %v5240_v28, %v3332_v30  ;;  %v3700_v47 = vrot.slane %v3698_v9, 4 }
 0x38b   : > { %v7608_v23 = vpop.permute.xlu1 %3353  ;;  %v3606_v12 = vsel %vm1265_vm10, %v3528_v44, %v3462_v13  ;;  %v8544_v13 = vld [vmem:[#allocation13_spill] sm:$0xff] }
 0x38c   : > { %v3680_v46 = vshrl.u32 %v3606_v12, 16  ;;  %v3683_v61 = vshll.u32 %v3606_v12, 16  ;;  %v7662_v12 = vsel %vm1683_vm8, %v7456_v4, 0 }
 0x38d   : > { %v7612_v3 = vpop.permute.xlu0 %3493 }
 0x38f   : > { %v7632_v52 = vpop.permute.xlu1 %3357 }
 0x391   : > { %v3336_v44 = vpop.permute.xlu0 %3335 }
 0x392   : > { %v3538_v21 = vsel %vm1184_vm9, %v5243_v16, %v3336_v44  ;;  %v8543_v16 = vld [vmem:[#allocation7_spill] sm:$0xff] }
 0x393   : > { %v3614_v30 = vsel %vm1265_vm10, %v3538_v21, %v7583_v17 }
 0x394   : > { %v3464_v48 = vpop.permute.xlu1 %3463  ;;  %v3710_v50 = vshrl.u32 %v3614_v30, 16  ;;  %v3713_v19 = vshll.u32 %v3614_v30, 16 }
 0x395   : > { %v3608_v7 = vsel %vm1265_vm10, %v3530_v39, %v3464_v48  ;;  %v7668_v28 = vpop.permute.xlu0 %3497  ;;  %v3682_v39 = vrot.slane %v3680_v46, 3  ;;  %v3685_v48 = vrot.slane %v3683_v61, 4  ;;  %v3701_v46 = vor.u32 %v3700_v47, %v3697_v42 }
 0x396   : > { %v3687_v35 = vshrl.u32 %v3608_v7, 16  ;;  %v3690_v53 = vshll.u32 %v3608_v7, 16  ;;  %v3618_v7 = vsel %vm1265_vm10, %v3543_v40, %v7587_v6  ;;  %v3712_v63 = vrot.slane %v3710_v50, 3 }
 0x397   : > { %v3725_v36 = vshrl.u32 %v3618_v7, 16  ;;  %v3686_v51 = vor.u32 %v3685_v48, %v3682_v39  ;;  %v3715_v42 = vrot.slane %v3713_v19, 4  ;;  %v8546_v50 = vcombine.low %v7178_v25, %v7178_v25 }
 0x398   : > { %v3689_v9 = vrot.slane %v3687_v35, 3  ;;  %v3692_v8 = vrot.slane %v3690_v53, 4  ;;  %v3468_v17 = vpop.permute.xlu1 %3467  ;;  %v3728_v53 = vshll.u32 %v3618_v7, 16  ;;  %v7705_v7 = vld [vmem:[%s8472_s2 + $0x10] sm:$0x3f]  }
 0x399   : > { %v3612_v21 = vsel %vm1265_vm10, %v3535_v2, %v3468_v17  ;;  %v3340_v45 = vpop.permute.xlu0 %3339  ;;  %v3540_v2 = vsel %vm1184_vm9, %v5244_v18, %v3336_v44  ;;  %v3006_v17 = vld [vmem:[#allocation2 + $0x90] sm:$0x8]  ;;  %v3545_v19 = vsel %vm1184_vm9, %v8546_v50, %v7585_v11  ;;  %v3727_v18 = vrot.slane %v3725_v36, 3  ;;  %v8547_v44 = vld [vmem:[#allocation6_spill] sm:$0xff] }
 0x39a   : > { %v3702_v61 = vshrl.u32 %v3612_v21, 16  ;;  %v3705_v31 = vshll.u32 %v3612_v21, 16  ;;  %v3693_v14 = vor.u32 %v3692_v8, %v3689_v9  ;;  %v3548_v35 = vsel %vm1184_vm9, %v5247_v57, %v3340_v45 }
 0x39b   : > { %v5251_v48 = vcombine.low %v3006_v17, %v8547_v44  ;;  %v3730_v11 = vrot.slane %v3728_v53, 4  ;;  %v5264_v53 = vcombine.low %v7490_v22, %v7490_v22 }
 0x39c   : > { %v3704_v6 = vrot.slane %v3702_v61, 3  ;;  %v3707_v40 = vrot.slane %v3705_v31, 4  ;;  %v3472_v30 = vpop.permute.xlu1 %3471  ;;  %v7686_v56 = vsel %vm1330_vm12, %v3686_v51, %v3693_v14  ;;  %v3622_v31 = vsel %vm1265_vm10, %v3548_v35, %v7589_v0 }
 0x39d   : > { %v3616_v47 = vsel %vm1265_vm10, %v3540_v2, %v3472_v30  ;;  %5638 = vmatprep.mubr.msk.bf16.mxu1 %vm1634_vm11, %v7686_v56  ;;  %v7692_v8 = vpop.permute.xlu0 %3501  ;;  %v3553_v14 = vsel %vm1184_vm9, %v5249_v32, %v7591_v58  ;;  %v3740_v36 = vshrl.u32 %v3622_v31, 16  ;;  %v3743_v51 = vshll.u32 %v3622_v31, 16 }
 0x39e   : > { %v3708_v21 = vor.u32 %v3707_v40, %v3704_v6  ;;  %v3717_v4 = vshrl.u32 %v3616_v47, 16  ;;  %v3720_v39 = vshll.u32 %v3616_v47, 16  ;;  %v3626_v0 = vsel %vm1265_vm10, %v3553_v14, %v7593_v27 }
 0x39f   : > { %v3716_v35 = vor.u32 %v3715_v42, %v3712_v63  ;;  %v3758_v30 = vshll.u32 %v3626_v0, 16  ;;  %v8548_v63 = vcombine.low %v8542_v24, %v8542_v24  ;;  %v3742_v31 = vrot.slane %v3740_v36, 3 }
 0x3a0   : > { %v3719_v9 = vrot.slane %v3717_v4, 3  ;;  %v3722_v57 = vrot.slane %v3720_v39, 4  ;;  %v3476_v61 = vpop.permute.xlu1 %3475  ;;  %v7710_v25 = vsel %vm1330_vm12, %v3701_v46, %v3708_v21  ;;  %v3755_v4 = vshrl.u32 %v3626_v0, 16 }
 0x3a1   : > { %v3620_v32 = vsel %vm1265_vm10, %v3545_v19, %v3476_v61  ;;  %5639 = vmatmul.mubr.msk.bf16.vlgmr.msra.gmra.mrb[0].mxu1 %vm1634_vm11, %v7710_v25  ;;  %v3344_v27 = vpop.permute.xlu0 %3343  ;;  %v3550_v42 = vsel %vm1184_vm9, %v8548_v63, %v3340_v45  ;;  %v3731_v39 = vor.u32 %v3730_v11, %v3727_v18  ;;  %v3745_v50 = vrot.slane %v3743_v51, 4  ;;  %v3012_v45 = vld [vmem:[#allocation2 + $0xb8] sm:$0x8] }
 0x3a2   : > { %v3723_v6 = vor.u32 %v3722_v57, %v3719_v9  ;;  %v3732_v40 = vshrl.u32 %v3620_v32, 16  ;;  %v3735_v2 = vshll.u32 %v3620_v32, 16  ;;  %5671 = vmatpush3.bf16.msra.mxu1 %v7662_v12  ;;  %v3558_v46 = vsel %vm1184_vm9, %v5251_v48, %v3344_v27 }
 0x3a3   : > { %5871 = vmatprep.subr.msk.bf16.mxu1 %vm1683_vm8, %v7705_v7  ;;  %v3630_v24 = vsel %vm1265_vm10, %v3558_v46, %v7597_v20  ;;  %v8549_v18 = vcombine.low %v7222_v26, %v7222_v26  ;;  %v8550_v57 = vcombine.low %v7620_v1, %v7224_v49  ;;  %v3757_v11 = vrot.slane %v3755_v4, 3  ;;  %v3018_v26 = vld [vmem:[#allocation2 + $0xe0] sm:$0x8]  ;;  %v8551_v49 = vld [vmem:[#allocation12_spill] sm:$0xff] }
 0x3a4   : > { %v3734_v17 = vrot.slane %v3732_v40, 3  ;;  %v3737_v47 = vrot.slane %v3735_v2, 4  ;;  %v3480_v21 = vpop.permute.xlu1 %3479  ;;  %v7726_v12 = vsel %vm1330_vm12, %v3716_v35, %v3723_v6  ;;  %v3760_v32 = vrot.slane %v3758_v30, 4 }
 0x3a5   : > { %v3624_v19 = vsel %vm1265_vm10, %v3550_v42, %v3480_v21  ;;  %5642 = vmatprep.mubr.msk.bf16.mxu1 %vm1634_vm11, %v7726_v12  ;;  %v7733_v0 = vpop.permute.xlu0 %3505  ;;  %v3555_v9 = vsel %vm1184_vm9, %v8549_v18, %v7591_v58  ;;  %v3563_v61 = vsel %vm1184_vm9, %v8550_v57, %v7595_v29  ;;  %v3770_v40 = vshrl.u32 %v3630_v24, 16 }
 0x3a6   : > { %v3738_v14 = vor.u32 %v3737_v47, %v3734_v17  ;;  %v3747_v44 = vshrl.u32 %v3624_v19, 16  ;;  %v3750_v48 = vshll.u32 %v3624_v19, 16  ;;  %v3634_v20 = vsel %vm1265_vm10, %v3563_v61, %v7601_v33 }
 0x3a7   : > { %v3773_v2 = vshll.u32 %v3630_v24, 16  ;;  %v5255_v1 = vcombine.low %v3012_v45, %v8551_v49  ;;  %v3746_v4 = vor.u32 %v3745_v50, %v3742_v31  ;;  %v3761_v47 = vor.u32 %v3760_v32, %v3757_v11  ;;  %v7763_v50 = vld [vmem:[#allocation2 + $0x108] sm:$0x8] }
 0x3a8   : > { %v3749_v36 = vrot.slane %v3747_v44, 3  ;;  %v3752_v51 = vrot.slane %v3750_v48, 4  ;;  %v3484_v35 = vpop.permute.xlu1 %3483  ;;  %v7748_v6 = vsel %vm1330_vm12, %v3731_v39, %v3738_v14  ;;  %v3785_v63 = vshrl.u32 %v3634_v20, 16 }
 0x3a9   : > { %v3628_v58 = vsel %vm1265_vm10, %v3555_v9, %v3484_v35  ;;  %5643 = vmatmul.mubr.msk.bf16.gmra.mrb[4].mxu1 %vm1634_vm11, %v7748_v6  ;;  %v3348_v17 = vpop.permute.xlu0 %3347  ;;  %v5259_v21 = vcombine.low %v3018_v26, %v7422_v37  ;;  %v8552_v14 = vcombine.low %v8543_v16, %v8543_v16  ;;  %v3788_v24 = vshll.u32 %v3634_v20, 16 }
 0x3aa   : > { %v3753_v30 = vor.u32 %v3752_v51, %v3749_v36  ;;  %v3762_v46 = vshrl.u32 %v3628_v58, 16  ;;  %v3765_v33 = vshll.u32 %v3628_v58, 16  ;;  %v3568_v42 = vsel %vm1184_vm9, %v5255_v1, %v3348_v17 }
 0x3ab   : > { %v3560_v44 = vsel %vm1184_vm9, %v8552_v14, %v3344_v27  ;;  %v3772_v45 = vrot.slane %v3770_v40, 3  ;;  %v3775_v18 = vrot.slane %v3773_v2, 4  ;;  %v3638_v16 = vsel %vm1265_vm10, %v3568_v42, %v7612_v3 }
 0x3ac   : > { %v3764_v39 = vrot.slane %v3762_v46, 3  ;;  %v3767_v19 = vrot.slane %v3765_v33, 4  ;;  %v3488_v48 = vpop.permute.xlu1 %3487  ;;  %v7761_v31 = vsel %vm1330_vm12, %v3746_v4, %v3753_v30  ;;  %v8553_v11 = vcombine.low %v7229_v55, %v7229_v55 }
 0x3ad   : > { %v3632_v9 = vsel %vm1265_vm10, %v3560_v44, %v3488_v48  ;;  %5646 = vmatprep.mubr.msk.bf16.mxu1 %vm1634_vm11, %v7761_v31  ;;  %v7770_v27 = vpop.permute.xlu0 %3509  ;;  %v8554_v20 = vcombine.low %v7626_v59, %v8539_v54  ;;  %v3787_v51 = vrot.slane %v3785_v63, 3  ;;  %v5263_v35 = vcombine.low %v7763_v50, %v7488_v5  ;;  %v5992_v63 = vld [vmem:[#allocation2 + $0x134] sm:$0xf] }
 0x3ae   : > { %v3768_v37 = vor.u32 %v3767_v19, %v3764_v39  ;;  %v3777_v57 = vshrl.u32 %v3632_v9, 16  ;;  %v3780_v61 = vshll.u32 %v3632_v9, 16  ;;  %v3565_v32 = vsel %vm1184_vm9, %v8553_v11, %v7595_v29  ;;  %v7789_v29 = vld [vmem:[#allocation2 + $0x130] sm:$0x8] }
 0x3af   : > { %v3573_v36 = vsel %vm1184_vm9, %v8554_v20, %v7599_v34  ;;  %v3790_v2 = vrot.slane %v3788_v24, 4  ;;  %v3800_v54 = vshrl.u32 %v3638_v16, 16  ;;  %v3803_v49 = vshll.u32 %v3638_v16, 16 }
 0x3b0   : > { %v3642_v3 = vsel %vm1265_vm10, %v3573_v36, %v7668_v28  ;;  %v3779_v26 = vrot.slane %v3777_v57, 3  ;;  %v3782_v58 = vrot.slane %v3780_v61, 4  ;;  %v3492_v40 = vpop.permute.xlu1 %3491  ;;  %v7787_v55 = vsel %vm1330_vm12, %v3761_v47, %v3768_v37 }
 0x3b1   : > { %v3636_v59 = vsel %vm1265_vm10, %v3565_v32, %v3492_v40  ;;  %5647 = vmatmul.mubr.msk.bf16.gmra.mrb[8].mxu1 %vm1634_vm11, %v7787_v55  ;;  %v3776_v5 = vor.u32 %v3775_v18, %v3772_v45  ;;  %v3352_v30 = vpop.permute.xlu0 %3351  ;;  %v3815_v46 = vshrl.u32 %v3642_v3, 16  ;;  %v3818_v33 = vshll.u32 %v3642_v3, 16 }
 0x3b2   : > { %v3783_v1 = vor.u32 %v3782_v58, %v3779_v26  ;;  %v3792_v4 = vshrl.u32 %v3636_v59, 16  ;;  %v3795_v28 = vshll.u32 %v3636_v59, 16  ;;  %v3578_v47 = vsel %vm1184_vm9, %v5259_v21, %v3352_v30 }
 0x3b3   : > { %v5267_v42 = vcombine.low %v7789_v29, %v5992_v63  ;;  %v8555_v14 = vcombine.low %v8544_v13, %v8544_v13  ;;  %v3791_v24 = vor.u32 %v3790_v2, %v3787_v51  ;;  %v3802_v45 = vrot.slane %v3800_v54, 3 }
 0x3b4   : > { %v3794_v39 = vrot.slane %v3792_v4, 3  ;;  %v3797_v19 = vrot.slane %v3795_v28, 4  ;;  %v3496_v48 = vpop.permute.xlu1 %3495  ;;  %v7801_v50 = vsel %vm1330_vm12, %v3776_v5, %v3783_v1  ;;  %v3805_v18 = vrot.slane %v3803_v49, 4 }
 0x3b5   : > { %v3570_v44 = vsel %vm1184_vm9, %v8555_v14, %v3348_v17  ;;  %5650 = vmatprep.mubr.msk.bf16.mxu1 %vm1634_vm11, %v7801_v50  ;;  %v3646_v13 = vsel %vm1265_vm10, %v3578_v47, %v7692_v8  ;;  %v3514_v61 = vpop.permute.xlu0 %3513  ;;  %v8556_v17 = vcombine.low %v7250_v43, %v7250_v43  ;;  %v8557_v11 = vcombine.low %v7635_v60, %v8540_v41 }
 0x3b6   : > { %v3640_v9 = vsel %vm1265_vm10, %v3570_v44, %v3496_v48  ;;  %v3798_v21 = vor.u32 %v3797_v19, %v3794_v39  ;;  %v3817_v20 = vrot.slane %v3815_v46, 3  ;;  %v3820_v36 = vrot.slane %v3818_v33, 4 }
 0x3b7   : > { %v3807_v37 = vshrl.u32 %v3640_v9, 16  ;;  %v3810_v57 = vshll.u32 %v3640_v9, 16  ;;  %v3575_v16 = vsel %vm1184_vm9, %v8556_v17, %v7599_v34  ;;  %v3583_v32 = vsel %vm1184_vm9, %v8557_v11, %v7608_v23  ;;  %v8562_v17 = vld [vmem:[#allocation11_spill] sm:$0xff] }
 0x3b8   : > { %v8558_v51 = vcombine.low %v7281_v62, %v7281_v62  ;;  %v3500_v58 = vpop.permute.xlu1 %3499  ;;  %v7824_v43 = vsel %vm1330_vm12, %v3791_v24, %v3798_v21  ;;  %v3650_v34 = vsel %vm1265_vm10, %v3583_v32, %v7733_v0  ;;  %v3806_v60 = vor.u32 %v3805_v18, %v3802_v45 }
 0x3b9   : > { %v3809_v3 = vrot.slane %v3807_v37, 3  ;;  %v3812_v26 = vrot.slane %v3810_v57, 4  ;;  %v3644_v41 = vsel %vm1265_vm10, %v3575_v16, %v3500_v58  ;;  %v3830_v40 = vshrl.u32 %v3646_v13, 16  ;;  %5651 = vmatmul.mubr.msk.bf16.gmra.mrb[12].mxu1 %vm1634_vm11, %v7824_v43  ;;  %v3356_v59 = vpop.permute.xlu0 %3355  ;;  %v8561_v57 = vld [vmem:[#allocation20_spill] sm:$0xff] }
 0x3ba   : > { %v3585_v8 = vsel %vm1184_vm9, %v8558_v51, %v7608_v23  ;;  %v3822_v62 = vshrl.u32 %v3644_v41, 16  ;;  %v3825_v2 = vshll.u32 %v3644_v41, 16  ;;  %v3833_v23 = vshll.u32 %v3646_v13, 16 }
 0x3bb   : > { %v3813_v29 = vor.u32 %v3812_v26, %v3809_v3  ;;  %v8559_v54 = vcombine.low %v7637_v10, %v8541_v38  ;;  %v3821_v5 = vor.u32 %v3820_v36, %v3817_v20  ;;  %v8560_v0 = vcombine.low %v7424_v15, %v7424_v15 }
 0x3bc   : > { %v3588_v4 = vsel %vm1184_vm9, %v5263_v35, %v3356_v59  ;;  %v3824_v28 = vrot.slane %v3822_v62, 3  ;;  %v3827_v46 = vrot.slane %v3825_v2, 4  ;;  %v3504_v33 = vpop.permute.xlu1 %3503  ;;  %v3845_v10 = vshrl.u32 %v3650_v34, 16 }
 0x3bd   : > { %v3593_v49 = vsel %vm1184_vm9, %v8559_v54, %v7632_v52  ;;  %v3580_v1 = vsel %vm1184_vm9, %v8560_v0, %v3352_v30  ;;  %v7842_v47 = vsel %vm1330_vm12, %v3806_v60, %v3813_v29  ;;  %v3654_v63 = vsel %vm1265_vm10, %v3588_v4, %v7770_v27  ;;  %v3360_v44 = vpop.permute.xlu0 %3359  ;;  %v8564_v4 = vld [vmem:[#allocation9_spill] sm:$0xff] }
 0x3be   : > { %v3848_v38 = vshll.u32 %v3650_v34, 16  ;;  %v3832_v39 = vrot.slane %v3830_v40, 3  ;;  %v3648_v19 = vsel %vm1265_vm10, %v3580_v1, %v3504_v33  ;;  %5654 = vmatprep.mubr.msk.bf16.mxu1 %vm1634_vm11, %v7842_v47  ;;  %v3828_v15 = vor.u32 %v3827_v46, %v3824_v28 }
 0x3bf   : > { %v3835_v30 = vrot.slane %v3833_v23, 4  ;;  %v3837_v35 = vshrl.u32 %v3648_v19, 16  ;;  %v3840_v14 = vshll.u32 %v3648_v19, 16  ;;  %v3658_v48 = vsel %vm1265_vm10, %v3593_v49, %v3514_v61 }
 0x3c0   : > { %v3860_v24 = vshrl.u32 %v3654_v63, 16  ;;  %v3863_v45 = vshll.u32 %v3654_v63, 16  ;;  %v3598_v18 = vsel %vm1184_vm9, %v5267_v42, %v3360_v44  ;;  %v3508_v21 = vpop.permute.xlu1 %3507  ;;  %v7852_v37 = vsel %vm1330_vm12, %v3821_v5, %v3828_v15  ;;  %v3033_v15 = vld [vmem:[#allocation2 + $0x144] sm:$0x8] }
 0x3c1   : > { %v3839_v27 = vrot.slane %v3837_v35, 3  ;;  %v3842_v9 = vrot.slane %v3840_v14, 4  ;;  %v3662_v13 = vsel %vm1265_vm10, %v3598_v18, %v8561_v57  ;;  %v8563_v16 = vcombine.low %v8562_v17, %v8562_v17  ;;  %5655 = vmatmul.mubr.msk.bf16.gmra.mrb[16].mxu1 %vm1634_vm11, %v7852_v37  ;;  %v3933_v26 = vpop.permute.xlu0 %3932 }
 0x3c2   : > { %v3847_v61 = vrot.slane %v3845_v10, 3  ;;  %v3850_v32 = vrot.slane %v3848_v38, 4  ;;  %v3652_v20 = vsel %vm1265_vm10, %v3585_v8, %v3508_v21  ;;  %v3836_v42 = vor.u32 %v3835_v30, %v3832_v39  ;;  %v8566_v21 = vld [vmem:[#allocation15_spill] sm:$0xff] }
 0x3c3   : > { %v3595_v11 = vsel %vm1184_vm9, %v8563_v16, %v7632_v52  ;;  %v3843_v36 = vor.u32 %v3842_v9, %v3839_v27  ;;  %v3852_v51 = vshrl.u32 %v3652_v20, 16  ;;  %v3855_v3 = vshll.u32 %v3652_v20, 16  ;;  %v8567_v20 = vld [vmem:[#allocation17_spill] sm:$0xff] }
 0x3c4   : > { %v3875_v58 = vshrl.u32 %v3658_v48, 16  ;;  %v3878_v34 = vshll.u32 %v3658_v48, 16  ;;  %v3862_v60 = vrot.slane %v3860_v24, 3  ;;  %v3865_v41 = vrot.slane %v3863_v45, 4  ;;  %v3512_v8 = vpop.permute.xlu1 %3511 }
 0x3c5   : > { %v3854_v40 = vrot.slane %v3852_v51, 3  ;;  %v3857_v29 = vrot.slane %v3855_v3, 4  ;;  %v3590_v52 = vsel %vm1184_vm9, %v5264_v53, %v3356_v59  ;;  %v7869_v62 = vsel %vm1330_vm12, %v3836_v42, %v3843_v36  ;;  %v3520_v59 = vpop.permute.xlu0 %3519  ;;  %v8568_v36 = vld [vmem:[#allocation16_spill] sm:$0xff] }
 0x3c6   : > { %v3851_v2 = vor.u32 %v3850_v32, %v3847_v61  ;;  %v3656_v23 = vsel %vm1265_vm10, %v3590_v52, %v3512_v8  ;;  %v3890_v54 = vshrl.u32 %v3662_v13, 16  ;;  %v3893_v49 = vshll.u32 %v3662_v13, 16  ;;  %5658 = vmatprep.mubr.msk.bf16.mxu1 %vm1634_vm11, %v7869_v62 }
 0x3c7   : > { %v3858_v5 = vor.u32 %v3857_v29, %v3854_v40  ;;  %v3867_v0 = vshrl.u32 %v3656_v23, 16  ;;  %v3870_v1 = vshll.u32 %v3656_v23, 16  ;;  %v8565_v22 = vcombine.low %v8564_v4, %v8564_v4  ;;  %v2985_v40 = vld [vmem:[#allocation2 + $0x4] sm:$0x8] }
 0x3c8   : > { %v3877_v28 = vrot.slane %v3875_v58, 3  ;;  %v3880_v46 = vrot.slane %v3878_v34, 4  ;;  %v3866_v33 = vor.u32 %v3865_v41, %v3862_v60  ;;  %v3516_v39 = vpop.permute.xlu1 %3515  ;;  %v3892_v35 = vrot.slane %v3890_v54, 3 }
 0x3c9   : > { %v3600_v53 = vsel %vm1184_vm9, %v8565_v22, %v3360_v44  ;;  %v3869_v10 = vrot.slane %v3867_v0, 3  ;;  %v3872_v38 = vrot.slane %v3870_v1, 4  ;;  %v7880_v19 = vsel %vm1330_vm12, %v3851_v2, %v3858_v5  ;;  %v3330_v9 = vpop.permute.xlu0 %3329  ;;  %v8569_v22 = vld [vmem:[#allocation14_spill] sm:$0xff] }
 0x3ca   : > { %v3664_v63 = vsel %vm1265_vm10, %v3600_v53, %v3520_v59  ;;  %v3895_v14 = vrot.slane %v3893_v49, 4  ;;  %v3660_v48 = vsel %vm1265_vm10, %v3595_v11, %v3516_v39  ;;  %5659 = vmatmul.mubr.msk.bf16.gmra.mrb[20].mxu1 %vm1634_vm11, %v7880_v19  ;;  %v5301_v57 = vcombine.low %v3033_v15, %v8566_v21 }
 0x3cb   : > { %v3897_v30 = vshrl.u32 %v3664_v63, 16  ;;  %v3900_v44 = vshll.u32 %v3664_v63, 16  ;;  %v3873_v24 = vor.u32 %v3872_v38, %v3869_v10  ;;  %v3882_v45 = vshrl.u32 %v3660_v48, 16 }
 0x3cc   : > { %v3885_v18 = vshll.u32 %v3660_v48, 16  ;;  %v3925_v61 = vpop.permute.xlu1 %3924  ;;  %v5238_v11 = vcombine.low %v8567_v20, %v8567_v20  ;;  %v3896_v42 = vor.u32 %v3895_v14, %v3892_v35  ;;  %v5302_v51 = vcombine.low %v8568_v36, %v8568_v36  ;;  %v3036_v35 = vld [vmem:[#allocation2 + $0x158] sm:$0x8] }
 0x3cd   : > { %v3899_v27 = vrot.slane %v3897_v30, 3  ;;  %v3902_v13 = vrot.slane %v3900_v44, 4  ;;  %v3884_v17 = vrot.slane %v3882_v45, 3  ;;  %v7887_v32 = vsel %vm1330_vm12, %v3866_v33, %v3873_v24  ;;  %v3460_v52 = vpop.permute.xlu0 %3459 }
 0x3ce   : > { %v3887_v16 = vrot.slane %v3885_v18, 4  ;;  %v3938_v3 = vsel %vm1184_vm9, %v5301_v57, %v3925_v61  ;;  %5662 = vmatprep.mubr.msk.bf16.mxu1 %vm1634_vm11, %v7887_v32  ;;  %v3881_v34 = vor.u32 %v3880_v46, %v3877_v28  ;;  %v3525_v29 = vsel %vm1184_vm9, %v5238_v11, %v3330_v9  ;;  %v8570_v18 = vld [vmem:[#allocation19_spill] sm:$0xff]  ;;  %v8571_v11 = vld [vmem:[#allocation18_spill] sm:$0xff] }
 0x3cf   : > { %v3903_v58 = vor.u32 %v3902_v13, %v3899_v27  ;;  %v3942_v41 = vsel %vm1265_vm10, %v3938_v3, %v3933_v26  ;;  %v3604_v23 = vsel %vm1265_vm10, %v3525_v29, %v3460_v52  ;;  %v3940_v49 = vsel %vm1184_vm9, %v5302_v51, %v3925_v61 }
 0x3d0   : > { %v3888_v60 = vor.u32 %v3887_v16, %v3884_v17  ;;  %v3945_v8 = vshrl.u32 %v3942_v41, 16  ;;  %v3948_v2 = vshll.u32 %v3942_v41, 16  ;;  %v3935_v5 = vpop.permute.xlu1 %3934  ;;  %v3672_v1 = vshrl.u32 %v3604_v23, 16 }
 0x3d1   : > { %v7900_v54 = vsel %vm1330_vm12, %v3896_v42, %v3903_v58  ;;  %v3675_v4 = vshll.u32 %v3604_v23, 16  ;;  %v3944_v26 = vsel %vm1265_vm10, %v3940_v49, %v3935_v5  ;;  %v5237_v53 = vcombine.low %v2985_v40, %v8569_v22  ;;  %v4378_v21 = vpop.permute.xlu0 %4377 }
 0x3d2   : > { %v7904_v0 = vsel %vm1330_vm12, %v3881_v34, %v3888_v60  ;;  %v3947_v59 = vrot.slane %v3945_v8, 3  ;;  %v3950_v28 = vrot.slane %v3948_v2, 4  ;;  %v3952_v46 = vshrl.u32 %v3944_v26, 16 }
 0x3d3   : > { %5663 = vmatmul.mubr.msk.bf16.gmra.mrb[24].mxu1 %vm1634_vm11, %v7904_v0  ;;  %v3955_v33 = vshll.u32 %v3944_v26, 16  ;;  %v3523_v63 = vsel %vm1184_vm9, %v5237_v53, %v3330_v9  ;;  %v3674_v15 = vrot.slane %v3672_v1, 3  ;;  %v3677_v30 = vrot.slane %v3675_v4, 4 }
 0x3d4   : > { %5666 = vmatprep.mubr.msk.bf16.mxu1 %vm1634_vm11, %v7900_v54  ;;  %v3954_v10 = vrot.slane %v3952_v46, 3  ;;  %v3458_v39 = vpop.permute.xlu1 %3457  ;;  %v3951_v48 = vor.u32 %v3950_v28, %v3947_v59  ;;  %v5341_v27 = vcombine.low %v3036_v35, %v8570_v18  ;;  %v5342_v42 = vcombine.low %v8571_v11, %v8571_v11 }
 0x3d5   : > { %v3957_v38 = vrot.slane %v3955_v33, 4  ;;  %v3602_v14 = vsel %vm1265_vm10, %v3523_v63, %v3458_v39  ;;  %v3678_v17 = vor.u32 %v3677_v30, %v3674_v15  ;;  %v4417_v2 = vsel %vm1683_vm8, %v7705_v7, 0 }
 0x3d6   : > { %v3665_v24 = vshrl.u32 %v3602_v14, 16  ;;  %v3668_v45 = vshll.u32 %v3602_v14, 16 }
 0x3d7   : > { %v3958_v44 = vor.u32 %v3957_v38, %v3954_v10 }
 0x3d8   : > { %v3667_v57 = vrot.slane %v3665_v24, 3  ;;  %v3670_v13 = vrot.slane %v3668_v45, 4  ;;  %v4370_v16 = vpop.permute.xlu1 %4369 }
 0x3d9   : > { %v3959_v9 = vsel %vm1330_vm12, %v3951_v48, %v3958_v44  ;;  %v4383_v61 = vsel %vm1184_vm9, %v5341_v27, %v4370_v16  ;;  %v4385_v58 = vsel %vm1184_vm9, %v5342_v42, %v4370_v16 }
 0x3da   : > { %v3671_v20 = vor.u32 %v3670_v13, %v3667_v57  ;;  %v4387_v36 = vsel %vm1265_vm10, %v4383_v61, %v4378_v21 }
 0x3db   : > { %5667 = vmatmul.mubr.msk.bf16.gmra.mrb[28].mxu1 %vm1634_vm11, %v3959_v9  ;;  %v4390_v51 = vshrl.u32 %v4387_v36, 16  ;;  %v4393_v3 = vshll.u32 %v4387_v36, 16 }
 0x3dc   : > { %v4380_v34 = vpop.permute.xlu1 %4379  ;;  %v3679_v60 = vsel %vm1330_vm12, %v3671_v20, %v3678_v17 }
 0x3dd   : > { %v4389_v41 = vsel %vm1265_vm10, %v4385_v58, %v4380_v34  ;;  %5672 = vmatprep.mubr.msk.bf16.mxu1 %vm1634_vm11, %v3679_v60  ;;  %v4392_v40 = vrot.slane %v4390_v51, 3  ;;  %v4395_v29 = vrot.slane %v4393_v3, 4 }
 0x3de   : > { %v4397_v52 = vshrl.u32 %v4389_v41, 16  ;;  %v4400_v8 = vshll.u32 %v4389_v41, 16 }
 0x3df   : > { %v4396_v5 = vor.u32 %v4395_v29, %v4392_v40 }
 0x3e0   : > { %v4399_v23 = vrot.slane %v4397_v52, 3  ;;  %v4402_v49 = vrot.slane %v4400_v8, 4 }
 0x3e2   : > { %v4403_v1 = vor.u32 %v4402_v49, %v4399_v23 }
 0x3e3   : > { %5673 = vmatmul.mubr.msk.bf16.vlgmr.msra.gmra.mrb[0].mxu1 %vm1634_vm11, %v7686_v56 }
 0x3e4   : > { %5705 = vmatpush3.bf16.msra.mxu1 %v4417_v2  ;;  %5676 = vmatprep.mubr.msk.bf16.mxu1 %vm1634_vm11, %v7710_v25  ;;  %v4404_v4 = vsel %vm1330_vm12, %v4396_v5, %v4403_v1 }
 0x3eb   : > { %5677 = vmatmul.mubr.msk.bf16.gmra.mrb[4].mxu1 %vm1634_vm11, %v7726_v12 }
 0x3ec   : > { %5680 = vmatprep.mubr.msk.bf16.mxu1 %vm1634_vm11, %v7748_v6 }
 0x3f3   : > { %5681 = vmatmul.mubr.msk.bf16.gmra.mrb[8].mxu1 %vm1634_vm11, %v7761_v31 }
 0x3f4   : > { %5684 = vmatprep.mubr.msk.bf16.mxu1 %vm1634_vm11, %v7787_v55 }
 0x3fb   : > { %5685 = vmatmul.mubr.msk.bf16.gmra.mrb[12].mxu1 %vm1634_vm11, %v7801_v50 }
 0x3fc   : > { %5688 = vmatprep.mubr.msk.bf16.mxu1 %vm1634_vm11, %v7824_v43 }
 0x403   : > { %5689 = vmatmul.mubr.msk.bf16.gmra.mrb[16].mxu1 %vm1634_vm11, %v7842_v47 }
 0x404   : > { %5692 = vmatprep.mubr.msk.bf16.mxu1 %vm1634_vm11, %v7852_v37 }
 0x40b   : > { %5693 = vmatmul.mubr.msk.bf16.gmra.mrb[20].mxu1 %vm1634_vm11, %v7869_v62 }
 0x40c   : > { %5696 = vmatprep.mubr.msk.bf16.mxu1 %vm1634_vm11, %v7880_v19 }
 0x413   : > { %5697 = vmatmul.mubr.msk.bf16.gmra.mrb[24].mxu1 %vm1634_vm11, %v7887_v32 }
 0x414   : > { %5700 = vmatprep.mubr.msk.bf16.mxu1 %vm1634_vm11, %v7904_v0 }
 0x41b   : > { %5701 = vmatmul.mubr.msk.bf16.gmra.mrb[28].mxu1 %vm1634_vm11, %v7900_v54 }
 0x41c   : > { %5706 = vmatprep.mubr.msk.bf16.mxu1 %vm1634_vm11, %v7710_v25 }
 0x423   : > { %5707 = vmatmul.mubr.msk.bf16.vlgmr.msra.gmra.mrb[0].mxu1 %vm1634_vm11, %v7726_v12 }
 0x424   : > { %5710 = vmatprep.mubr.msk.bf16.mxu1 %vm1634_vm11, %v7748_v6 }
 0x42b   : > { %5711 = vmatmul.mubr.msk.bf16.gmra.mrb[4].mxu1 %vm1634_vm11, %v7761_v31 }
 0x42c   : > { %5714 = vmatprep.mubr.msk.bf16.mxu1 %vm1634_vm11, %v7787_v55 }
 0x433   : > { %5715 = vmatmul.mubr.msk.bf16.gmra.mrb[8].mxu1 %vm1634_vm11, %v7801_v50 }
 0x434   : > { %5718 = vmatprep.mubr.msk.bf16.mxu1 %vm1634_vm11, %v7824_v43 }
 0x43b   : > { %5719 = vmatmul.mubr.msk.bf16.gmra.mrb[12].mxu1 %vm1634_vm11, %v7842_v47 }
 0x43c   : > { %5722 = vmatprep.mubr.msk.bf16.mxu1 %vm1634_vm11, %v7852_v37 }
 0x443   : > { %5723 = vmatmul.mubr.msk.bf16.gmra.mrb[16].mxu1 %vm1634_vm11, %v7869_v62 }
 0x444   : > { %5726 = vmatprep.mubr.msk.bf16.mxu1 %vm1634_vm11, %v7880_v19 }
 0x44b   : > { %5727 = vmatmul.mubr.msk.bf16.gmra.mrb[20].mxu1 %vm1634_vm11, %v7887_v32 }
 0x44c   : > { %5730 = vmatprep.mubr.msk.bf16.mxu1 %vm1634_vm11, %v7904_v0 }
 0x453   : > { %5731 = vmatmul.mubr.msk.bf16.gmra.mrb[24].mxu1 %vm1634_vm11, %v7900_v54 }
 0x454   : > { %5734 = vmatprep.mubr.msk.bf16.mxu1 %vm1634_vm11, %v3959_v9 }
 0x45b   : > { %5735 = vmatmul.mubr.msk.bf16.gmra.mrb[28].mxu1 %vm1634_vm11, %v4404_v4 }
 0x4f6   : > { %v7988_v56 = vpop.f32.mrb[0].mxu1 }
 0x4f7   : > { %v7990_v7 = vpop.f32.mrb[1].mxu1  ;;  %v4615_v50 = vsel %vm1184_vm9, %v7988_v56, 0.0 }
 0x4f8   : > { %v7992_v25 = vpop.f32.mrb[2].mxu1  ;;  %v4612_v6 = vsel %vm1184_vm9, %v7990_v7, 0.0 }
 0x4f9   : > { %v7994_v12 = vpop.f32.mrb[3].mxu1  ;;  %v4617_v47 = vsel %vm1184_vm9, %v7992_v25, 0.0 }
 0x4fa   : > { %v4613_v31 = vsel %vm1184_vm9, %v7994_v12, 0.0 }
 0x4fb   : > { %v4614_v55 = vadd.f32 %v4613_v31, %v4612_v6 }
 0x4fd   : > { %v4616_v43 = vadd.f32 %v4615_v50, %v4614_v55 }
 0x4fe   : > { %v8004_v37 = vpop.f32.mrb[4].mxu1 }
 0x4ff   : > { %v8006_v62 = vpop.f32.mrb[5].mxu1  ;;  %v4618_v19 = vadd.f32 %v4617_v47, %v4616_v43  ;;  %v4623_v59 = vsel %vm1184_vm9, %v8004_v37, 0.0 }
 0x500   : > { %v4619_v32 = vsel %vm1184_vm9, %v8006_v62, 0.0  ;;  %v8010_v54 = vpop.f32.mrb[6].mxu1 }
 0x501   : > { %v4620_v0 = vadd.f32 %v4619_v32, %v4618_v19  ;;  %v8012_v26 = vpop.f32.mrb[7].mxu1  ;;  %v4625_v46 = vsel %vm1184_vm9, %v8010_v54, 0.0 }
 0x502   : > { %v4621_v22 = vsel %vm1184_vm9, %v8012_v26, 0.0 }
 0x503   : > { %v4622_v53 = vadd.f32 %v4621_v22, %v4620_v0 }
 0x505   : > { %v4624_v28 = vadd.f32 %v4623_v59, %v4622_v53 }
 0x506   : > { %v8020_v33 = vpop.f32.mrb[8].mxu1 }
 0x507   : > { %v8022_v63 = vpop.f32.mrb[9].mxu1  ;;  %v4626_v10 = vadd.f32 %v4625_v46, %v4624_v28  ;;  %v4631_v48 = vsel %vm1184_vm9, %v8020_v33, 0.0 }
 0x508   : > { %v4627_v38 = vsel %vm1184_vm9, %v8022_v63, 0.0  ;;  %v8026_v39 = vpop.f32.mrb[10].mxu1 }
 0x509   : > { %v4628_v15 = vadd.f32 %v4627_v38, %v4626_v10  ;;  %v8028_v30 = vpop.f32.mrb[11].mxu1  ;;  %v4633_v24 = vsel %vm1184_vm9, %v8026_v39, 0.0 }
 0x50a   : > { %v4629_v35 = vsel %vm1184_vm9, %v8028_v30, 0.0 }
 0x50b   : > { %v4630_v14 = vadd.f32 %v4629_v35, %v4628_v15 }
 0x50d   : > { %v4632_v44 = vadd.f32 %v4631_v48, %v4630_v14 }
 0x50e   : > { %v8036_v45 = vpop.f32.mrb[12].mxu1 }
 0x50f   : > { %v8038_v18 = vpop.f32.mrb[13].mxu1  ;;  %v4634_v27 = vadd.f32 %v4633_v24, %v4632_v44  ;;  %v4639_v61 = vsel %vm1184_vm9, %v8036_v45, 0.0 }
 0x510   : > { %v4635_v21 = vsel %vm1184_vm9, %v8038_v18, 0.0  ;;  %v8042_v57 = vpop.f32.mrb[14].mxu1 }
 0x511   : > { %v4636_v13 = vadd.f32 %v4635_v21, %v4634_v27  ;;  %v8044_v17 = vpop.f32.mrb[15].mxu1  ;;  %v4641_v11 = vsel %vm1184_vm9, %v8042_v57, 0.0 }
 0x512   : > { %v4637_v16 = vsel %vm1184_vm9, %v8044_v17, 0.0 }
 0x513   : > { %v4638_v9 = vadd.f32 %v4637_v16, %v4636_v13 }
 0x515   : > { %v4640_v20 = vadd.f32 %v4639_v61, %v4638_v9 }
 0x516   : > { %v8052_v42 = vpop.f32.mrb[16].mxu1 }
 0x517   : > { %v8054_v36 = vpop.f32.mrb[17].mxu1  ;;  %v4642_v51 = vadd.f32 %v4641_v11, %v4640_v20  ;;  %v4647_v29 = vsel %vm1184_vm9, %v8052_v42, 0.0 }
 0x518   : > { %v4643_v3 = vsel %vm1184_vm9, %v8054_v36, 0.0  ;;  %v8058_v58 = vpop.f32.mrb[18].mxu1 }
 0x519   : > { %v4644_v34 = vadd.f32 %v4643_v3, %v4642_v51  ;;  %v8060_v60 = vpop.f32.mrb[19].mxu1  ;;  %v4649_v8 = vsel %vm1184_vm9, %v8058_v58, 0.0 }
 0x51a   : > { %v4645_v41 = vsel %vm1184_vm9, %v8060_v60, 0.0 }
 0x51b   : > { %v4646_v40 = vadd.f32 %v4645_v41, %v4644_v34 }
 0x51d   : > { %v4648_v52 = vadd.f32 %v4647_v29, %v4646_v40 }
 0x51e   : > { %v8068_v2 = vpop.f32.mrb[20].mxu1 }
 0x51f   : > { %v8070_v23 = vpop.f32.mrb[21].mxu1  ;;  %v4650_v49 = vadd.f32 %v4649_v8, %v4648_v52  ;;  %v4655_v50 = vsel %vm1184_vm9, %v8068_v2, 0.0 }
 0x520   : > { %v4651_v5 = vsel %vm1184_vm9, %v8070_v23, 0.0  ;;  %v8074_v1 = vpop.f32.mrb[22].mxu1 }
 0x521   : > { %v4652_v4 = vadd.f32 %v4651_v5, %v4650_v49  ;;  %v4536_v6 = vpop.f32.mrb[23].mxu1  ;;  %v4657_v47 = vsel %vm1184_vm9, %v8074_v1, 0.0 }
 0x522   : > { %v4653_v31 = vsel %vm1184_vm9, %v4536_v6, 0.0 }
 0x523   : > { %v4654_v55 = vadd.f32 %v4653_v31, %v4652_v4 }
 0x525   : > { %v4656_v43 = vadd.f32 %v4655_v50, %v4654_v55 }
 0x526   : > { %v5732_v19 = vpop.f32.mrb[24].mxu1 }
 0x527   : > { %v4549_v32 = vpop.f32.mrb[25].mxu1  ;;  %v4658_v0 = vadd.f32 %v4657_v47, %v4656_v43  ;;  %v4663_v38 = vsel %vm1184_vm9, %v5732_v19, 0.0 }
 0x528   : > { %v4659_v22 = vsel %vm1184_vm9, %v4549_v32, 0.0  ;;  %v5733_v53 = vpop.f32.mrb[26].mxu1 }
 0x529   : > { %v4660_v59 = vadd.f32 %v4659_v22, %v4658_v0  ;;  %v4552_v28 = vpop.f32.mrb[27].mxu1  ;;  %v4665_v35 = vsel %vm1184_vm9, %v5733_v53, 0.0 }
 0x52a   : > { %v4661_v46 = vsel %vm1184_vm9, %v4552_v28, 0.0 }
 0x52b   : > { %v4662_v10 = vadd.f32 %v4661_v46, %v4660_v59 }
 0x52d   : > { %v4664_v15 = vadd.f32 %v4663_v38, %v4662_v10 }
 0x52e   : > { %v5736_v14 = vpop.f32.mrb[28].mxu1 }
 0x52f   : > { %v4565_v48 = vpop.f32.mrb[29].mxu1  ;;  %v4666_v44 = vadd.f32 %v4665_v35, %v4664_v15  ;;  %v4671_v61 = vsel %vm1184_vm9, %v5736_v14, 0.0 }
 0x530   : > { %v4667_v24 = vsel %vm1184_vm9, %v4565_v48, 0.0  ;;  %v5737_v27 = vpop.f32.mrb[30].mxu1 }
 0x531   : > { %v4668_v21 = vadd.f32 %v4667_v24, %v4666_v44  ;;  %v4568_v13 = vpop.f32.mrb[31].mxu1  ;;  %v4673_v11 = vsel %vm1184_vm9, %v5737_v27, 0.0 }
 0x532   : > { %v4669_v16 = vsel %vm1184_vm9, %v4568_v13, 0.0 }
 0x533   : > { %v4670_v9 = vadd.f32 %v4669_v16, %v4668_v21 }
 0x535   : > { %v4672_v20 = vadd.f32 %v4671_v61, %v4670_v9 }
 0x537   : > { %v4674_v51 = vadd.f32 %v4673_v11, %v4672_v20 }
 0x539   : > { %v4675_v3 = vrot.slane %v4674_v51, 4 }
 0x53b   : > { %v4676_v34 = vadd.f32 %v4675_v3, %v4674_v51 }
 0x53d   : > { %v4677_v41 = vrot.slane %v4676_v34, 2 }
 0x53f   : > { %v4678_v40 = vadd.f32 %v4677_v41, %v4676_v34 }
 0x541   : > { %v4679_v29 = vrot.slane %v4678_v40, 1 }
 0x543   : > { %v4680_v52 = vadd.f32 %v4679_v29, %v4678_v40 }
 0x545   : > { %v4681_v8 = vmul.f32 0.00390625, %v4680_v52 }
 0x547   : > { %v8090_v49 = vsub.f32 %v7990_v7, %v4681_v8  ;;  %v8093_v5 = vsub.f32 %v7994_v12, %v4681_v8  ;;  %v8096_v4 = vsub.f32 %v7988_v56, %v4681_v8  ;;  %v8099_v31 = vsub.f32 %v7992_v25, %v4681_v8 }
 0x548   : > { %v8102_v55 = vsub.f32 %v8006_v62, %v4681_v8  ;;  %v8105_v50 = vsub.f32 %v8012_v26, %v4681_v8  ;;  %v8108_v43 = vsub.f32 %v8004_v37, %v4681_v8  ;;  %v8111_v7 = vsub.f32 %v8010_v54, %v4681_v8 }
 0x549   : > { %v8114_v12 = vsub.f32 %v8022_v63, %v4681_v8  ;;  %v8117_v56 = vsub.f32 %v8028_v30, %v4681_v8  ;;  %v8120_v25 = vsub.f32 %v8020_v33, %v4681_v8  ;;  %v8123_v62 = vsub.f32 %v8026_v39, %v4681_v8 }
 0x54a   : > { %v8126_v26 = vsub.f32 %v8038_v18, %v4681_v8  ;;  %v8129_v37 = vsub.f32 %v8044_v17, %v4681_v8  ;;  %v8132_v54 = vsub.f32 %v8036_v45, %v4681_v8  ;;  %v8135_v63 = vsub.f32 %v8042_v57, %v4681_v8 }
 0x54b   : > { %v8138_v30 = vsub.f32 %v8054_v36, %v4681_v8  ;;  %v8141_v33 = vsub.f32 %v8060_v60, %v4681_v8  ;;  %v8144_v39 = vsub.f32 %v8052_v42, %v4681_v8  ;;  %v8147_v18 = vsub.f32 %v8058_v58, %v4681_v8 }
 0x54c   : > { %v8150_v17 = vsub.f32 %v8070_v23, %v4681_v8  ;;  %v8152_v45 = vsub.f32 %v4536_v6, %v4681_v8  ;;  %v8155_v57 = vsub.f32 %v8068_v2, %v4681_v8  ;;  %v8158_v36 = vsub.f32 %v8074_v1, %v4681_v8 }
 0x54d   : > { %v8160_v47 = vsub.f32 %v4549_v32, %v4681_v8  ;;  %v8162_v60 = vsub.f32 %v4552_v28, %v4681_v8  ;;  %v8164_v42 = vsub.f32 %v5732_v19, %v4681_v8  ;;  %v8166_v0 = vsub.f32 %v5733_v53, %v4681_v8 }
 0x54e   : > { %v8168_v58 = vsub.f32 %v4565_v48, %v4681_v8  ;;  %v8170_v23 = vsub.f32 %v4568_v13, %v4681_v8  ;;  %v8172_v6 = vsub.f32 %v5736_v14, %v4681_v8  ;;  %v8174_v22 = vsub.f32 %v5737_v27, %v4681_v8 }
 0x54f   : > { %v4714_v2 = vmul.f32 %v8090_v49, %v8090_v49  ;;  %v4715_v1 = vmul.f32 %v8093_v5, %v8093_v5  ;;  %v4716_v19 = vmul.f32 %v8096_v4, %v8096_v4  ;;  %v4717_v32 = vmul.f32 %v8099_v31, %v8099_v31 }
 0x550   : > { %v4718_v46 = vmul.f32 %v8102_v55, %v8102_v55  ;;  %v4719_v15 = vmul.f32 %v8105_v50, %v8105_v50  ;;  %v4720_v48 = vmul.f32 %v8108_v43, %v8108_v43  ;;  %v4721_v27 = vmul.f32 %v8111_v7, %v8111_v7 }
 0x551   : > { %v4746_v53 = vsel %vm1184_vm9, %v4714_v2, 0.0  ;;  %v4747_v59 = vsel %vm1184_vm9, %v4715_v1, 0.0  ;;  %v4749_v10 = vsel %vm1184_vm9, %v4716_v19, 0.0  ;;  %v4751_v35 = vsel %vm1184_vm9, %v4717_v32, 0.0 }
 0x552   : > { %v4748_v28 = vadd.f32 %v4747_v59, %v4746_v53  ;;  %v4753_v44 = vsel %vm1184_vm9, %v4718_v46, 0.0  ;;  %v4755_v21 = vsel %vm1184_vm9, %v4719_v15, 0.0  ;;  %v4722_v16 = vmul.f32 %v8114_v12, %v8114_v12 }
 0x553   : > { %v4757_v9 = vsel %vm1184_vm9, %v4720_v48, 0.0  ;;  %v4723_v20 = vmul.f32 %v8117_v56, %v8117_v56  ;;  %v4759_v11 = vsel %vm1184_vm9, %v4721_v27, 0.0  ;;  %v4724_v3 = vmul.f32 %v8120_v25, %v8120_v25 }
 0x554   : > { %v4750_v38 = vadd.f32 %v4749_v10, %v4748_v28  ;;  %v4761_v34 = vsel %vm1184_vm9, %v4722_v16, 0.0  ;;  %v4725_v40 = vmul.f32 %v8123_v62, %v8123_v62  ;;  %v4726_v8 = vmul.f32 %v8126_v26, %v8126_v26 }
 0x555   : > { %v4763_v29 = vsel %vm1184_vm9, %v4723_v20, 0.0  ;;  %v4765_v2 = vsel %vm1184_vm9, %v4724_v3, 0.0  ;;  %v4727_v19 = vmul.f32 %v8129_v37, %v8129_v37  ;;  %v4728_v59 = vmul.f32 %v8132_v54, %v8132_v54 }
 0x556   : > { %v4752_v14 = vadd.f32 %v4751_v35, %v4750_v38  ;;  %v4767_v32 = vsel %vm1184_vm9, %v4725_v40, 0.0  ;;  %v4769_v28 = vsel %vm1184_vm9, %v4726_v8, 0.0  ;;  %v4729_v10 = vmul.f32 %v8135_v63, %v8135_v63 }
 0x557   : > { %v4771_v38 = vsel %vm1184_vm9, %v4727_v19, 0.0  ;;  %v4730_v35 = vmul.f32 %v8138_v30, %v8138_v30 }
 0x558   : > { %v4754_v24 = vadd.f32 %v4753_v44, %v4752_v14  ;;  %v4773_v14 = vsel %vm1184_vm9, %v4728_v59, 0.0  ;;  %v4731_v44 = vmul.f32 %v8141_v33, %v8141_v33 }
 0x55a   : > { %v4756_v13 = vadd.f32 %v4755_v21, %v4754_v24  ;;  %v4775_v24 = vsel %vm1184_vm9, %v4729_v10, 0.0  ;;  %v4732_v21 = vmul.f32 %v8144_v39, %v8144_v39 }
 0x55c   : > { %v4758_v61 = vadd.f32 %v4757_v9, %v4756_v13  ;;  %v4777_v13 = vsel %vm1184_vm9, %v4730_v35, 0.0  ;;  %v4733_v9 = vmul.f32 %v8147_v18, %v8147_v18 }
 0x55e   : > { %v4760_v51 = vadd.f32 %v4759_v11, %v4758_v61  ;;  %v4779_v61 = vsel %vm1184_vm9, %v4731_v44, 0.0  ;;  %v4734_v11 = vmul.f32 %v8150_v17, %v8150_v17 }
 0x560   : > { %v4762_v41 = vadd.f32 %v4761_v34, %v4760_v51  ;;  %v4781_v51 = vsel %vm1184_vm9, %v4732_v21, 0.0  ;;  %v4735_v34 = vmul.f32 %v8152_v45, %v8152_v45 }
 0x562   : > { %v4764_v52 = vadd.f32 %v4763_v29, %v4762_v41  ;;  %v4783_v41 = vsel %vm1184_vm9, %v4733_v9, 0.0  ;;  %v4736_v29 = vmul.f32 %v8155_v57, %v8155_v57 }
 0x564   : > { %v4766_v1 = vadd.f32 %v4765_v2, %v4764_v52  ;;  %v4785_v52 = vsel %vm1184_vm9, %v4734_v11, 0.0  ;;  %v4737_v2 = vmul.f32 %v8158_v36, %v8158_v36 }
 0x566   : > { %v4768_v53 = vadd.f32 %v4767_v32, %v4766_v1  ;;  %v4787_v1 = vsel %vm1184_vm9, %v4735_v34, 0.0  ;;  %v4738_v32 = vmul.f32 %v8160_v47, %v8160_v47 }
 0x568   : > { %v4770_v46 = vadd.f32 %v4769_v28, %v4768_v53  ;;  %v4789_v53 = vsel %vm1184_vm9, %v4736_v29, 0.0  ;;  %v4739_v28 = vmul.f32 %v8162_v60, %v8162_v60 }
 0x56a   : > { %v4772_v15 = vadd.f32 %v4771_v38, %v4770_v46  ;;  %v4791_v46 = vsel %vm1184_vm9, %v4737_v2, 0.0  ;;  %v4740_v38 = vmul.f32 %v8164_v42, %v8164_v42 }
 0x56c   : > { %v4774_v48 = vadd.f32 %v4773_v14, %v4772_v15  ;;  %v4793_v15 = vsel %vm1184_vm9, %v4738_v32, 0.0  ;;  %v4741_v14 = vmul.f32 %v8166_v0, %v8166_v0 }
 0x56e   : > { %v4776_v27 = vadd.f32 %v4775_v24, %v4774_v48  ;;  %v4795_v48 = vsel %vm1184_vm9, %v4739_v28, 0.0  ;;  %v4742_v24 = vmul.f32 %v8168_v58, %v8168_v58 }
 0x570   : > { %v4778_v16 = vadd.f32 %v4777_v13, %v4776_v27  ;;  %v4797_v27 = vsel %vm1184_vm9, %v4740_v38, 0.0  ;;  %v4743_v13 = vmul.f32 %v8170_v23, %v8170_v23 }
 0x572   : > { %v4780_v20 = vadd.f32 %v4779_v61, %v4778_v16  ;;  %v4799_v16 = vsel %vm1184_vm9, %v4741_v14, 0.0  ;;  %v4744_v61 = vmul.f32 %v8172_v6, %v8172_v6 }
 0x574   : > { %v4782_v3 = vadd.f32 %v4781_v51, %v4780_v20  ;;  %v4801_v20 = vsel %vm1184_vm9, %v4742_v24, 0.0  ;;  %v4745_v51 = vmul.f32 %v8174_v22, %v8174_v22 }
 0x576   : > { %v4784_v40 = vadd.f32 %v4783_v41, %v4782_v3  ;;  %v4803_v3 = vsel %vm1184_vm9, %v4743_v13, 0.0  ;;  %v4805_v41 = vsel %vm1184_vm9, %v4744_v61, 0.0  ;;  %v4807_v29 = vsel %vm1184_vm9, %v4745_v51, 0.0  ;;  %v4856_v13 = vld [vmem:[%s6039_s17 + $0x30] sm:$0xff]  ;;  %v4859_v61 = vld [vmem:[%s6039_s17 + $0x48] sm:$0xff]  ;;  %v4862_v51 = vld [vmem:[%s6039_s17 + $0x60] sm:$0xff] }
 0x578   : > { %v4786_v8 = vadd.f32 %v4785_v52, %v4784_v40 }
 0x57a   : > { %v4788_v19 = vadd.f32 %v4787_v1, %v4786_v8 }
 0x57c   : > { %v4790_v59 = vadd.f32 %v4789_v53, %v4788_v19 }
 0x57e   : > { %v4792_v10 = vadd.f32 %v4791_v46, %v4790_v59 }
 0x580   : > { %v4794_v35 = vadd.f32 %v4793_v15, %v4792_v10 }
 0x582   : > { %v4796_v44 = vadd.f32 %v4795_v48, %v4794_v35 }
 0x584   : > { %v4798_v21 = vadd.f32 %v4797_v27, %v4796_v44 }
 0x586   : > { %v4800_v9 = vadd.f32 %v4799_v16, %v4798_v21  ;;  %v4855_v21 = vld [vmem:[%s6039_s17 + $0x28] sm:$0xff]  ;;  %v4857_v16 = vld [vmem:[%s6039_s17 + $0x38] sm:$0xff] }
 0x588   : > { %v4802_v11 = vadd.f32 %v4801_v20, %v4800_v9  ;;  %v4858_v9 = vld [vmem:[%s6039_s17 + $0x40] sm:$0xff]  ;;  %v4860_v20 = vld [vmem:[%s6039_s17 + $0x50] sm:$0xff] }
 0x58a   : > { %v4804_v34 = vadd.f32 %v4803_v3, %v4802_v11  ;;  %v4863_v3 = vld [vmem:[%s6039_s17 + $0x68] sm:$0xff] }
 0x58c   : > { %v4806_v40 = vadd.f32 %v4805_v41, %v4804_v34  ;;  %v4864_v34 = vld [vmem:[%s6039_s17 + $0x70] sm:$0xff]  ;;  %v4865_v41 = vld [vmem:[%s6039_s17 + $0x78] sm:$0xff] }
 0x58e   : > { %v4808_v52 = vadd.f32 %v4807_v29, %v4806_v40  ;;  %v4866_v40 = vld [vmem:[%s6039_s17 + $0x80] sm:$0xff]  ;;  %v4867_v29 = vld [vmem:[%s6039_s17 + $0x88] sm:$0xff] }
 0x590   : > { %v4809_v8 = vrot.slane %v4808_v52, 4 }
 0x592   : > { %v4810_v2 = vadd.f32 %v4809_v8, %v4808_v52  ;;  %v4868_v52 = vld [vmem:[%s6039_s17 + $0x90] sm:$0xff] }
 0x594   : > { %v4811_v1 = vrot.slane %v4810_v2, 2 }
 0x596   : > { %v4812_v19 = vadd.f32 %v4811_v1, %v4810_v2 }
 0x598   : > { %v4813_v32 = vrot.slane %v4812_v19, 1 }
 0x59a   : > { %v4814_v53 = vadd.f32 %v4813_v32, %v4812_v19  ;;  %v4871_v19 = vld [vmem:[%s6039_s17 + $0xa8] sm:$0xff] }
 0x59c   : > { %v4815_v59 = vmul.f32 0.00390625, %v4814_v53 }
 0x59e   : > { %v4816_v28 = vadd.f32 1e-05, %v4815_v59 }
 0x5a0   : > { %5972 = vrsqrt.f32 %v4816_v28 }
 0x5aa   : > { %v5973_v46 = vpop.eup %5972 }
 0x5ab   : > { %v4818_v10 = vmul.f32 %v5973_v46, %v8090_v49  ;;  %v4819_v38 = vmul.f32 %v5973_v46, %v8093_v5  ;;  %v4820_v15 = vmul.f32 %v5973_v46, %v8096_v4  ;;  %v4821_v35 = vmul.f32 %v5973_v46, %v8099_v31 }
 0x5ac   : > { %v4822_v14 = vmul.f32 %v5973_v46, %v8102_v55  ;;  %v4823_v48 = vmul.f32 %v5973_v46, %v8105_v50  ;;  %v4824_v44 = vmul.f32 %v5973_v46, %v8108_v43  ;;  %v4825_v24 = vmul.f32 %v5973_v46, %v8111_v7 }
 0x5ad   : > { %v4826_v49 = vmul.f32 %v5973_v46, %v8114_v12  ;;  %v4827_v5 = vmul.f32 %v5973_v46, %v8117_v56  ;;  %v4828_v4 = vmul.f32 %v5973_v46, %v8120_v25  ;;  %v4829_v31 = vmul.f32 %v5973_v46, %v8123_v62  ;;  %v4850_v12 = vld [vmem:[%s6039_s17] sm:$0xff]  ;;  %v4851_v56 = vld [vmem:[%s6039_s17 + $0x8] sm:$0xff]  ;;  %v4852_v25 = vld [vmem:[%s6039_s17 + $0x10] sm:$0xff] }
 0x5ae   : > { %v8285_v55 = vmul.f32 %v5973_v46, %v8126_v26  ;;  %v8288_v50 = vmul.f32 %v5973_v46, %v8129_v37  ;;  %v8291_v43 = vmul.f32 %v5973_v46, %v8132_v54  ;;  %v8294_v7 = vmul.f32 %v5973_v46, %v8135_v63  ;;  %v4853_v62 = vld [vmem:[%s6039_s17 + $0x18] sm:$0xff]  ;;  %v4854_v63 = vld [vmem:[%s6039_s17 + $0x20] sm:$0xff] }
 0x5af   : > { %v8301_v27 = vmul.f32 %v5973_v46, %v8138_v30  ;;  %v8304_v26 = vmul.f32 %v5973_v46, %v8141_v33  ;;  %v8307_v37 = vmul.f32 %v5973_v46, %v8144_v39  ;;  %v8310_v54 = vmul.f32 %v5973_v46, %v8147_v18 }
 0x5b0   : > { %v8317_v30 = vmul.f32 %v5973_v46, %v8150_v17  ;;  %v8320_v33 = vmul.f32 %v5973_v46, %v8152_v45  ;;  %v8323_v39 = vmul.f32 %v5973_v46, %v8155_v57  ;;  %v8326_v18 = vmul.f32 %v5973_v46, %v8158_v36  ;;  %v4861_v36 = vld [vmem:[%s6039_s17 + $0x58] sm:$0xff] }
 0x5b1   : > { %v8332_v11 = vmul.f32 %v5973_v46, %v8160_v47  ;;  %v8335_v17 = vmul.f32 %v5973_v46, %v8162_v60  ;;  %v8338_v45 = vmul.f32 %v5973_v46, %v8164_v42  ;;  %v8341_v57 = vmul.f32 %v5973_v46, %v8166_v0 }
 0x5b2   : > { %v8354_v47 = vmul.f32 %v5973_v46, %v8168_v58  ;;  %v8357_v60 = vmul.f32 %v5973_v46, %v8170_v23  ;;  %v8360_v42 = vmul.f32 %v5973_v46, %v8172_v6  ;;  %v8363_v0 = vmul.f32 %v5973_v46, %v8174_v22  ;;  %v4869_v58 = vld [vmem:[%s6039_s17 + $0x98] sm:$0xff]  ;;  %v4870_v6 = vld [vmem:[%s6039_s17 + $0xa0] sm:$0xff]  ;;  %v4872_v22 = vld [vmem:[%s6039_s17 + $0xb0] sm:$0xff] }
 0x5b3   : > { %v4882_v8 = vadd.f32 %v4850_v12, %v4818_v10  ;;  %v4883_v2 = vadd.f32 %v4851_v56, %v4819_v38  ;;  %v4884_v1 = vadd.f32 %v4852_v25, %v4820_v15  ;;  %v4885_v23 = vadd.f32 %v4853_v62, %v4821_v35  ;;  %v4873_v46 = vld [vmem:[%s6039_s17 + $0xb8] sm:$0xff]  ;;  %v4875_v10 = vld [vmem:[%s6039_s17 + $0xc8] sm:$0xff] }
 0x5b4   : > { %8572 = vst [vmem:[#allocation5_spill] sm:$0xff] %v8363_v0  ;;  %v4886_v32 = vadd.f32 %v4854_v63, %v4822_v14  ;;  %v4887_v53 = vadd.f32 %v4855_v21, %v4823_v48  ;;  %v4888_v59 = vadd.f32 %v4856_v13, %v4824_v44  ;;  %v4889_v28 = vadd.f32 %v4857_v16, %v4825_v24  ;;  %v4874_v0 = vld [vmem:[%s6039_s17 + $0xc0] sm:$0xff]  ;;  %v4876_v14 = vld [vmem:[%s6039_s17 + $0xd0] sm:$0xff]  ;;  %v4877_v48 = vld [vmem:[%s6039_s17 + $0xd8] sm:$0xff] }
 0x5b5   : > { %v4890_v38 = vadd.f32 %v4858_v9, %v4826_v49  ;;  %v4891_v15 = vadd.f32 %v4859_v61, %v4827_v5  ;;  %v4892_v35 = vadd.f32 %v4860_v20, %v4828_v4  ;;  %v4893_v12 = vadd.f32 %v4861_v36, %v4829_v31  ;;  %4914 = vst.msk [vmem:[%s8351_s7] sm:$0xff] %vm1184_vm9, %v4882_v8  ;;  %v4878_v44 = vld [vmem:[%s6039_s17 + $0xe0] sm:$0xff]  ;;  %v4879_v31 = vld [vmem:[%s6039_s17 + $0xe8] sm:$0xff] }
 0x5b6   : > { %4915 = vst.msk [vmem:[%s8351_s7 + $0x8] sm:$0xff] %vm1184_vm9, %v4883_v2  ;;  %4916 = vst.msk [vmem:[%s8351_s7 + $0x10] sm:$0xff] %vm1184_vm9, %v4884_v1  ;;  %v4894_v24 = vadd.f32 %v4862_v51, %v8285_v55  ;;  %v4895_v49 = vadd.f32 %v4863_v3, %v8288_v50  ;;  %v4896_v5 = vadd.f32 %v4864_v34, %v8291_v43  ;;  %v4880_v55 = vld [vmem:[%s6039_s17 + $0xf0] sm:$0xff]  ;;  %v4881_v50 = vld [vmem:[%s6039_s17 + $0xf8] sm:$0xff] }
 0x5b7   : > { %4917 = vst.msk [vmem:[%s8351_s7 + $0x18] sm:$0xff] %vm1184_vm9, %v4885_v23  ;;  %v4897_v4 = vadd.f32 %v4865_v41, %v8294_v7  ;;  %4918 = vst.msk [vmem:[%s8351_s7 + $0x20] sm:$0xff] %vm1184_vm9, %v4886_v32  ;;  %v4898_v43 = vadd.f32 %v4866_v40, %v8301_v27  ;;  %v4899_v56 = vadd.f32 %v4867_v29, %v8304_v26 }
 0x5b8   : > { %4919 = vst.msk [vmem:[%s8351_s7 + $0x28] sm:$0xff] %vm1184_vm9, %v4887_v53  ;;  %4920 = vst.msk [vmem:[%s8351_s7 + $0x30] sm:$0xff] %vm1184_vm9, %v4888_v59  ;;  %v4900_v7 = vadd.f32 %v4868_v52, %v8307_v37  ;;  %v4901_v25 = vadd.f32 %v4869_v58, %v8310_v54  ;;  %v4902_v62 = vadd.f32 %v4870_v6, %v8317_v30 }
 0x5b9   : > { %4921 = vst.msk [vmem:[%s8351_s7 + $0x38] sm:$0xff] %vm1184_vm9, %v4889_v28  ;;  %4922 = vst.msk [vmem:[%s8351_s7 + $0x40] sm:$0xff] %vm1184_vm9, %v4890_v38  ;;  %v4903_v27 = vadd.f32 %v4871_v19, %v8320_v33  ;;  %v4904_v26 = vadd.f32 %v4872_v22, %v8323_v39  ;;  %v4905_v37 = vadd.f32 %v4873_v46, %v8326_v18 }
 0x5ba   : > { %4923 = vst.msk [vmem:[%s8351_s7 + $0x48] sm:$0xff] %vm1184_vm9, %v4891_v15  ;;  %4924 = vst.msk [vmem:[%s8351_s7 + $0x50] sm:$0xff] %vm1184_vm9, %v4892_v35  ;;  %v4906_v54 = vadd.f32 %v4874_v0, %v8332_v11  ;;  %v4907_v63 = vadd.f32 %v4875_v10, %v8335_v17  ;;  %v4908_v21 = vadd.f32 %v4876_v14, %v8338_v45 }
 0x5bb   : > { %4925 = vst.msk [vmem:[%s8351_s7 + $0x58] sm:$0xff] %vm1184_vm9, %v4893_v12  ;;  %4926 = vst.msk [vmem:[%s8351_s7 + $0x60] sm:$0xff] %vm1184_vm9, %v4894_v24  ;;  %v4909_v13 = vadd.f32 %v4877_v48, %v8341_v57  ;;  %v4910_v16 = vadd.f32 %v4878_v44, %v8354_v47  ;;  %v4911_v30 = vadd.f32 %v4879_v31, %v8357_v60  ;;  %v8573_v39 = vld [vmem:[#allocation5_spill] sm:$0xff] }
 0x5bc   : > { %4927 = vst.msk [vmem:[%s8351_s7 + $0x68] sm:$0xff] %vm1184_vm9, %v4895_v49  ;;  %4928 = vst.msk [vmem:[%s8351_s7 + $0x70] sm:$0xff] %vm1184_vm9, %v4896_v5  ;;  %v4912_v33 = vadd.f32 %v4880_v55, %v8360_v42  ;;  %v4913_v18 = vadd.f32 %v4881_v50, %v8573_v39 }
 0x5bd   : > { %4929 = vst.msk [vmem:[%s8351_s7 + $0x78] sm:$0xff] %vm1184_vm9, %v4897_v4  ;;  %4930 = vst.msk [vmem:[%s8351_s7 + $0x80] sm:$0xff] %vm1184_vm9, %v4898_v43 }
 0x5be   : > { %4931 = vst.msk [vmem:[%s8351_s7 + $0x88] sm:$0xff] %vm1184_vm9, %v4899_v56  ;;  %4932 = vst.msk [vmem:[%s8351_s7 + $0x90] sm:$0xff] %vm1184_vm9, %v4900_v7 }
 0x5bf   : > { %4933 = vst.msk [vmem:[%s8351_s7 + $0x98] sm:$0xff] %vm1184_vm9, %v4901_v25  ;;  %4934 = vst.msk [vmem:[%s8351_s7 + $0xa0] sm:$0xff] %vm1184_vm9, %v4902_v62 }
 0x5c0   : > { %4935 = vst.msk [vmem:[%s8351_s7 + $0xa8] sm:$0xff] %vm1184_vm9, %v4903_v27  ;;  %4936 = vst.msk [vmem:[%s8351_s7 + $0xb0] sm:$0xff] %vm1184_vm9, %v4904_v26 }
 0x5c1   : > { %4937 = vst.msk [vmem:[%s8351_s7 + $0xb8] sm:$0xff] %vm1184_vm9, %v4905_v37  ;;  %4938 = vst.msk [vmem:[%s8351_s7 + $0xc0] sm:$0xff] %vm1184_vm9, %v4906_v54 }
 0x5c2   : > { %4939 = vst.msk [vmem:[%s8351_s7 + $0xc8] sm:$0xff] %vm1184_vm9, %v4907_v63  ;;  %4940 = vst.msk [vmem:[%s8351_s7 + $0xd0] sm:$0xff] %vm1184_vm9, %v4908_v21 }
 0x5c3   : > { %4941 = vst.msk [vmem:[%s8351_s7 + $0xd8] sm:$0xff] %vm1184_vm9, %v4909_v13  ;;  %4942 = vst.msk [vmem:[%s8351_s7 + $0xe0] sm:$0xff] %vm1184_vm9, %v4910_v16 }
 0x5c4   : > { %4943 = vst.msk [vmem:[%s8351_s7 + $0xe8] sm:$0xff] %vm1184_vm9, %v4911_v30  ;;  %4944 = vst.msk [vmem:[%s8351_s7 + $0xf0] sm:$0xff] %vm1184_vm9, %v4912_v33 }
 0x5c5   : > { %4945 = vst.msk [vmem:[%s8351_s7 + $0xf8] sm:$0xff] %vm1184_vm9, %v4913_v18 }
 0x5c6 PF: > { %s13_s12 = sadd.s32 1, %s5999_s12  }
 0x5c7   : > { %p10_p4 = scmp.ge.s32.totalorder %s13_s12, 4  }
 0x5c9   :  { %12 = sbr.rel (!%p10_p4) target bundleno = 1 (0x1), region = 68 }

</bundles_post_ra>
